<compile_context>
chip_gen: v7x
topology: tpu7x:2x2x1
jax: 0.10.0
libtpu: 0.0.40
codegen_flags: <defaults>
</compile_context>

<pallas_src>
import math
import functools

import jax
import jax.numpy as jnp
from jax.experimental import pallas as pl
from jax.experimental.pallas import tpu as pltpu

# ----------------------------- config (small) ------------------------------
HIDDEN = 128
HEADS = 4
HEAD_DIM = HIDDEN // HEADS
INPUT_SIZE = 4
NUM_TOK = INPUT_SIZE * INPUT_SIZE          # 16
CODEBOOK = 16
VOCAB = CODEBOOK + 1
VOCAB_PAD = 128                            # lane-dense MLM logits (pad 17 -> 128)
NUM_CLASSES = 10
ENC_DEPTH, DEC_DEPTH = 1, 1                # args.enc_dec
MLP_RATIO = 4.0
MLP_HIDDEN = int(HIDDEN * MLP_RATIO)
ATTN_SCALE = HEAD_DIM ** -0.5


# --------------------------- in-kernel helpers ------------------------------
def _gelu_tanh(x):
    c = math.sqrt(2.0 / math.pi)
    return 0.5 * x * (1.0 + jnp.tanh(c * (x + 0.044715 * x * x * x)))


def _ln(x, eps, gamma=None, beta=None):
    mean = jnp.mean(x, axis=-1, keepdims=True)
    var = jnp.mean(jnp.square(x - mean), axis=-1, keepdims=True)
    xn = (x - mean) * jax.lax.rsqrt(var + eps)
    if gamma is not None:
        xn = xn * gamma + beta
    return xn


def _mha(q, k, v):
    """Per-head softmax attention; q:(Nq,D) k,v:(Nk,D); heads packed in lanes."""
    outs = []
    for h in range(HEADS):
        sl = slice(h * HEAD_DIM, (h + 1) * HEAD_DIM)
        s = jax.lax.dot_general(q[:, sl], k[:, sl], (((1,), (1,)), ((), ())),
                                preferred_element_type=jnp.float32) * ATTN_SCALE
        m = jnp.max(s, axis=-1, keepdims=True)
        p = jnp.exp(s - m)
        p = p * pl.reciprocal(jnp.sum(p, axis=-1, keepdims=True), approx=True)
        outs.append(jnp.dot(p, v[:, sl], preferred_element_type=jnp.float32))
    return jnp.concatenate(outs, axis=-1)          # (Nq, D) lane-dense


# --------------------------- fused DiT block kernel --------------------------
def _dit_block_kernel(*refs, has_cond):
    o_ref = refs[-1]
    it = iter(refs[:-1])
    x_ref = next(it)
    c_ref = next(it)
    yc_ref = next(it) if has_cond else None
    ada_w, ada_b = next(it), next(it)
    qkvs_w, qkvs_b = next(it), next(it)
    if has_cond:
        kvc_w, kvc_b = next(it), next(it)
    proj_w, proj_b = next(it), next(it)
    fc1_w, fc1_b = next(it), next(it)
    fc2_w, fc2_b = next(it), next(it)

    D = HIDDEN
    x = x_ref[0].astype(jnp.float32)               # (Nx, D)
    c = c_ref[0].astype(jnp.float32)               # (1, D)

    # adaLN_modulation = SiLU -> Linear(D, 8D); slice 8 (1, D) chunks in VMEM.
    cs = (c * jax.nn.sigmoid(c)).astype(jnp.bfloat16)
    mod = jnp.dot(cs, ada_w[...],
                  preferred_element_type=jnp.float32) + ada_b[...]
    shift_msa = mod[:, 0 * D:1 * D]
    scale_msa = mod[:, 1 * D:2 * D]
    shift_msa_ = mod[:, 2 * D:3 * D]
    scale_msa_ = mod[:, 3 * D:4 * D]
    gate_msa = mod[:, 4 * D:5 * D]
    shift_mlp = mod[:, 5 * D:6 * D]
    scale_mlp = mod[:, 6 * D:7 * D]
    gate_mlp = mod[:, 7 * D:8 * D]

    # --- attention branch (modulate(norm1(x)) -> fused q/kv_self projection) ---
    x_mod = _ln(x, 1e-6) * (1.0 + scale_msa) + shift_msa
    qkvs = jnp.dot(x_mod.astype(jnp.bfloat16), qkvs_w[...],
                   preferred_element_type=jnp.float32) + qkvs_b[...]
    q = qkvs[:, :D]
    k = qkvs[:, D:2 * D]
    v = qkvs[:, 2 * D:]

    if has_cond:
        # Multiway KV "A" path: cond tokens, norm1_ + (shift_msa_, scale_msa_).
        yc = yc_ref[0].astype(jnp.float32)
        yc_mod = _ln(yc, 1e-6) * (1.0 + scale_msa_) + shift_msa_
        kvc = jnp.dot(yc_mod.astype(jnp.bfloat16), kvc_w[...],
                      preferred_element_type=jnp.float32) + kvc_b[...]
        k = jnp.concatenate([kvc[:, :D], k], axis=0)
        v = jnp.concatenate([kvc[:, D:], v], axis=0)

    attn = _mha(q, k, v)
    attn = jnp.dot(attn.astype(jnp.bfloat16), proj_w[...],
                   preferred_element_type=jnp.float32) + proj_b[...]
    x = x + gate_msa * attn                        # gated residual, in-VMEM

    # --- MLP branch ---
    x_mod2 = _ln(x, 1e-6) * (1.0 + scale_mlp) + shift_mlp
    h = jnp.dot(x_mod2.astype(jnp.bfloat16), fc1_w[...],
                preferred_element_type=jnp.float32) + fc1_b[...]
    h = _gelu_tanh(h)
    h = jnp.dot(h.astype(jnp.bfloat16), fc2_w[...],
                preferred_element_type=jnp.float32) + fc2_b[...]
    x = x + gate_mlp * h                           # gated residual, in-VMEM
    o_ref[0] = x.astype(o_ref.dtype)


def dit_block(bp, x, c, y_cond=None):
    """Fused DiT block: one pallas_call, grid parallel over batch.

    x: (B, Nx, D) queries / residual stream.  c: (B, D) conditioning.
    y_cond: optional (B, Nc, D) conditioning KV tokens (multiway A path);
    the self (B path) KV tokens are always the modulated x.
    """
    B, Nx, D = x.shape
    has_cond = y_cond is not None
    c3 = c.reshape(B, 1, D)

    inputs = [x, c3]
    in_specs = [pl.BlockSpec((1, Nx, D), lambda b: (b, 0, 0)),
                pl.BlockSpec((1, 1, D), lambda b: (b, 0, 0))]
    if has_cond:
        Nc = y_cond.shape[1]
        inputs.append(y_cond)
        in_specs.append(pl.BlockSpec((1, Nc, D), lambda b: (b, 0, 0)))

    wnames = ["ada", "qkv_self"] + (["kv_cond"] if has_cond else []) \
             + ["proj", "fc1", "fc2"]
    for name in wnames:
        w, b = bp[name]["w"], bp[name]["b"]
        inputs += [w, b]
        # Constant block index across the grid -> weights are DMA'd once and
        # reused for every batch step (no re-fetch between grid iterations).
        in_specs += [pl.BlockSpec(w.shape, lambda bb: (0, 0)),
                     pl.BlockSpec(b.shape, lambda bb: (0, 0))]

    return pl.pallas_call(
        functools.partial(_dit_block_kernel, has_cond=has_cond),
        out_shape=jax.ShapeDtypeStruct((B, Nx, D), jnp.float32),
        grid=(B,),
        in_specs=in_specs,
        out_specs=pl.BlockSpec((1, Nx, D), lambda b: (b, 0, 0)),
        compiler_params=pltpu.CompilerParams(dimension_semantics=("parallel",)),
    )(*inputs)


# --------------------------- small standalone kernels ------------------------
def _row_tile(M):
    # Keep the whole (tiny) row slab in one grid step when it trivially fits
    # VMEM; only tile very large row counts.  Each extra grid step costs
    # ~0.35 us of overhead, which dominates at M ~ tens of rows.
    if M <= 512 or (M % 16 != 0):
        return M, 1
    tm = M // 2
    return tm, M // tm


def _ln_affine_kernel(x_ref, g_ref, b_ref, o_ref, *, eps):
    x = x_ref[...].astype(jnp.float32)
    o_ref[...] = _ln(x, eps, g_ref[...], b_ref[...]).astype(o_ref.dtype)


def layernorm(x, gamma, beta, eps):
    """Affine LayerNorm over rows.  x:(M,D), gamma/beta:(1,D)."""
    M, D = x.shape
    tm, nt = _row_tile(M)
    return pl.pallas_call(
        functools.partial(_ln_affine_kernel, eps=eps),
        out_shape=jax.ShapeDtypeStruct((M, D), jnp.float32),
        grid=(nt,),
        in_specs=[pl.BlockSpec((tm, D), lambda i: (i, 0)),
                  pl.BlockSpec((1, D), lambda i: (0, 0)),
                  pl.BlockSpec((1, D), lambda i: (0, 0))],
        out_specs=pl.BlockSpec((tm, D), lambda i: (i, 0)),
        compiler_params=pltpu.CompilerParams(dimension_semantics=("parallel",)),
    )(x, gamma, beta)


def _mlm_head_kernel(x_ref, fg_ref, fb_ref, fcw_ref, fcb_ref, lg_ref, lb_ref,
                     we_ref, bias_ref, o_ref):
    x = x_ref[...].astype(jnp.float32)
    x = _ln(x, 1e-5, fg_ref[...], fb_ref[...])              # final norm (affine)
    h = jnp.dot(x.astype(jnp.bfloat16), fcw_ref[...],
                preferred_element_type=jnp.float32) + fcb_ref[...]
    h = _gelu_tanh(h)
    h = _ln(h, 1e-5, lg_ref[...], lb_ref[...])              # mlm LN (affine)
    # logits = h @ word_emb^T, transpose kept inside the kernel (contraction on
    # word_emb's feature axis); word_emb is zero-padded to 128 rows so the
    # output is a lane-dense (M, 128) slab.
    logits = jax.lax.dot_general(h.astype(jnp.bfloat16), we_ref[...],
                                 (((1,), (1,)), ((), ())),
                                 preferred_element_type=jnp.float32)
    o_ref[...] = (logits + bias_ref[...]).astype(o_ref.dtype)


def mlm_head(x, params):
    """Fused: final LayerNorm -> fc -> gelu -> LN -> @ word_emb^T + bias."""
    M, D = x.shape
    tm, nt = _row_tile(M)
    args = [x, params["final_ln_g"], params["final_ln_b"],
            params["mlm_fc"]["w"], params["mlm_fc"]["b"],
            params["mlm_ln_g"], params["mlm_ln_b"],
            params["word_emb"], params["mlm_bias"]]
    in_specs = [pl.BlockSpec((tm, D), lambda i: (i, 0))] + \
               [pl.BlockSpec(a.shape, lambda i: (0, 0)) for a in args[1:]]
    return pl.pallas_call(
        _mlm_head_kernel,
        out_shape=jax.ShapeDtypeStruct((M, VOCAB_PAD), jnp.float32),
        grid=(nt,),
        in_specs=in_specs,
        out_specs=pl.BlockSpec((tm, VOCAB_PAD), lambda i: (i, 0)),
        compiler_params=pltpu.CompilerParams(dimension_semantics=("parallel",)),
    )(*args)


# ------------------------------- parameters ---------------------------------
def init_params(key):
    keys = iter(jax.random.split(key, 64))

    def nrm(shape, std=0.02, dtype=jnp.float32):
        return (jax.random.normal(next(keys), shape, jnp.float32) * std).astype(dtype)

    def lin(fi, fo):
        # weights bf16 (MXU-native), biases f32 (added post-accumulation)
        return {"w": nrm((fi, fo), dtype=jnp.bfloat16),
                "b": jnp.zeros((1, fo), jnp.float32)}

    blocks = []
    for _ in range(ENC_DEPTH + DEC_DEPTH):
        blocks.append({
            # q and the self-path ("B") multiway KV take the same input
            # (modulated x), so their weights are fused column-wise into one
            # (D, 3D) matmul: cols [0:D)=q, [D:2D)=k, [2D:3D)=v.
            "qkv_self": lin(HIDDEN, 3 * HIDDEN),
            "kv_cond": lin(HIDDEN, 2 * HIDDEN),   # multiway "A" path (cond tokens)
            "proj": lin(HIDDEN, HIDDEN),
            "fc1": lin(HIDDEN, MLP_HIDDEN),
            "fc2": lin(MLP_HIDDEN, HIDDEN),
            # NOTE: the reference zero-inits adaLN (adaLN-Zero); small random
            # weights are used so the block compute is actually exercised.
            "ada": lin(HIDDEN, 8 * HIDDEN),
        })

    # Word embedding table, zero-padded to 128 rows (tied with the MLM head so
    # logits come out as a lane-dense (M, 128) slab; rows >= VOCAB are zero).
    word_emb = jnp.zeros((VOCAB_PAD, HIDDEN), jnp.bfloat16)
    word_emb = word_emb.at[:VOCAB].set(nrm((VOCAB, HIDDEN), dtype=jnp.bfloat16))

    return {
        "word_emb": word_emb,
        "pos_emb": nrm((NUM_TOK, HIDDEN), dtype=jnp.bfloat16),
        "bert_ln_g": jnp.ones((1, HIDDEN), jnp.float32),
        "bert_ln_b": jnp.zeros((1, HIDDEN), jnp.float32),
        "label_emb": nrm((NUM_CLASSES + 1, HIDDEN)),
        "blocks": blocks,
        "final_ln_g": jnp.ones((1, HIDDEN), jnp.float32),
        "final_ln_b": jnp.zeros((1, HIDDEN), jnp.float32),
        "mlm_fc": lin(HIDDEN, HIDDEN),
        "mlm_ln_g": jnp.ones((1, HIDDEN), jnp.float32),
        "mlm_ln_b": jnp.zeros((1, HIDDEN), jnp.float32),
        "mlm_bias": jnp.zeros((1, VOCAB_PAD), jnp.float32),
    }


# ------------------------------ forward pass ---------------------------------
@functools.partial(jax.jit, static_argnums=(3,))
def dit_forward(params, masked_ids, context, n_vis):
    B, N = masked_ids.shape
    D = HIDDEN

    # --- x_embedder (BertEmbeddings: word + position emb, LayerNorm; eval) ---
    emb = params["word_emb"][masked_ids] + params["pos_emb"][None, :N, :]
    x = layernorm(emb.reshape(B * N, D), params["bert_ln_g"],
                  params["bert_ln_b"], eps=1e-12).reshape(B, N, D)

    # --- y_embedder (eval: no label token-drop) ---
    c = params["label_emb"][context]                        # (B, D)

    # --- rearranger('split'): visible / masked, original order preserved ---
    masking = masked_ids == CODEBOOK                        # (B, N) bool
    order = jnp.argsort(masking.astype(jnp.int32), axis=-1, stable=True)
    x_sorted = jnp.take_along_axis(x, order[..., None], axis=1)
    visible_x = x_sorted[:, :n_vis]
    masked_x = x_sorted[:, n_vis:]

    # --- encoder blocks: self-attention over visible tokens ---
    for bi in range(ENC_DEPTH):
        visible_x = dit_block(params["blocks"][bi], visible_x, c)

    # --- decoder blocks: masked queries, KV over [visible (A), masked (B)] ---
    for bi in range(ENC_DEPTH, ENC_DEPTH + DEC_DEPTH):
        masked_x = dit_block(params["blocks"][bi], masked_x, c, y_cond=visible_x)

    # --- rearranger('restore') ---
    xcat = jnp.concatenate([visible_x, masked_x], axis=1)
    inv = jnp.argsort(order, axis=-1)
    x = jnp.take_along_axis(xcat, inv[..., None], axis=1)   # (B, N, D)

    # --- final LN + MlmLayer (fc -> gelu -> LN -> @ word_emb^T + bias) ---
    logits = mlm_head(x.reshape(B * N, D), params)          # (B*N, 128) padded
    return logits.reshape(B, N, VOCAB_PAD)[..., :CODEBOOK]


# ----------------------------------- main ------------------------------------
if __name__ == "__main__":
    key = jax.random.PRNGKey(0)
    kp, kid, kctx = jax.random.split(key, 3)
    params = init_params(kp)

    B = 2
    # masked_ids: (B, 16) token ids in [0, CODEBOOK]; CODEBOOK = [MASK].
    # Every other position masked so each row has the same mask count
    # (required by rearranger's equal-count assertion).
    base_ids = jax.random.randint(kid, (B, NUM_TOK), 0, CODEBOOK)
    mask_pattern = (jnp.arange(NUM_TOK) % 2 == 1)
    masked_ids = jnp.where(mask_pattern[None, :], CODEBOOK, base_ids).astype(jnp.int32)
    context = jax.random.randint(kctx, (B,), 0, NUM_CLASSES).astype(jnp.int32)

    # Visible-token count: computed host-side from concrete inputs so it is a
    # static Python int under jit (no trace-time concretization).
    n_vis = int(jnp.sum(masked_ids[0] != CODEBOOK))

    out = dit_forward(params, masked_ids, context, n_vis)
    out = jax.block_until_ready(out)
    assert out.shape == (B, NUM_TOK, CODEBOOK), out.shape
    assert bool(jnp.all(jnp.isfinite(out)))
    print("KERNEL_OK")
</pallas_src>

<mosaic_0001>
module attributes {stable_mosaic.version = 11 : i64} {
  func.func @_ln_affine_kernel(%arg0: i32, %arg1: memref<32x128xbf16, #tpu.memory_space<vmem>>, %arg2: memref<1x128xf32, #tpu.memory_space<vmem>>, %arg3: memref<1x128xf32, #tpu.memory_space<vmem>>, %arg4: memref<32x128xf32, #tpu.memory_space<vmem>>) attributes {dimension_semantics = [#tpu.dimension_semantics<parallel>], iteration_bounds = array<i64: 1>, scalar_prefetch = 0 : i64, scratch_operands = 0 : i64, tpu.core_type = #tpu.core_type<tc>, window_params = [{transform_indices = @transform_0, window_bounds = array<i64: 32, 128>}, {pipeline_mode = #tpu.pipeline_mode<synchronous>, transform_indices = @transform_1, window_bounds = array<i64: 1, 128>}, {pipeline_mode = #tpu.pipeline_mode<synchronous>, transform_indices = @transform_2, window_bounds = array<i64: 1, 128>}, {transform_indices = @transform_3, window_bounds = array<i64: 32, 128>}]} {
    %c0 = arith.constant 0 : index
    %c0_0 = arith.constant 0 : index
    %0 = vector.load %arg1[%c0, %c0_0] : memref<32x128xbf16, #tpu.memory_space<vmem>>, vector<32x128xbf16>
    %1 = arith.extf %0 : vector<32x128xbf16> to vector<32x128xf32>
    %c0_1 = arith.constant 0 : index
    %c0_2 = arith.constant 0 : index
    %2 = vector.load %arg2[%c0_1, %c0_2] : memref<1x128xf32, #tpu.memory_space<vmem>>, vector<1x128xf32>
    %c0_3 = arith.constant 0 : index
    %c0_4 = arith.constant 0 : index
    %3 = vector.load %arg3[%c0_3, %c0_4] : memref<1x128xf32, #tpu.memory_space<vmem>>, vector<1x128xf32>
    %cst = arith.constant dense<0.000000e+00> : vector<32xf32>
    %4 = vector.multi_reduction <add>, %1, %cst [1] : vector<32x128xf32> to vector<32xf32>
    %5 = vector.shape_cast %4 : vector<32xf32> to vector<32x1xf32>
    %cst_5 = arith.constant 1.280000e+02 : f32
    %6 = vector.broadcast %cst_5 : f32 to vector<32x1xf32>
    %7 = arith.divf %5, %6 : vector<32x1xf32>
    %8 = vector.broadcast %7 : vector<32x1xf32> to vector<32x128xf32>
    %9 = arith.subf %1, %8 : vector<32x128xf32>
    %10 = arith.mulf %9, %9 : vector<32x128xf32>
    %cst_6 = arith.constant dense<0.000000e+00> : vector<32xf32>
    %11 = vector.multi_reduction <add>, %10, %cst_6 [1] : vector<32x128xf32> to vector<32xf32>
    %12 = vector.shape_cast %11 : vector<32xf32> to vector<32x1xf32>
    %cst_7 = arith.constant 1.280000e+02 : f32
    %13 = vector.broadcast %cst_7 : f32 to vector<32x1xf32>
    %14 = arith.divf %12, %13 : vector<32x1xf32>
    %15 = vector.broadcast %7 : vector<32x1xf32> to vector<32x128xf32>
    %16 = arith.subf %1, %15 : vector<32x128xf32>
    %cst_8 = arith.constant 9.99999996E-13 : f32
    %17 = vector.broadcast %cst_8 : f32 to vector<32x1xf32>
    %18 = arith.addf %14, %17 : vector<32x1xf32>
    %19 = math.rsqrt %18 : vector<32x1xf32>
    %20 = vector.broadcast %19 : vector<32x1xf32> to vector<32x128xf32>
    %21 = arith.mulf %16, %20 : vector<32x128xf32>
    %22 = vector.broadcast %2 : vector<1x128xf32> to vector<32x128xf32>
    %23 = arith.mulf %21, %22 : vector<32x128xf32>
    %24 = vector.broadcast %3 : vector<1x128xf32> to vector<32x128xf32>
    %25 = arith.addf %23, %24 : vector<32x128xf32>
    %c0_9 = arith.constant 0 : index
    %c0_10 = arith.constant 0 : index
    %26 = vector.load %arg4[%c0_9, %c0_10] : memref<32x128xf32, #tpu.memory_space<vmem>>, vector<32x128xf32>
    tpu.vector_store %arg4[%c0_9, %c0_10], %25 {strides = array<i32>} : memref<32x128xf32, #tpu.memory_space<vmem>>, vector<32x128xf32>,
    return
  }
  func.func @transform_0(%arg0: i32) -> (i32, i32) {
    %c0_i32 = arith.constant 0 : i32
    %c0_i32_0 = arith.constant 0 : i32
    return %arg0, %c0_i32 : i32, i32
  }
  func.func @transform_1(%arg0: i32) -> (i32, i32) {
    %c0_i32 = arith.constant 0 : i32
    %c0_i32_0 = arith.constant 0 : i32
    %c0_i32_1 = arith.constant 0 : i32
    return %c0_i32, %c0_i32_0 : i32, i32
  }
  func.func @transform_2(%arg0: i32) -> (i32, i32) {
    %c0_i32 = arith.constant 0 : i32
    %c0_i32_0 = arith.constant 0 : i32
    %c0_i32_1 = arith.constant 0 : i32
    return %c0_i32, %c0_i32_0 : i32, i32
  }
  func.func @transform_3(%arg0: i32) -> (i32, i32) {
    %c0_i32 = arith.constant 0 : i32
    %c0_i32_0 = arith.constant 0 : i32
    return %arg0, %c0_i32 : i32, i32
  }
}

module attributes {stable_mosaic.version = 11 : i64} {
  func.func @_mlm_head_kernel(%arg0: i32, %arg1: memref<32x128xf32, #tpu.memory_space<vmem>>, %arg2: memref<1x128xf32, #tpu.memory_space<vmem>>, %arg3: memref<1x128xf32, #tpu.memory_space<vmem>>, %arg4: memref<128x128xbf16, #tpu.memory_space<vmem>>, %arg5: memref<1x128xf32, #tpu.memory_space<vmem>>, %arg6: memref<1x128xf32, #tpu.memory_space<vmem>>, %arg7: memref<1x128xf32, #tpu.memory_space<vmem>>, %arg8: memref<128x128xbf16, #tpu.memory_space<vmem>>, %arg9: memref<1x128xf32, #tpu.memory_space<vmem>>, %arg10: memref<32x128xf32, #tpu.memory_space<vmem>>) attributes {dimension_semantics = [#tpu.dimension_semantics<parallel>], iteration_bounds = array<i64: 1>, scalar_prefetch = 0 : i64, scratch_operands = 0 : i64, tpu.core_type = #tpu.core_type<tc>, window_params = [{transform_indices = @transform_0, window_bounds = array<i64: 32, 128>}, {pipeline_mode = #tpu.pipeline_mode<synchronous>, transform_indices = @transform_1, window_bounds = array<i64: 1, 128>}, {pipeline_mode = #tpu.pipeline_mode<synchronous>, transform_indices = @transform_2, window_bounds = array<i64: 1, 128>}, {pipeline_mode = #tpu.pipeline_mode<synchronous>, transform_indices = @transform_3, window_bounds = array<i64: 128, 128>}, {pipeline_mode = #tpu.pipeline_mode<synchronous>, transform_indices = @transform_4, window_bounds = array<i64: 1, 128>}, {pipeline_mode = #tpu.pipeline_mode<synchronous>, transform_indices = @transform_5, window_bounds = array<i64: 1, 128>}, {pipeline_mode = #tpu.pipeline_mode<synchronous>, transform_indices = @transform_6, window_bounds = array<i64: 1, 128>}, {pipeline_mode = #tpu.pipeline_mode<synchronous>, transform_indices = @transform_7, window_bounds = array<i64: 128, 128>}, {pipeline_mode = #tpu.pipeline_mode<synchronous>, transform_indices = @transform_8, window_bounds = array<i64: 1, 128>}, {transform_indices = @transform_9, window_bounds = array<i64: 32, 128>}]} {
    %c0 = arith.constant 0 : index
    %c0_0 = arith.constant 0 : index
    %0 = vector.load %arg1[%c0, %c0_0] : memref<32x128xf32, #tpu.memory_space<vmem>>, vector<32x128xf32>
    %c0_1 = arith.constant 0 : index
    %c0_2 = arith.constant 0 : index
    %1 = vector.load %arg2[%c0_1, %c0_2] : memref<1x128xf32, #tpu.memory_space<vmem>>, vector<1x128xf32>
    %c0_3 = arith.constant 0 : index
    %c0_4 = arith.constant 0 : index
    %2 = vector.load %arg3[%c0_3, %c0_4] : memref<1x128xf32, #tpu.memory_space<vmem>>, vector<1x128xf32>
    %cst = arith.constant dense<0.000000e+00> : vector<32xf32>
    %3 = vector.multi_reduction <add>, %0, %cst [1] : vector<32x128xf32> to vector<32xf32>
    %4 = vector.shape_cast %3 : vector<32xf32> to vector<32x1xf32>
    %cst_5 = arith.constant 1.280000e+02 : f32
    %5 = vector.broadcast %cst_5 : f32 to vector<32x1xf32>
    %6 = arith.divf %4, %5 : vector<32x1xf32>
    %7 = vector.broadcast %6 : vector<32x1xf32> to vector<32x128xf32>
    %8 = arith.subf %0, %7 : vector<32x128xf32>
    %9 = arith.mulf %8, %8 : vector<32x128xf32>
    %cst_6 = arith.constant dense<0.000000e+00> : vector<32xf32>
    %10 = vector.multi_reduction <add>, %9, %cst_6 [1] : vector<32x128xf32> to vector<32xf32>
    %11 = vector.shape_cast %10 : vector<32xf32> to vector<32x1xf32>
    %cst_7 = arith.constant 1.280000e+02 : f32
    %12 = vector.broadcast %cst_7 : f32 to vector<32x1xf32>
    %13 = arith.divf %11, %12 : vector<32x1xf32>
    %14 = vector.broadcast %6 : vector<32x1xf32> to vector<32x128xf32>
    %15 = arith.subf %0, %14 : vector<32x128xf32>
    %cst_8 = arith.constant 9.99999974E-6 : f32
    %16 = vector.broadcast %cst_8 : f32 to vector<32x1xf32>
    %17 = arith.addf %13, %16 : vector<32x1xf32>
    %18 = math.rsqrt %17 : vector<32x1xf32>
    %19 = vector.broadcast %18 : vector<32x1xf32> to vector<32x128xf32>
    %20 = arith.mulf %15, %19 : vector<32x128xf32>
    %21 = vector.broadcast %1 : vector<1x128xf32> to vector<32x128xf32>
    %22 = arith.mulf %20, %21 : vector<32x128xf32>
    %23 = vector.broadcast %2 : vector<1x128xf32> to vector<32x128xf32>
    %24 = arith.addf %22, %23 : vector<32x128xf32>
    %25 = arith.truncf %24 : vector<32x128xf32> to vector<32x128xbf16>
    %c0_9 = arith.constant 0 : index
    %c0_10 = arith.constant 0 : index
    %26 = vector.load %arg4[%c0_9, %c0_10] : memref<128x128xbf16, #tpu.memory_space<vmem>>, vector<128x128xbf16>
    %cst_11 = arith.constant dense<0.000000e+00> : vector<32x128xf32>
    %27 = tpu.matmul %25, %26, %cst_11 {dimension_numbers = #tpu.dot_dimension_numbers<[1], [0], [0], [1], [0, 0, 1, 1], [], []>} : vector<32x128xbf16>, vector<128x128xbf16>, vector<32x128xf32> -> vector<32x128xf32>
    %c0_12 = arith.constant 0 : index
    %c0_13 = arith.constant 0 : index
    %28 = vector.load %arg5[%c0_12, %c0_13] : memref<1x128xf32, #tpu.memory_space<vmem>>, vector<1x128xf32>
    %29 = vector.broadcast %28 : vector<1x128xf32> to vector<32x128xf32>
    %30 = arith.addf %27, %29 : vector<32x128xf32>
    %cst_14 = arith.constant 5.000000e-01 : f32
    %31 = vector.broadcast %cst_14 : f32 to vector<32x128xf32>
    %32 = arith.mulf %31, %30 : vector<32x128xf32>
    %cst_15 = arith.constant 4.471500e-02 : f32
    %33 = vector.broadcast %cst_15 : f32 to vector<32x128xf32>
    %34 = arith.mulf %33, %30 : vector<32x128xf32>
    %35 = arith.mulf %34, %30 : vector<32x128xf32>
    %36 = arith.mulf %35, %30 : vector<32x128xf32>
    %37 = arith.addf %30, %36 : vector<32x128xf32>
    %cst_16 = arith.constant 0.797884583 : f32
    %38 = vector.broadcast %cst_16 : f32 to vector<32x128xf32>
    %39 = arith.mulf %38, %37 : vector<32x128xf32>
    %40 = math.tanh %39 : vector<32x128xf32>
    %cst_17 = arith.constant 1.000000e+00 : f32
    %41 = vector.broadcast %cst_17 : f32 to vector<32x128xf32>
    %42 = arith.addf %41, %40 : vector<32x128xf32>
    %43 = arith.mulf %32, %42 : vector<32x128xf32>
    %c0_18 = arith.constant 0 : index
    %c0_19 = arith.constant 0 : index
    %44 = vector.load %arg6[%c0_18, %c0_19] : memref<1x128xf32, #tpu.memory_space<vmem>>, vector<1x128xf32>
    %c0_20 = arith.constant 0 : index
    %c0_21 = arith.constant 0 : index
    %45 = vector.load %arg7[%c0_20, %c0_21] : memref<1x128xf32, #tpu.memory_space<vmem>>, vector<1x128xf32>
    %cst_22 = arith.constant dense<0.000000e+00> : vector<32xf32>
    %46 = vector.multi_reduction <add>, %43, %cst_22 [1] : vector<32x128xf32> to vector<32xf32>
    %47 = vector.shape_cast %46 : vector<32xf32> to vector<32x1xf32>
    %cst_23 = arith.constant 1.280000e+02 : f32
    %48 = vector.broadcast %cst_23 : f32 to vector<32x1xf32>
    %49 = arith.divf %47, %48 : vector<32x1xf32>
    %50 = vector.broadcast %49 : vector<32x1xf32> to vector<32x128xf32>
    %51 = arith.subf %43, %50 : vector<32x128xf32>
    %52 = arith.mulf %51, %51 : vector<32x128xf32>
    %cst_24 = arith.constant dense<0.000000e+00> : vector<32xf32>
    %53 = vector.multi_reduction <add>, %52, %cst_24 [1] : vector<32x128xf32> to vector<32xf32>
    %54 = vector.shape_cast %53 : vector<32xf32> to vector<32x1xf32>
    %cst_25 = arith.constant 1.280000e+02 : f32
    %55 = vector.broadcast %cst_25 : f32 to vector<32x1xf32>
    %56 = arith.divf %54, %55 : vector<32x1xf32>
    %57 = vector.broadcast %49 : vector<32x1xf32> to vector<32x128xf32>
    %58 = arith.subf %43, %57 : vector<32x128xf32>
    %cst_26 = arith.constant 9.99999974E-6 : f32
    %59 = vector.broadcast %cst_26 : f32 to vector<32x1xf32>
    %60 = arith.addf %56, %59 : vector<32x1xf32>
    %61 = math.rsqrt %60 : vector<32x1xf32>
    %62 = vector.broadcast %61 : vector<32x1xf32> to vector<32x128xf32>
    %63 = arith.mulf %58, %62 : vector<32x128xf32>
    %64 = vector.broadcast %44 : vector<1x128xf32> to vector<32x128xf32>
    %65 = arith.mulf %63, %64 : vector<32x128xf32>
    %66 = vector.broadcast %45 : vector<1x128xf32> to vector<32x128xf32>
    %67 = arith.addf %65, %66 : vector<32x128xf32>
    %68 = arith.truncf %67 : vector<32x128xf32> to vector<32x128xbf16>
    %c0_27 = arith.constant 0 : index
    %c0_28 = arith.constant 0 : index
    %69 = vector.load %arg8[%c0_27, %c0_28] : memref<128x128xbf16, #tpu.memory_space<vmem>>, vector<128x128xbf16>
    %cst_29 = arith.constant dense<0.000000e+00> : vector<32x128xf32>
    %70 = tpu.matmul %68, %69, %cst_29 {dimension_numbers = #tpu.dot_dimension_numbers<[1], [1], [0], [0], [0, 0, 1, 0], [], []>} : vector<32x128xbf16>, vector<128x128xbf16>, vector<32x128xf32> -> vector<32x128xf32>
    %c0_30 = arith.constant 0 : index
    %c0_31 = arith.constant 0 : index
    %71 = vector.load %arg9[%c0_30, %c0_31] : memref<1x128xf32, #tpu.memory_space<vmem>>, vector<1x128xf32>
    %72 = vector.broadcast %71 : vector<1x128xf32> to vector<32x128xf32>
    %73 = arith.addf %70, %72 : vector<32x128xf32>
    %c0_32 = arith.constant 0 : index
    %c0_33 = arith.constant 0 : index
    %74 = vector.load %arg10[%c0_32, %c0_33] : memref<32x128xf32, #tpu.memory_space<vmem>>, vector<32x128xf32>
    tpu.vector_store %arg10[%c0_32, %c0_33], %73 {strides = array<i32>} : memref<32x128xf32, #tpu.memory_space<vmem>>, vector<32x128xf32>,
    return
  }
  func.func @transform_0(%arg0: i32) -> (i32, i32) {
    %c0_i32 = arith.constant 0 : i32
    %c0_i32_0 = arith.constant 0 : i32
    return %arg0, %c0_i32 : i32, i32
  }
  func.func @transform_1(%arg0: i32) -> (i32, i32) {
    %c0_i32 = arith.constant 0 : i32
    %c0_i32_0 = arith.constant 0 : i32
    %c0_i32_1 = arith.constant 0 : i32
    return %c0_i32, %c0_i32_0 : i32, i32
  }
  func.func @transform_2(%arg0: i32) -> (i32, i32) {
    %c0_i32 = arith.constant 0 : i32
    %c0_i32_0 = arith.constant 0 : i32
    %c0_i32_1 = arith.constant 0 : i32
    return %c0_i32, %c0_i32_0 : i32, i32
  }
  func.func @transform_3(%arg0: i32) -> (i32, i32) {
    %c0_i32 = arith.constant 0 : i32
    %c0_i32_0 = arith.constant 0 : i32
    %c0_i32_1 = arith.constant 0 : i32
    return %c0_i32, %c0_i32_0 : i32, i32
  }
  func.func @transform_4(%arg0: i32) -> (i32, i32) {
    %c0_i32 = arith.constant 0 : i32
    %c0_i32_0 = arith.constant 0 : i32
    %c0_i32_1 = arith.constant 0 : i32
    return %c0_i32, %c0_i32_0 : i32, i32
  }
  func.func @transform_5(%arg0: i32) -> (i32, i32) {
    %c0_i32 = arith.constant 0 : i32
    %c0_i32_0 = arith.constant 0 : i32
    %c0_i32_1 = arith.constant 0 : i32
    return %c0_i32, %c0_i32_0 : i32, i32
  }
  func.func @transform_6(%arg0: i32) -> (i32, i32) {
    %c0_i32 = arith.constant 0 : i32
    %c0_i32_0 = arith.constant 0 : i32
    %c0_i32_1 = arith.constant 0 : i32
    return %c0_i32, %c0_i32_0 : i32, i32
  }
  func.func @transform_7(%arg0: i32) -> (i32, i32) {
    %c0_i32 = arith.constant 0 : i32
    %c0_i32_0 = arith.constant 0 : i32
    %c0_i32_1 = arith.constant 0 : i32
    return %c0_i32, %c0_i32_0 : i32, i32
  }
  func.func @transform_8(%arg0: i32) -> (i32, i32) {
    %c0_i32 = arith.constant 0 : i32
    %c0_i32_0 = arith.constant 0 : i32
    %c0_i32_1 = arith.constant 0 : i32
    return %c0_i32, %c0_i32_0 : i32, i32
  }
  func.func @transform_9(%arg0: i32) -> (i32, i32) {
    %c0_i32 = arith.constant 0 : i32
    %c0_i32_0 = arith.constant 0 : i32
    return %arg0, %c0_i32 : i32, i32
  }
}

module attributes {stable_mosaic.version = 11 : i64} {
  func.func @_dit_block_kernel(%arg0: i32, %arg1: memref<1x8x128xf32, #tpu.memory_space<vmem>>, %arg2: memref<1x1x128xf32, #tpu.memory_space<vmem>>, %arg3: memref<128x1024xbf16, #tpu.memory_space<vmem>>, %arg4: memref<1x1024xf32, #tpu.memory_space<vmem>>, %arg5: memref<128x384xbf16, #tpu.memory_space<vmem>>, %arg6: memref<1x384xf32, #tpu.memory_space<vmem>>, %arg7: memref<128x128xbf16, #tpu.memory_space<vmem>>, %arg8: memref<1x128xf32, #tpu.memory_space<vmem>>, %arg9: memref<128x512xbf16, #tpu.memory_space<vmem>>, %arg10: memref<1x512xf32, #tpu.memory_space<vmem>>, %arg11: memref<512x128xbf16, #tpu.memory_space<vmem>>, %arg12: memref<1x128xf32, #tpu.memory_space<vmem>>, %arg13: memref<1x8x128xf32, #tpu.memory_space<vmem>>) attributes {dimension_semantics = [#tpu.dimension_semantics<parallel>], iteration_bounds = array<i64: 2>, scalar_prefetch = 0 : i64, scratch_operands = 0 : i64, tpu.core_type = #tpu.core_type<tc>, window_params = [{transform_indices = @transform_0, window_bounds = array<i64: 1, 8, 128>}, {transform_indices = @transform_1, window_bounds = array<i64: 1, 1, 128>}, {pipeline_mode = #tpu.pipeline_mode<synchronous>, transform_indices = @transform_2, window_bounds = array<i64: 128, 1024>}, {pipeline_mode = #tpu.pipeline_mode<synchronous>, transform_indices = @transform_3, window_bounds = array<i64: 1, 1024>}, {pipeline_mode = #tpu.pipeline_mode<synchronous>, transform_indices = @transform_4, window_bounds = array<i64: 128, 384>}, {pipeline_mode = #tpu.pipeline_mode<synchronous>, transform_indices = @transform_5, window_bounds = array<i64: 1, 384>}, {pipeline_mode = #tpu.pipeline_mode<synchronous>, transform_indices = @transform_6, window_bounds = array<i64: 128, 128>}, {pipeline_mode = #tpu.pipeline_mode<synchronous>, transform_indices = @transform_7, window_bounds = array<i64: 1, 128>}, {pipeline_mode = #tpu.pipeline_mode<synchronous>, transform_indices = @transform_8, window_bounds = array<i64: 128, 512>}, {pipeline_mode = #tpu.pipeline_mode<synchronous>, transform_indices = @transform_9, window_bounds = array<i64: 1, 512>}, {pipeline_mode = #tpu.pipeline_mode<synchronous>, transform_indices = @transform_10, window_bounds = array<i64: 512, 128>}, {pipeline_mode = #tpu.pipeline_mode<synchronous>, transform_indices = @transform_11, window_bounds = array<i64: 1, 128>}, {transform_indices = @transform_12, window_bounds = array<i64: 1, 8, 128>}]} {
    %c0 = arith.constant 0 : index
    %c0_0 = arith.constant 0 : index
    %c0_1 = arith.constant 0 : index
    %0 = vector.load %arg1[%c0, %c0_0, %c0_1] : memref<1x8x128xf32, #tpu.memory_space<vmem>>, vector<1x8x128xf32>
    %1 = vector.shape_cast %0 : vector<1x8x128xf32> to vector<8x128xf32>
    %c0_2 = arith.constant 0 : index
    %c0_3 = arith.constant 0 : index
    %c0_4 = arith.constant 0 : index
    %2 = vector.load %arg2[%c0_2, %c0_3, %c0_4] : memref<1x1x128xf32, #tpu.memory_space<vmem>>, vector<1x1x128xf32>
    %3 = vector.shape_cast %2 : vector<1x1x128xf32> to vector<1x128xf32>
    %4 = arith.negf %3 : vector<1x128xf32>
    %5 = math.exp %4 : vector<1x128xf32>
    %cst = arith.constant 1.000000e+00 : f32
    %6 = vector.broadcast %cst : f32 to vector<1x128xf32>
    %7 = arith.addf %6, %5 : vector<1x128xf32>
    %8 = arith.divf %6, %7 : vector<1x128xf32>
    %9 = arith.mulf %3, %8 : vector<1x128xf32>
    %10 = arith.truncf %9 : vector<1x128xf32> to vector<1x128xbf16>
    %c0_5 = arith.constant 0 : index
    %c0_6 = arith.constant 0 : index
    %11 = vector.load %arg3[%c0_5, %c0_6] : memref<128x1024xbf16, #tpu.memory_space<vmem>>, vector<128x1024xbf16>
    %cst_7 = arith.constant dense<0.000000e+00> : vector<1x1024xf32>
    %12 = tpu.matmul %10, %11, %cst_7 {dimension_numbers = #tpu.dot_dimension_numbers<[1], [0], [0], [1], [0, 0, 1, 1], [], []>} : vector<1x128xbf16>, vector<128x1024xbf16>, vector<1x1024xf32> -> vector<1x1024xf32>
    %c0_8 = arith.constant 0 : index
    %c0_9 = arith.constant 0 : index
    %13 = vector.load %arg4[%c0_8, %c0_9] : memref<1x1024xf32, #tpu.memory_space<vmem>>, vector<1x1024xf32>
    %14 = arith.addf %12, %13 : vector<1x1024xf32>
    %15 = vector.extract_strided_slice %14 {offsets = [0, 0], sizes = [1, 128], strides = [1, 1]} : vector<1x1024xf32> to vector<1x128xf32>
    %16 = vector.extract_strided_slice %14 {offsets = [0, 128], sizes = [1, 128], strides = [1, 1]} : vector<1x1024xf32> to vector<1x128xf32>
    %17 = vector.extract_strided_slice %14 {offsets = [0, 512], sizes = [1, 128], strides = [1, 1]} : vector<1x1024xf32> to vector<1x128xf32>
    %18 = vector.extract_strided_slice %14 {offsets = [0, 640], sizes = [1, 128], strides = [1, 1]} : vector<1x1024xf32> to vector<1x128xf32>
    %19 = vector.extract_strided_slice %14 {offsets = [0, 768], sizes = [1, 128], strides = [1, 1]} : vector<1x1024xf32> to vector<1x128xf32>
    %20 = vector.extract_strided_slice %14 {offsets = [0, 896], sizes = [1, 128], strides = [1, 1]} : vector<1x1024xf32> to vector<1x128xf32>
    %cst_10 = arith.constant dense<0.000000e+00> : vector<8xf32>
    %21 = vector.multi_reduction <add>, %1, %cst_10 [1] : vector<8x128xf32> to vector<8xf32>
    %22 = vector.shape_cast %21 : vector<8xf32> to vector<8x1xf32>
    %cst_11 = arith.constant 1.280000e+02 : f32
    %23 = vector.broadcast %cst_11 : f32 to vector<8x1xf32>
    %24 = arith.divf %22, %23 : vector<8x1xf32>
    %25 = vector.broadcast %24 : vector<8x1xf32> to vector<8x128xf32>
    %26 = arith.subf %1, %25 : vector<8x128xf32>
    %27 = arith.mulf %26, %26 : vector<8x128xf32>
    %cst_12 = arith.constant dense<0.000000e+00> : vector<8xf32>
    %28 = vector.multi_reduction <add>, %27, %cst_12 [1] : vector<8x128xf32> to vector<8xf32>
    %29 = vector.shape_cast %28 : vector<8xf32> to vector<8x1xf32>
    %cst_13 = arith.constant 1.280000e+02 : f32
    %30 = vector.broadcast %cst_13 : f32 to vector<8x1xf32>
    %31 = arith.divf %29, %30 : vector<8x1xf32>
    %32 = vector.broadcast %24 : vector<8x1xf32> to vector<8x128xf32>
    %33 = arith.subf %1, %32 : vector<8x128xf32>
    %cst_14 = arith.constant 9.99999997E-7 : f32
    %34 = vector.broadcast %cst_14 : f32 to vector<8x1xf32>
    %35 = arith.addf %31, %34 : vector<8x1xf32>
    %36 = math.rsqrt %35 : vector<8x1xf32>
    %37 = vector.broadcast %36 : vector<8x1xf32> to vector<8x128xf32>
    %38 = arith.mulf %33, %37 : vector<8x128xf32>
    %cst_15 = arith.constant 1.000000e+00 : f32
    %39 = vector.broadcast %cst_15 : f32 to vector<1x128xf32>
    %40 = arith.addf %39, %16 : vector<1x128xf32>
    %41 = vector.broadcast %40 : vector<1x128xf32> to vector<8x128xf32>
    %42 = arith.mulf %38, %41 : vector<8x128xf32>
    %43 = vector.broadcast %15 : vector<1x128xf32> to vector<8x128xf32>
    %44 = arith.addf %42, %43 : vector<8x128xf32>
    %45 = arith.truncf %44 : vector<8x128xf32> to vector<8x128xbf16>
    %c0_16 = arith.constant 0 : index
    %c0_17 = arith.constant 0 : index
    %46 = vector.load %arg5[%c0_16, %c0_17] : memref<128x384xbf16, #tpu.memory_space<vmem>>, vector<128x384xbf16>
    %cst_18 = arith.constant dense<0.000000e+00> : vector<8x384xf32>
    %47 = tpu.matmul %45, %46, %cst_18 {dimension_numbers = #tpu.dot_dimension_numbers<[1], [0], [0], [1], [0, 0, 1, 1], [], []>} : vector<8x128xbf16>, vector<128x384xbf16>, vector<8x384xf32> -> vector<8x384xf32>
    %c0_19 = arith.constant 0 : index
    %c0_20 = arith.constant 0 : index
    %48 = vector.load %arg6[%c0_19, %c0_20] : memref<1x384xf32, #tpu.memory_space<vmem>>, vector<1x384xf32>
    %49 = vector.broadcast %48 : vector<1x384xf32> to vector<8x384xf32>
    %50 = arith.addf %47, %49 : vector<8x384xf32>
    %51 = vector.extract_strided_slice %50 {offsets = [0, 0], sizes = [8, 128], strides = [1, 1]} : vector<8x384xf32> to vector<8x128xf32>
    %52 = vector.extract_strided_slice %50 {offsets = [0, 128], sizes = [8, 128], strides = [1, 1]} : vector<8x384xf32> to vector<8x128xf32>
    %53 = vector.extract_strided_slice %50 {offsets = [0, 256], sizes = [8, 128], strides = [1, 1]} : vector<8x384xf32> to vector<8x128xf32>
    %54 = vector.extract_strided_slice %51 {offsets = [0, 0], sizes = [8, 32], strides = [1, 1]} : vector<8x128xf32> to vector<8x32xf32>
    %55 = vector.extract_strided_slice %52 {offsets = [0, 0], sizes = [8, 32], strides = [1, 1]} : vector<8x128xf32> to vector<8x32xf32>
    %cst_21 = arith.constant dense<0.000000e+00> : vector<8x8xf32>
    %56 = tpu.matmul %54, %55, %cst_21 {dimension_numbers = #tpu.dot_dimension_numbers<[1], [1], [0], [0], [0, 0, 1, 0], [], []>} : vector<8x32xf32>, vector<8x32xf32>, vector<8x8xf32> -> vector<8x8xf32>
    %cst_22 = arith.constant 0.176776692 : f32
    %57 = vector.broadcast %cst_22 : f32 to vector<8x8xf32>
    %58 = arith.mulf %56, %57 : vector<8x8xf32>
    %cst_23 = arith.constant dense<0xFF800000> : vector<8xf32>
    %59 = vector.multi_reduction <maximumf>, %58, %cst_23 [1] : vector<8x8xf32> to vector<8xf32>
    %60 = vector.shape_cast %59 : vector<8xf32> to vector<8x1xf32>
    %61 = vector.broadcast %60 : vector<8x1xf32> to vector<8x8xf32>
    %62 = arith.subf %58, %61 : vector<8x8xf32>
    %63 = math.exp %62 : vector<8x8xf32>
    %cst_24 = arith.constant dense<0.000000e+00> : vector<8xf32>
    %64 = vector.multi_reduction <add>, %63, %cst_24 [1] : vector<8x8xf32> to vector<8xf32>
    %65 = vector.shape_cast %64 : vector<8xf32> to vector<8x1xf32>
    %66 = tpu.reciprocal %65 {approx = true} : vector<8x1xf32> -> vector<8x1xf32>
    %67 = vector.broadcast %66 : vector<8x1xf32> to vector<8x8xf32>
    %68 = arith.mulf %63, %67 : vector<8x8xf32>
    %69 = vector.extract_strided_slice %53 {offsets = [0, 0], sizes = [8, 32], strides = [1, 1]} : vector<8x128xf32> to vector<8x32xf32>
    %cst_25 = arith.constant dense<0.000000e+00> : vector<8x32xf32>
    %70 = tpu.matmul %68, %69, %cst_25 {dimension_numbers = #tpu.dot_dimension_numbers<[1], [0], [0], [1], [0, 0, 1, 1], [], []>} : vector<8x8xf32>, vector<8x32xf32>, vector<8x32xf32> -> vector<8x32xf32>
    %71 = vector.extract_strided_slice %51 {offsets = [0, 32], sizes = [8, 32], strides = [1, 1]} : vector<8x128xf32> to vector<8x32xf32>
    %72 = vector.extract_strided_slice %52 {offsets = [0, 32], sizes = [8, 32], strides = [1, 1]} : vector<8x128xf32> to vector<8x32xf32>
    %cst_26 = arith.constant dense<0.000000e+00> : vector<8x8xf32>
    %73 = tpu.matmul %71, %72, %cst_26 {dimension_numbers = #tpu.dot_dimension_numbers<[1], [1], [0], [0], [0, 0, 1, 0], [], []>} : vector<8x32xf32>, vector<8x32xf32>, vector<8x8xf32> -> vector<8x8xf32>
    %cst_27 = arith.constant 0.176776692 : f32
    %74 = vector.broadcast %cst_27 : f32 to vector<8x8xf32>
    %75 = arith.mulf %73, %74 : vector<8x8xf32>
    %cst_28 = arith.constant dense<0xFF800000> : vector<8xf32>
    %76 = vector.multi_reduction <maximumf>, %75, %cst_28 [1] : vector<8x8xf32> to vector<8xf32>
    %77 = vector.shape_cast %76 : vector<8xf32> to vector<8x1xf32>
    %78 = vector.broadcast %77 : vector<8x1xf32> to vector<8x8xf32>
    %79 = arith.subf %75, %78 : vector<8x8xf32>
    %80 = math.exp %79 : vector<8x8xf32>
    %cst_29 = arith.constant dense<0.000000e+00> : vector<8xf32>
    %81 = vector.multi_reduction <add>, %80, %cst_29 [1] : vector<8x8xf32> to vector<8xf32>
    %82 = vector.shape_cast %81 : vector<8xf32> to vector<8x1xf32>
    %83 = tpu.reciprocal %82 {approx = true} : vector<8x1xf32> -> vector<8x1xf32>
    %84 = vector.broadcast %83 : vector<8x1xf32> to vector<8x8xf32>
    %85 = arith.mulf %80, %84 : vector<8x8xf32>
    %86 = vector.extract_strided_slice %53 {offsets = [0, 32], sizes = [8, 32], strides = [1, 1]} : vector<8x128xf32> to vector<8x32xf32>
    %cst_30 = arith.constant dense<0.000000e+00> : vector<8x32xf32>
    %87 = tpu.matmul %85, %86, %cst_30 {dimension_numbers = #tpu.dot_dimension_numbers<[1], [0], [0], [1], [0, 0, 1, 1], [], []>} : vector<8x8xf32>, vector<8x32xf32>, vector<8x32xf32> -> vector<8x32xf32>
    %88 = vector.extract_strided_slice %51 {offsets = [0, 64], sizes = [8, 32], strides = [1, 1]} : vector<8x128xf32> to vector<8x32xf32>
    %89 = vector.extract_strided_slice %52 {offsets = [0, 64], sizes = [8, 32], strides = [1, 1]} : vector<8x128xf32> to vector<8x32xf32>
    %cst_31 = arith.constant dense<0.000000e+00> : vector<8x8xf32>
    %90 = tpu.matmul %88, %89, %cst_31 {dimension_numbers = #tpu.dot_dimension_numbers<[1], [1], [0], [0], [0, 0, 1, 0], [], []>} : vector<8x32xf32>, vector<8x32xf32>, vector<8x8xf32> -> vector<8x8xf32>
    %cst_32 = arith.constant 0.176776692 : f32
    %91 = vector.broadcast %cst_32 : f32 to vector<8x8xf32>
    %92 = arith.mulf %90, %91 : vector<8x8xf32>
    %cst_33 = arith.constant dense<0xFF800000> : vector<8xf32>
    %93 = vector.multi_reduction <maximumf>, %92, %cst_33 [1] : vector<8x8xf32> to vector<8xf32>
    %94 = vector.shape_cast %93 : vector<8xf32> to vector<8x1xf32>
    %95 = vector.broadcast %94 : vector<8x1xf32> to vector<8x8xf32>
    %96 = arith.subf %92, %95 : vector<8x8xf32>
    %97 = math.exp %96 : vector<8x8xf32>
    %cst_34 = arith.constant dense<0.000000e+00> : vector<8xf32>
    %98 = vector.multi_reduction <add>, %97, %cst_34 [1] : vector<8x8xf32> to vector<8xf32>
    %99 = vector.shape_cast %98 : vector<8xf32> to vector<8x1xf32>
    %100 = tpu.reciprocal %99 {approx = true} : vector<8x1xf32> -> vector<8x1xf32>
    %101 = vector.broadcast %100 : vector<8x1xf32> to vector<8x8xf32>
    %102 = arith.mulf %97, %101 : vector<8x8xf32>
    %103 = vector.extract_strided_slice %53 {offsets = [0, 64], sizes = [8, 32], strides = [1, 1]} : vector<8x128xf32> to vector<8x32xf32>
    %cst_35 = arith.constant dense<0.000000e+00> : vector<8x32xf32>
    %104 = tpu.matmul %102, %103, %cst_35 {dimension_numbers = #tpu.dot_dimension_numbers<[1], [0], [0], [1], [0, 0, 1, 1], [], []>} : vector<8x8xf32>, vector<8x32xf32>, vector<8x32xf32> -> vector<8x32xf32>
    %105 = vector.extract_strided_slice %51 {offsets = [0, 96], sizes = [8, 32], strides = [1, 1]} : vector<8x128xf32> to vector<8x32xf32>
    %106 = vector.extract_strided_slice %52 {offsets = [0, 96], sizes = [8, 32], strides = [1, 1]} : vector<8x128xf32> to vector<8x32xf32>
    %cst_36 = arith.constant dense<0.000000e+00> : vector<8x8xf32>
    %107 = tpu.matmul %105, %106, %cst_36 {dimension_numbers = #tpu.dot_dimension_numbers<[1], [1], [0], [0], [0, 0, 1, 0], [], []>} : vector<8x32xf32>, vector<8x32xf32>, vector<8x8xf32> -> vector<8x8xf32>
    %cst_37 = arith.constant 0.176776692 : f32
    %108 = vector.broadcast %cst_37 : f32 to vector<8x8xf32>
    %109 = arith.mulf %107, %108 : vector<8x8xf32>
    %cst_38 = arith.constant dense<0xFF800000> : vector<8xf32>
    %110 = vector.multi_reduction <maximumf>, %109, %cst_38 [1] : vector<8x8xf32> to vector<8xf32>
    %111 = vector.shape_cast %110 : vector<8xf32> to vector<8x1xf32>
    %112 = vector.broadcast %111 : vector<8x1xf32> to vector<8x8xf32>
    %113 = arith.subf %109, %112 : vector<8x8xf32>
    %114 = math.exp %113 : vector<8x8xf32>
    %cst_39 = arith.constant dense<0.000000e+00> : vector<8xf32>
    %115 = vector.multi_reduction <add>, %114, %cst_39 [1] : vector<8x8xf32> to vector<8xf32>
    %116 = vector.shape_cast %115 : vector<8xf32> to vector<8x1xf32>
    %117 = tpu.reciprocal %116 {approx = true} : vector<8x1xf32> -> vector<8x1xf32>
    %118 = vector.broadcast %117 : vector<8x1xf32> to vector<8x8xf32>
    %119 = arith.mulf %114, %118 : vector<8x8xf32>
    %120 = vector.extract_strided_slice %53 {offsets = [0, 96], sizes = [8, 32], strides = [1, 1]} : vector<8x128xf32> to vector<8x32xf32>
    %cst_40 = arith.constant dense<0.000000e+00> : vector<8x32xf32>
    %121 = tpu.matmul %119, %120, %cst_40 {dimension_numbers = #tpu.dot_dimension_numbers<[1], [0], [0], [1], [0, 0, 1, 1], [], []>} : vector<8x8xf32>, vector<8x32xf32>, vector<8x32xf32> -> vector<8x32xf32>
    %122 = tpu.concatenate %70, %87, %104, %121 in 1 : vector<8x32xf32>, vector<8x32xf32>, vector<8x32xf32>, vector<8x32xf32> -> vector<8x128xf32>
    %123 = arith.truncf %122 : vector<8x128xf32> to vector<8x128xbf16>
    %c0_41 = arith.constant 0 : index
    %c0_42 = arith.constant 0 : index
    %124 = vector.load %arg7[%c0_41, %c0_42] : memref<128x128xbf16, #tpu.memory_space<vmem>>, vector<128x128xbf16>
    %cst_43 = arith.constant dense<0.000000e+00> : vector<8x128xf32>
    %125 = tpu.matmul %123, %124, %cst_43 {dimension_numbers = #tpu.dot_dimension_numbers<[1], [0], [0], [1], [0, 0, 1, 1], [], []>} : vector<8x128xbf16>, vector<128x128xbf16>, vector<8x128xf32> -> vector<8x128xf32>
    %c0_44 = arith.constant 0 : index
    %c0_45 = arith.constant 0 : index
    %126 = vector.load %arg8[%c0_44, %c0_45] : memref<1x128xf32, #tpu.memory_space<vmem>>, vector<1x128xf32>
    %127 = vector.broadcast %126 : vector<1x128xf32> to vector<8x128xf32>
    %128 = arith.addf %125, %127 : vector<8x128xf32>
    %129 = vector.broadcast %17 : vector<1x128xf32> to vector<8x128xf32>
    %130 = arith.mulf %129, %128 : vector<8x128xf32>
    %131 = arith.addf %1, %130 : vector<8x128xf32>
    %cst_46 = arith.constant dense<0.000000e+00> : vector<8xf32>
    %132 = vector.multi_reduction <add>, %131, %cst_46 [1] : vector<8x128xf32> to vector<8xf32>
    %133 = vector.shape_cast %132 : vector<8xf32> to vector<8x1xf32>
    %cst_47 = arith.constant 1.280000e+02 : f32
    %134 = vector.broadcast %cst_47 : f32 to vector<8x1xf32>
    %135 = arith.divf %133, %134 : vector<8x1xf32>
    %136 = vector.broadcast %135 : vector<8x1xf32> to vector<8x128xf32>
    %137 = arith.subf %131, %136 : vector<8x128xf32>
    %138 = arith.mulf %137, %137 : vector<8x128xf32>
    %cst_48 = arith.constant dense<0.000000e+00> : vector<8xf32>
    %139 = vector.multi_reduction <add>, %138, %cst_48 [1] : vector<8x128xf32> to vector<8xf32>
    %140 = vector.shape_cast %139 : vector<8xf32> to vector<8x1xf32>
    %cst_49 = arith.constant 1.280000e+02 : f32
    %141 = vector.broadcast %cst_49 : f32 to vector<8x1xf32>
    %142 = arith.divf %140, %141 : vector<8x1xf32>
    %143 = vector.broadcast %135 : vector<8x1xf32> to vector<8x128xf32>
    %144 = arith.subf %131, %143 : vector<8x128xf32>
    %cst_50 = arith.constant 9.99999997E-7 : f32
    %145 = vector.broadcast %cst_50 : f32 to vector<8x1xf32>
    %146 = arith.addf %142, %145 : vector<8x1xf32>
    %147 = math.rsqrt %146 : vector<8x1xf32>
    %148 = vector.broadcast %147 : vector<8x1xf32> to vector<8x128xf32>
    %149 = arith.mulf %144, %148 : vector<8x128xf32>
    %cst_51 = arith.constant 1.000000e+00 : f32
    %150 = vector.broadcast %cst_51 : f32 to vector<1x128xf32>
    %151 = arith.addf %150, %19 : vector<1x128xf32>
    %152 = vector.broadcast %151 : vector<1x128xf32> to vector<8x128xf32>
    %153 = arith.mulf %149, %152 : vector<8x128xf32>
    %154 = vector.broadcast %18 : vector<1x128xf32> to vector<8x128xf32>
    %155 = arith.addf %153, %154 : vector<8x128xf32>
    %156 = arith.truncf %155 : vector<8x128xf32> to vector<8x128xbf16>
    %c0_52 = arith.constant 0 : index
    %c0_53 = arith.constant 0 : index
    %157 = vector.load %arg9[%c0_52, %c0_53] : memref<128x512xbf16, #tpu.memory_space<vmem>>, vector<128x512xbf16>
    %cst_54 = arith.constant dense<0.000000e+00> : vector<8x512xf32>
    %158 = tpu.matmul %156, %157, %cst_54 {dimension_numbers = #tpu.dot_dimension_numbers<[1], [0], [0], [1], [0, 0, 1, 1], [], []>} : vector<8x128xbf16>, vector<128x512xbf16>, vector<8x512xf32> -> vector<8x512xf32>
    %c0_55 = arith.constant 0 : index
    %c0_56 = arith.constant 0 : index
    %159 = vector.load %arg10[%c0_55, %c0_56] : memref<1x512xf32, #tpu.memory_space<vmem>>, vector<1x512xf32>
    %160 = vector.broadcast %159 : vector<1x512xf32> to vector<8x512xf32>
    %161 = arith.addf %158, %160 : vector<8x512xf32>
    %cst_57 = arith.constant 5.000000e-01 : f32
    %162 = vector.broadcast %cst_57 : f32 to vector<8x512xf32>
    %163 = arith.mulf %162, %161 : vector<8x512xf32>
    %cst_58 = arith.constant 4.471500e-02 : f32
    %164 = vector.broadcast %cst_58 : f32 to vector<8x512xf32>
    %165 = arith.mulf %164, %161 : vector<8x512xf32>
    %166 = arith.mulf %165, %161 : vector<8x512xf32>
    %167 = arith.mulf %166, %161 : vector<8x512xf32>
    %168 = arith.addf %161, %167 : vector<8x512xf32>
    %cst_59 = arith.constant 0.797884583 : f32
    %169 = vector.broadcast %cst_59 : f32 to vector<8x512xf32>
    %170 = arith.mulf %169, %168 : vector<8x512xf32>
    %171 = math.tanh %170 : vector<8x512xf32>
    %cst_60 = arith.constant 1.000000e+00 : f32
    %172 = vector.broadcast %cst_60 : f32 to vector<8x512xf32>
    %173 = arith.addf %172, %171 : vector<8x512xf32>
    %174 = arith.mulf %163, %173 : vector<8x512xf32>
    %175 = arith.truncf %174 : vector<8x512xf32> to vector<8x512xbf16>
    %c0_61 = arith.constant 0 : index
    %c0_62 = arith.constant 0 : index
    %176 = vector.load %arg11[%c0_61, %c0_62] : memref<512x128xbf16, #tpu.memory_space<vmem>>, vector<512x128xbf16>
    %cst_63 = arith.constant dense<0.000000e+00> : vector<8x128xf32>
    %177 = tpu.matmul %175, %176, %cst_63 {dimension_numbers = #tpu.dot_dimension_numbers<[1], [0], [0], [1], [0, 0, 1, 1], [], []>} : vector<8x512xbf16>, vector<512x128xbf16>, vector<8x128xf32> -> vector<8x128xf32>
    %c0_64 = arith.constant 0 : index
    %c0_65 = arith.constant 0 : index
    %178 = vector.load %arg12[%c0_64, %c0_65] : memref<1x128xf32, #tpu.memory_space<vmem>>, vector<1x128xf32>
    %179 = vector.broadcast %178 : vector<1x128xf32> to vector<8x128xf32>
    %180 = arith.addf %177, %179 : vector<8x128xf32>
    %181 = vector.broadcast %20 : vector<1x128xf32> to vector<8x128xf32>
    %182 = arith.mulf %181, %180 : vector<8x128xf32>
    %183 = arith.addf %131, %182 : vector<8x128xf32>
    %c0_66 = arith.constant 0 : index
    %c0_67 = arith.constant 0 : index
    %c0_68 = arith.constant 0 : index
    %184 = vector.load %arg13[%c0_66, %c0_67, %c0_68] : memref<1x8x128xf32, #tpu.memory_space<vmem>>, vector<1x8x128xf32>
    %185 = vector.shape_cast %184 : vector<1x8x128xf32> to vector<8x128xf32>
    %186 = vector.shape_cast %183 : vector<8x128xf32> to vector<1x8x128xf32>
    tpu.vector_store %arg13[%c0_66, %c0_67, %c0_68], %186 {strides = array<i32>} : memref<1x8x128xf32, #tpu.memory_space<vmem>>, vector<1x8x128xf32>,
    return
  }
  func.func @transform_0(%arg0: i32) -> (i32, i32, i32) {
    %c0_i32 = arith.constant 0 : i32
    %c0_i32_0 = arith.constant 0 : i32
    %c0_i32_1 = arith.constant 0 : i32
    return %arg0, %c0_i32, %c0_i32_0 : i32, i32, i32
  }
  func.func @transform_1(%arg0: i32) -> (i32, i32, i32) {
    %c0_i32 = arith.constant 0 : i32
    %c0_i32_0 = arith.constant 0 : i32
    %c0_i32_1 = arith.constant 0 : i32
    return %arg0, %c0_i32, %c0_i32_0 : i32, i32, i32
  }
  func.func @transform_2(%arg0: i32) -> (i32, i32) {
    %c0_i32 = arith.constant 0 : i32
    %c0_i32_0 = arith.constant 0 : i32
    %c0_i32_1 = arith.constant 0 : i32
    return %c0_i32, %c0_i32_0 : i32, i32
  }
  func.func @transform_3(%arg0: i32) -> (i32, i32) {
    %c0_i32 = arith.constant 0 : i32
    %c0_i32_0 = arith.constant 0 : i32
    %c0_i32_1 = arith.constant 0 : i32
    return %c0_i32, %c0_i32_0 : i32, i32
  }
  func.func @transform_4(%arg0: i32) -> (i32, i32) {
    %c0_i32 = arith.constant 0 : i32
    %c0_i32_0 = arith.constant 0 : i32
    %c0_i32_1 = arith.constant 0 : i32
    return %c0_i32, %c0_i32_0 : i32, i32
  }
  func.func @transform_5(%arg0: i32) -> (i32, i32) {
    %c0_i32 = arith.constant 0 : i32
    %c0_i32_0 = arith.constant 0 : i32
    %c0_i32_1 = arith.constant 0 : i32
    return %c0_i32, %c0_i32_0 : i32, i32
  }
  func.func @transform_6(%arg0: i32) -> (i32, i32) {
    %c0_i32 = arith.constant 0 : i32
    %c0_i32_0 = arith.constant 0 : i32
    %c0_i32_1 = arith.constant 0 : i32
    return %c0_i32, %c0_i32_0 : i32, i32
  }
  func.func @transform_7(%arg0: i32) -> (i32, i32) {
    %c0_i32 = arith.constant 0 : i32
    %c0_i32_0 = arith.constant 0 : i32
    %c0_i32_1 = arith.constant 0 : i32
    return %c0_i32, %c0_i32_0 : i32, i32
  }
  func.func @transform_8(%arg0: i32) -> (i32, i32) {
    %c0_i32 = arith.constant 0 : i32
    %c0_i32_0 = arith.constant 0 : i32
    %c0_i32_1 = arith.constant 0 : i32
    return %c0_i32, %c0_i32_0 : i32, i32
  }
  func.func @transform_9(%arg0: i32) -> (i32, i32) {
    %c0_i32 = arith.constant 0 : i32
    %c0_i32_0 = arith.constant 0 : i32
    %c0_i32_1 = arith.constant 0 : i32
    return %c0_i32, %c0_i32_0 : i32, i32
  }
  func.func @transform_10(%arg0: i32) -> (i32, i32) {
    %c0_i32 = arith.constant 0 : i32
    %c0_i32_0 = arith.constant 0 : i32
    %c0_i32_1 = arith.constant 0 : i32
    return %c0_i32, %c0_i32_0 : i32, i32
  }
  func.func @transform_11(%arg0: i32) -> (i32, i32) {
    %c0_i32 = arith.constant 0 : i32
    %c0_i32_0 = arith.constant 0 : i32
    %c0_i32_1 = arith.constant 0 : i32
    return %c0_i32, %c0_i32_0 : i32, i32
  }
  func.func @transform_12(%arg0: i32) -> (i32, i32, i32) {
    %c0_i32 = arith.constant 0 : i32
    %c0_i32_0 = arith.constant 0 : i32
    %c0_i32_1 = arith.constant 0 : i32
    return %arg0, %c0_i32, %c0_i32_0 : i32, i32, i32
  }
}

module attributes {stable_mosaic.version = 11 : i64} {
  func.func @_dit_block_kernel(%arg0: i32, %arg1: memref<1x8x128xf32, #tpu.memory_space<vmem>>, %arg2: memref<1x1x128xf32, #tpu.memory_space<vmem>>, %arg3: memref<1x8x128xf32, #tpu.memory_space<vmem>>, %arg4: memref<128x1024xbf16, #tpu.memory_space<vmem>>, %arg5: memref<1x1024xf32, #tpu.memory_space<vmem>>, %arg6: memref<128x384xbf16, #tpu.memory_space<vmem>>, %arg7: memref<1x384xf32, #tpu.memory_space<vmem>>, %arg8: memref<128x256xbf16, #tpu.memory_space<vmem>>, %arg9: memref<1x256xf32, #tpu.memory_space<vmem>>, %arg10: memref<128x128xbf16, #tpu.memory_space<vmem>>, %arg11: memref<1x128xf32, #tpu.memory_space<vmem>>, %arg12: memref<128x512xbf16, #tpu.memory_space<vmem>>, %arg13: memref<1x512xf32, #tpu.memory_space<vmem>>, %arg14: memref<512x128xbf16, #tpu.memory_space<vmem>>, %arg15: memref<1x128xf32, #tpu.memory_space<vmem>>, %arg16: memref<1x8x128xf32, #tpu.memory_space<vmem>>) attributes {dimension_semantics = [#tpu.dimension_semantics<parallel>], iteration_bounds = array<i64: 2>, scalar_prefetch = 0 : i64, scratch_operands = 0 : i64, tpu.core_type = #tpu.core_type<tc>, window_params = [{transform_indices = @transform_0, window_bounds = array<i64: 1, 8, 128>}, {transform_indices = @transform_1, window_bounds = array<i64: 1, 1, 128>}, {transform_indices = @transform_2, window_bounds = array<i64: 1, 8, 128>}, {pipeline_mode = #tpu.pipeline_mode<synchronous>, transform_indices = @transform_3, window_bounds = array<i64: 128, 1024>}, {pipeline_mode = #tpu.pipeline_mode<synchronous>, transform_indices = @transform_4, window_bounds = array<i64: 1, 1024>}, {pipeline_mode = #tpu.pipeline_mode<synchronous>, transform_indices = @transform_5, window_bounds = array<i64: 128, 384>}, {pipeline_mode = #tpu.pipeline_mode<synchronous>, transform_indices = @transform_6, window_bounds = array<i64: 1, 384>}, {pipeline_mode = #tpu.pipeline_mode<synchronous>, transform_indices = @transform_7, window_bounds = array<i64: 128, 256>}, {pipeline_mode = #tpu.pipeline_mode<synchronous>, transform_indices = @transform_8, window_bounds = array<i64: 1, 256>}, {pipeline_mode = #tpu.pipeline_mode<synchronous>, transform_indices = @transform_9, window_bounds = array<i64: 128, 128>}, {pipeline_mode = #tpu.pipeline_mode<synchronous>, transform_indices = @transform_10, window_bounds = array<i64: 1, 128>}, {pipeline_mode = #tpu.pipeline_mode<synchronous>, transform_indices = @transform_11, window_bounds = array<i64: 128, 512>}, {pipeline_mode = #tpu.pipeline_mode<synchronous>, transform_indices = @transform_12, window_bounds = array<i64: 1, 512>}, {pipeline_mode = #tpu.pipeline_mode<synchronous>, transform_indices = @transform_13, window_bounds = array<i64: 512, 128>}, {pipeline_mode = #tpu.pipeline_mode<synchronous>, transform_indices = @transform_14, window_bounds = array<i64: 1, 128>}, {transform_indices = @transform_15, window_bounds = array<i64: 1, 8, 128>}]} {
    %c0 = arith.constant 0 : index
    %c0_0 = arith.constant 0 : index
    %c0_1 = arith.constant 0 : index
    %0 = vector.load %arg1[%c0, %c0_0, %c0_1] : memref<1x8x128xf32, #tpu.memory_space<vmem>>, vector<1x8x128xf32>
    %1 = vector.shape_cast %0 : vector<1x8x128xf32> to vector<8x128xf32>
    %c0_2 = arith.constant 0 : index
    %c0_3 = arith.constant 0 : index
    %c0_4 = arith.constant 0 : index
    %2 = vector.load %arg2[%c0_2, %c0_3, %c0_4] : memref<1x1x128xf32, #tpu.memory_space<vmem>>, vector<1x1x128xf32>
    %3 = vector.shape_cast %2 : vector<1x1x128xf32> to vector<1x128xf32>
    %4 = arith.negf %3 : vector<1x128xf32>
    %5 = math.exp %4 : vector<1x128xf32>
    %cst = arith.constant 1.000000e+00 : f32
    %6 = vector.broadcast %cst : f32 to vector<1x128xf32>
    %7 = arith.addf %6, %5 : vector<1x128xf32>
    %8 = arith.divf %6, %7 : vector<1x128xf32>
    %9 = arith.mulf %3, %8 : vector<1x128xf32>
    %10 = arith.truncf %9 : vector<1x128xf32> to vector<1x128xbf16>
    %c0_5 = arith.constant 0 : index
    %c0_6 = arith.constant 0 : index
    %11 = vector.load %arg4[%c0_5, %c0_6] : memref<128x1024xbf16, #tpu.memory_space<vmem>>, vector<128x1024xbf16>
    %cst_7 = arith.constant dense<0.000000e+00> : vector<1x1024xf32>
    %12 = tpu.matmul %10, %11, %cst_7 {dimension_numbers = #tpu.dot_dimension_numbers<[1], [0], [0], [1], [0, 0, 1, 1], [], []>} : vector<1x128xbf16>, vector<128x1024xbf16>, vector<1x1024xf32> -> vector<1x1024xf32>
    %c0_8 = arith.constant 0 : index
    %c0_9 = arith.constant 0 : index
    %13 = vector.load %arg5[%c0_8, %c0_9] : memref<1x1024xf32, #tpu.memory_space<vmem>>, vector<1x1024xf32>
    %14 = arith.addf %12, %13 : vector<1x1024xf32>
    %15 = vector.extract_strided_slice %14 {offsets = [0, 0], sizes = [1, 128], strides = [1, 1]} : vector<1x1024xf32> to vector<1x128xf32>
    %16 = vector.extract_strided_slice %14 {offsets = [0, 128], sizes = [1, 128], strides = [1, 1]} : vector<1x1024xf32> to vector<1x128xf32>
    %17 = vector.extract_strided_slice %14 {offsets = [0, 256], sizes = [1, 128], strides = [1, 1]} : vector<1x1024xf32> to vector<1x128xf32>
    %18 = vector.extract_strided_slice %14 {offsets = [0, 384], sizes = [1, 128], strides = [1, 1]} : vector<1x1024xf32> to vector<1x128xf32>
    %19 = vector.extract_strided_slice %14 {offsets = [0, 512], sizes = [1, 128], strides = [1, 1]} : vector<1x1024xf32> to vector<1x128xf32>
    %20 = vector.extract_strided_slice %14 {offsets = [0, 640], sizes = [1, 128], strides = [1, 1]} : vector<1x1024xf32> to vector<1x128xf32>
    %21 = vector.extract_strided_slice %14 {offsets = [0, 768], sizes = [1, 128], strides = [1, 1]} : vector<1x1024xf32> to vector<1x128xf32>
    %22 = vector.extract_strided_slice %14 {offsets = [0, 896], sizes = [1, 128], strides = [1, 1]} : vector<1x1024xf32> to vector<1x128xf32>
    %cst_10 = arith.constant dense<0.000000e+00> : vector<8xf32>
    %23 = vector.multi_reduction <add>, %1, %cst_10 [1] : vector<8x128xf32> to vector<8xf32>
    %24 = vector.shape_cast %23 : vector<8xf32> to vector<8x1xf32>
    %cst_11 = arith.constant 1.280000e+02 : f32
    %25 = vector.broadcast %cst_11 : f32 to vector<8x1xf32>
    %26 = arith.divf %24, %25 : vector<8x1xf32>
    %27 = vector.broadcast %26 : vector<8x1xf32> to vector<8x128xf32>
    %28 = arith.subf %1, %27 : vector<8x128xf32>
    %29 = arith.mulf %28, %28 : vector<8x128xf32>
    %cst_12 = arith.constant dense<0.000000e+00> : vector<8xf32>
    %30 = vector.multi_reduction <add>, %29, %cst_12 [1] : vector<8x128xf32> to vector<8xf32>
    %31 = vector.shape_cast %30 : vector<8xf32> to vector<8x1xf32>
    %cst_13 = arith.constant 1.280000e+02 : f32
    %32 = vector.broadcast %cst_13 : f32 to vector<8x1xf32>
    %33 = arith.divf %31, %32 : vector<8x1xf32>
    %34 = vector.broadcast %26 : vector<8x1xf32> to vector<8x128xf32>
    %35 = arith.subf %1, %34 : vector<8x128xf32>
    %cst_14 = arith.constant 9.99999997E-7 : f32
    %36 = vector.broadcast %cst_14 : f32 to vector<8x1xf32>
    %37 = arith.addf %33, %36 : vector<8x1xf32>
    %38 = math.rsqrt %37 : vector<8x1xf32>
    %39 = vector.broadcast %38 : vector<8x1xf32> to vector<8x128xf32>
    %40 = arith.mulf %35, %39 : vector<8x128xf32>
    %cst_15 = arith.constant 1.000000e+00 : f32
    %41 = vector.broadcast %cst_15 : f32 to vector<1x128xf32>
    %42 = arith.addf %41, %16 : vector<1x128xf32>
    %43 = vector.broadcast %42 : vector<1x128xf32> to vector<8x128xf32>
    %44 = arith.mulf %40, %43 : vector<8x128xf32>
    %45 = vector.broadcast %15 : vector<1x128xf32> to vector<8x128xf32>
    %46 = arith.addf %44, %45 : vector<8x128xf32>
    %47 = arith.truncf %46 : vector<8x128xf32> to vector<8x128xbf16>
    %c0_16 = arith.constant 0 : index
    %c0_17 = arith.constant 0 : index
    %48 = vector.load %arg6[%c0_16, %c0_17] : memref<128x384xbf16, #tpu.memory_space<vmem>>, vector<128x384xbf16>
    %cst_18 = arith.constant dense<0.000000e+00> : vector<8x384xf32>
    %49 = tpu.matmul %47, %48, %cst_18 {dimension_numbers = #tpu.dot_dimension_numbers<[1], [0], [0], [1], [0, 0, 1, 1], [], []>} : vector<8x128xbf16>, vector<128x384xbf16>, vector<8x384xf32> -> vector<8x384xf32>
    %c0_19 = arith.constant 0 : index
    %c0_20 = arith.constant 0 : index
    %50 = vector.load %arg7[%c0_19, %c0_20] : memref<1x384xf32, #tpu.memory_space<vmem>>, vector<1x384xf32>
    %51 = vector.broadcast %50 : vector<1x384xf32> to vector<8x384xf32>
    %52 = arith.addf %49, %51 : vector<8x384xf32>
    %53 = vector.extract_strided_slice %52 {offsets = [0, 0], sizes = [8, 128], strides = [1, 1]} : vector<8x384xf32> to vector<8x128xf32>
    %54 = vector.extract_strided_slice %52 {offsets = [0, 128], sizes = [8, 128], strides = [1, 1]} : vector<8x384xf32> to vector<8x128xf32>
    %55 = vector.extract_strided_slice %52 {offsets = [0, 256], sizes = [8, 128], strides = [1, 1]} : vector<8x384xf32> to vector<8x128xf32>
    %c0_21 = arith.constant 0 : index
    %c0_22 = arith.constant 0 : index
    %c0_23 = arith.constant 0 : index
    %56 = vector.load %arg3[%c0_21, %c0_22, %c0_23] : memref<1x8x128xf32, #tpu.memory_space<vmem>>, vector<1x8x128xf32>
    %57 = vector.shape_cast %56 : vector<1x8x128xf32> to vector<8x128xf32>
    %cst_24 = arith.constant dense<0.000000e+00> : vector<8xf32>
    %58 = vector.multi_reduction <add>, %57, %cst_24 [1] : vector<8x128xf32> to vector<8xf32>
    %59 = vector.shape_cast %58 : vector<8xf32> to vector<8x1xf32>
    %cst_25 = arith.constant 1.280000e+02 : f32
    %60 = vector.broadcast %cst_25 : f32 to vector<8x1xf32>
    %61 = arith.divf %59, %60 : vector<8x1xf32>
    %62 = vector.broadcast %61 : vector<8x1xf32> to vector<8x128xf32>
    %63 = arith.subf %57, %62 : vector<8x128xf32>
    %64 = arith.mulf %63, %63 : vector<8x128xf32>
    %cst_26 = arith.constant dense<0.000000e+00> : vector<8xf32>
    %65 = vector.multi_reduction <add>, %64, %cst_26 [1] : vector<8x128xf32> to vector<8xf32>
    %66 = vector.shape_cast %65 : vector<8xf32> to vector<8x1xf32>
    %cst_27 = arith.constant 1.280000e+02 : f32
    %67 = vector.broadcast %cst_27 : f32 to vector<8x1xf32>
    %68 = arith.divf %66, %67 : vector<8x1xf32>
    %69 = vector.broadcast %61 : vector<8x1xf32> to vector<8x128xf32>
    %70 = arith.subf %57, %69 : vector<8x128xf32>
    %cst_28 = arith.constant 9.99999997E-7 : f32
    %71 = vector.broadcast %cst_28 : f32 to vector<8x1xf32>
    %72 = arith.addf %68, %71 : vector<8x1xf32>
    %73 = math.rsqrt %72 : vector<8x1xf32>
    %74 = vector.broadcast %73 : vector<8x1xf32> to vector<8x128xf32>
    %75 = arith.mulf %70, %74 : vector<8x128xf32>
    %cst_29 = arith.constant 1.000000e+00 : f32
    %76 = vector.broadcast %cst_29 : f32 to vector<1x128xf32>
    %77 = arith.addf %76, %18 : vector<1x128xf32>
    %78 = vector.broadcast %77 : vector<1x128xf32> to vector<8x128xf32>
    %79 = arith.mulf %75, %78 : vector<8x128xf32>
    %80 = vector.broadcast %17 : vector<1x128xf32> to vector<8x128xf32>
    %81 = arith.addf %79, %80 : vector<8x128xf32>
    %82 = arith.truncf %81 : vector<8x128xf32> to vector<8x128xbf16>
    %c0_30 = arith.constant 0 : index
    %c0_31 = arith.constant 0 : index
    %83 = vector.load %arg8[%c0_30, %c0_31] : memref<128x256xbf16, #tpu.memory_space<vmem>>, vector<128x256xbf16>
    %cst_32 = arith.constant dense<0.000000e+00> : vector<8x256xf32>
    %84 = tpu.matmul %82, %83, %cst_32 {dimension_numbers = #tpu.dot_dimension_numbers<[1], [0], [0], [1], [0, 0, 1, 1], [], []>} : vector<8x128xbf16>, vector<128x256xbf16>, vector<8x256xf32> -> vector<8x256xf32>
    %c0_33 = arith.constant 0 : index
    %c0_34 = arith.constant 0 : index
    %85 = vector.load %arg9[%c0_33, %c0_34] : memref<1x256xf32, #tpu.memory_space<vmem>>, vector<1x256xf32>
    %86 = vector.broadcast %85 : vector<1x256xf32> to vector<8x256xf32>
    %87 = arith.addf %84, %86 : vector<8x256xf32>
    %88 = vector.extract_strided_slice %87 {offsets = [0, 0], sizes = [8, 128], strides = [1, 1]} : vector<8x256xf32> to vector<8x128xf32>
    %89 = tpu.concatenate %88, %54 in 0 : vector<8x128xf32>, vector<8x128xf32> -> vector<16x128xf32>
    %90 = vector.extract_strided_slice %87 {offsets = [0, 128], sizes = [8, 128], strides = [1, 1]} : vector<8x256xf32> to vector<8x128xf32>
    %91 = tpu.concatenate %90, %55 in 0 : vector<8x128xf32>, vector<8x128xf32> -> vector<16x128xf32>
    %92 = vector.extract_strided_slice %53 {offsets = [0, 0], sizes = [8, 32], strides = [1, 1]} : vector<8x128xf32> to vector<8x32xf32>
    %93 = vector.extract_strided_slice %89 {offsets = [0, 0], sizes = [16, 32], strides = [1, 1]} : vector<16x128xf32> to vector<16x32xf32>
    %cst_35 = arith.constant dense<0.000000e+00> : vector<8x16xf32>
    %94 = tpu.matmul %92, %93, %cst_35 {dimension_numbers = #tpu.dot_dimension_numbers<[1], [1], [0], [0], [0, 0, 1, 0], [], []>} : vector<8x32xf32>, vector<16x32xf32>, vector<8x16xf32> -> vector<8x16xf32>
    %cst_36 = arith.constant 0.176776692 : f32
    %95 = vector.broadcast %cst_36 : f32 to vector<8x16xf32>
    %96 = arith.mulf %94, %95 : vector<8x16xf32>
    %cst_37 = arith.constant dense<0xFF800000> : vector<8xf32>
    %97 = vector.multi_reduction <maximumf>, %96, %cst_37 [1] : vector<8x16xf32> to vector<8xf32>
    %98 = vector.shape_cast %97 : vector<8xf32> to vector<8x1xf32>
    %99 = vector.broadcast %98 : vector<8x1xf32> to vector<8x16xf32>
    %100 = arith.subf %96, %99 : vector<8x16xf32>
    %101 = math.exp %100 : vector<8x16xf32>
    %cst_38 = arith.constant dense<0.000000e+00> : vector<8xf32>
    %102 = vector.multi_reduction <add>, %101, %cst_38 [1] : vector<8x16xf32> to vector<8xf32>
    %103 = vector.shape_cast %102 : vector<8xf32> to vector<8x1xf32>
    %104 = tpu.reciprocal %103 {approx = true} : vector<8x1xf32> -> vector<8x1xf32>
    %105 = vector.broadcast %104 : vector<8x1xf32> to vector<8x16xf32>
    %106 = arith.mulf %101, %105 : vector<8x16xf32>
    %107 = vector.extract_strided_slice %91 {offsets = [0, 0], sizes = [16, 32], strides = [1, 1]} : vector<16x128xf32> to vector<16x32xf32>
    %cst_39 = arith.constant dense<0.000000e+00> : vector<8x32xf32>
    %108 = tpu.matmul %106, %107, %cst_39 {dimension_numbers = #tpu.dot_dimension_numbers<[1], [0], [0], [1], [0, 0, 1, 1], [], []>} : vector<8x16xf32>, vector<16x32xf32>, vector<8x32xf32> -> vector<8x32xf32>
    %109 = vector.extract_strided_slice %53 {offsets = [0, 32], sizes = [8, 32], strides = [1, 1]} : vector<8x128xf32> to vector<8x32xf32>
    %110 = vector.extract_strided_slice %89 {offsets = [0, 32], sizes = [16, 32], strides = [1, 1]} : vector<16x128xf32> to vector<16x32xf32>
    %cst_40 = arith.constant dense<0.000000e+00> : vector<8x16xf32>
    %111 = tpu.matmul %109, %110, %cst_40 {dimension_numbers = #tpu.dot_dimension_numbers<[1], [1], [0], [0], [0, 0, 1, 0], [], []>} : vector<8x32xf32>, vector<16x32xf32>, vector<8x16xf32> -> vector<8x16xf32>
    %cst_41 = arith.constant 0.176776692 : f32
    %112 = vector.broadcast %cst_41 : f32 to vector<8x16xf32>
    %113 = arith.mulf %111, %112 : vector<8x16xf32>
    %cst_42 = arith.constant dense<0xFF800000> : vector<8xf32>
    %114 = vector.multi_reduction <maximumf>, %113, %cst_42 [1] : vector<8x16xf32> to vector<8xf32>
    %115 = vector.shape_cast %114 : vector<8xf32> to vector<8x1xf32>
    %116 = vector.broadcast %115 : vector<8x1xf32> to vector<8x16xf32>
    %117 = arith.subf %113, %116 : vector<8x16xf32>
    %118 = math.exp %117 : vector<8x16xf32>
    %cst_43 = arith.constant dense<0.000000e+00> : vector<8xf32>
    %119 = vector.multi_reduction <add>, %118, %cst_43 [1] : vector<8x16xf32> to vector<8xf32>
    %120 = vector.shape_cast %119 : vector<8xf32> to vector<8x1xf32>
    %121 = tpu.reciprocal %120 {approx = true} : vector<8x1xf32> -> vector<8x1xf32>
    %122 = vector.broadcast %121 : vector<8x1xf32> to vector<8x16xf32>
    %123 = arith.mulf %118, %122 : vector<8x16xf32>
    %124 = vector.extract_strided_slice %91 {offsets = [0, 32], sizes = [16, 32], strides = [1, 1]} : vector<16x128xf32> to vector<16x32xf32>
    %cst_44 = arith.constant dense<0.000000e+00> : vector<8x32xf32>
    %125 = tpu.matmul %123, %124, %cst_44 {dimension_numbers = #tpu.dot_dimension_numbers<[1], [0], [0], [1], [0, 0, 1, 1], [], []>} : vector<8x16xf32>, vector<16x32xf32>, vector<8x32xf32> -> vector<8x32xf32>
    %126 = vector.extract_strided_slice %53 {offsets = [0, 64], sizes = [8, 32], strides = [1, 1]} : vector<8x128xf32> to vector<8x32xf32>
    %127 = vector.extract_strided_slice %89 {offsets = [0, 64], sizes = [16, 32], strides = [1, 1]} : vector<16x128xf32> to vector<16x32xf32>
    %cst_45 = arith.constant dense<0.000000e+00> : vector<8x16xf32>
    %128 = tpu.matmul %126, %127, %cst_45 {dimension_numbers = #tpu.dot_dimension_numbers<[1], [1], [0], [0], [0, 0, 1, 0], [], []>} : vector<8x32xf32>, vector<16x32xf32>, vector<8x16xf32> -> vector<8x16xf32>
    %cst_46 = arith.constant 0.176776692 : f32
    %129 = vector.broadcast %cst_46 : f32 to vector<8x16xf32>
    %130 = arith.mulf %128, %129 : vector<8x16xf32>
    %cst_47 = arith.constant dense<0xFF800000> : vector<8xf32>
    %131 = vector.multi_reduction <maximumf>, %130, %cst_47 [1] : vector<8x16xf32> to vector<8xf32>
    %132 = vector.shape_cast %131 : vector<8xf32> to vector<8x1xf32>
    %133 = vector.broadcast %132 : vector<8x1xf32> to vector<8x16xf32>
    %134 = arith.subf %130, %133 : vector<8x16xf32>
    %135 = math.exp %134 : vector<8x16xf32>
    %cst_48 = arith.constant dense<0.000000e+00> : vector<8xf32>
    %136 = vector.multi_reduction <add>, %135, %cst_48 [1] : vector<8x16xf32> to vector<8xf32>
    %137 = vector.shape_cast %136 : vector<8xf32> to vector<8x1xf32>
    %138 = tpu.reciprocal %137 {approx = true} : vector<8x1xf32> -> vector<8x1xf32>
    %139 = vector.broadcast %138 : vector<8x1xf32> to vector<8x16xf32>
    %140 = arith.mulf %135, %139 : vector<8x16xf32>
    %141 = vector.extract_strided_slice %91 {offsets = [0, 64], sizes = [16, 32], strides = [1, 1]} : vector<16x128xf32> to vector<16x32xf32>
    %cst_49 = arith.constant dense<0.000000e+00> : vector<8x32xf32>
    %142 = tpu.matmul %140, %141, %cst_49 {dimension_numbers = #tpu.dot_dimension_numbers<[1], [0], [0], [1], [0, 0, 1, 1], [], []>} : vector<8x16xf32>, vector<16x32xf32>, vector<8x32xf32> -> vector<8x32xf32>
    %143 = vector.extract_strided_slice %53 {offsets = [0, 96], sizes = [8, 32], strides = [1, 1]} : vector<8x128xf32> to vector<8x32xf32>
    %144 = vector.extract_strided_slice %89 {offsets = [0, 96], sizes = [16, 32], strides = [1, 1]} : vector<16x128xf32> to vector<16x32xf32>
    %cst_50 = arith.constant dense<0.000000e+00> : vector<8x16xf32>
    %145 = tpu.matmul %143, %144, %cst_50 {dimension_numbers = #tpu.dot_dimension_numbers<[1], [1], [0], [0], [0, 0, 1, 0], [], []>} : vector<8x32xf32>, vector<16x32xf32>, vector<8x16xf32> -> vector<8x16xf32>
    %cst_51 = arith.constant 0.176776692 : f32
    %146 = vector.broadcast %cst_51 : f32 to vector<8x16xf32>
    %147 = arith.mulf %145, %146 : vector<8x16xf32>
    %cst_52 = arith.constant dense<0xFF800000> : vector<8xf32>
    %148 = vector.multi_reduction <maximumf>, %147, %cst_52 [1] : vector<8x16xf32> to vector<8xf32>
    %149 = vector.shape_cast %148 : vector<8xf32> to vector<8x1xf32>
    %150 = vector.broadcast %149 : vector<8x1xf32> to vector<8x16xf32>
    %151 = arith.subf %147, %150 : vector<8x16xf32>
    %152 = math.exp %151 : vector<8x16xf32>
    %cst_53 = arith.constant dense<0.000000e+00> : vector<8xf32>
    %153 = vector.multi_reduction <add>, %152, %cst_53 [1] : vector<8x16xf32> to vector<8xf32>
    %154 = vector.shape_cast %153 : vector<8xf32> to vector<8x1xf32>
    %155 = tpu.reciprocal %154 {approx = true} : vector<8x1xf32> -> vector<8x1xf32>
    %156 = vector.broadcast %155 : vector<8x1xf32> to vector<8x16xf32>
    %157 = arith.mulf %152, %156 : vector<8x16xf32>
    %158 = vector.extract_strided_slice %91 {offsets = [0, 96], sizes = [16, 32], strides = [1, 1]} : vector<16x128xf32> to vector<16x32xf32>
    %cst_54 = arith.constant dense<0.000000e+00> : vector<8x32xf32>
    %159 = tpu.matmul %157, %158, %cst_54 {dimension_numbers = #tpu.dot_dimension_numbers<[1], [0], [0], [1], [0, 0, 1, 1], [], []>} : vector<8x16xf32>, vector<16x32xf32>, vector<8x32xf32> -> vector<8x32xf32>
    %160 = tpu.concatenate %108, %125, %142, %159 in 1 : vector<8x32xf32>, vector<8x32xf32>, vector<8x32xf32>, vector<8x32xf32> -> vector<8x128xf32>
    %161 = arith.truncf %160 : vector<8x128xf32> to vector<8x128xbf16>
    %c0_55 = arith.constant 0 : index
    %c0_56 = arith.constant 0 : index
    %162 = vector.load %arg10[%c0_55, %c0_56] : memref<128x128xbf16, #tpu.memory_space<vmem>>, vector<128x128xbf16>
    %cst_57 = arith.constant dense<0.000000e+00> : vector<8x128xf32>
    %163 = tpu.matmul %161, %162, %cst_57 {dimension_numbers = #tpu.dot_dimension_numbers<[1], [0], [0], [1], [0, 0, 1, 1], [], []>} : vector<8x128xbf16>, vector<128x128xbf16>, vector<8x128xf32> -> vector<8x128xf32>
    %c0_58 = arith.constant 0 : index
    %c0_59 = arith.constant 0 : index
    %164 = vector.load %arg11[%c0_58, %c0_59] : memref<1x128xf32, #tpu.memory_space<vmem>>, vector<1x128xf32>
    %165 = vector.broadcast %164 : vector<1x128xf32> to vector<8x128xf32>
    %166 = arith.addf %163, %165 : vector<8x128xf32>
    %167 = vector.broadcast %19 : vector<1x128xf32> to vector<8x128xf32>
    %168 = arith.mulf %167, %166 : vector<8x128xf32>
    %169 = arith.addf %1, %168 : vector<8x128xf32>
    %cst_60 = arith.constant dense<0.000000e+00> : vector<8xf32>
    %170 = vector.multi_reduction <add>, %169, %cst_60 [1] : vector<8x128xf32> to vector<8xf32>
    %171 = vector.shape_cast %170 : vector<8xf32> to vector<8x1xf32>
    %cst_61 = arith.constant 1.280000e+02 : f32
    %172 = vector.broadcast %cst_61 : f32 to vector<8x1xf32>
    %173 = arith.divf %171, %172 : vector<8x1xf32>
    %174 = vector.broadcast %173 : vector<8x1xf32> to vector<8x128xf32>
    %175 = arith.subf %169, %174 : vector<8x128xf32>
    %176 = arith.mulf %175, %175 : vector<8x128xf32>
    %cst_62 = arith.constant dense<0.000000e+00> : vector<8xf32>
    %177 = vector.multi_reduction <add>, %176, %cst_62 [1] : vector<8x128xf32> to vector<8xf32>
    %178 = vector.shape_cast %177 : vector<8xf32> to vector<8x1xf32>
    %cst_63 = arith.constant 1.280000e+02 : f32
    %179 = vector.broadcast %cst_63 : f32 to vector<8x1xf32>
    %180 = arith.divf %178, %179 : vector<8x1xf32>
    %181 = vector.broadcast %173 : vector<8x1xf32> to vector<8x128xf32>
    %182 = arith.subf %169, %181 : vector<8x128xf32>
    %cst_64 = arith.constant 9.99999997E-7 : f32
    %183 = vector.broadcast %cst_64 : f32 to vector<8x1xf32>
    %184 = arith.addf %180, %183 : vector<8x1xf32>
    %185 = math.rsqrt %184 : vector<8x1xf32>
    %186 = vector.broadcast %185 : vector<8x1xf32> to vector<8x128xf32>
    %187 = arith.mulf %182, %186 : vector<8x128xf32>
    %cst_65 = arith.constant 1.000000e+00 : f32
    %188 = vector.broadcast %cst_65 : f32 to vector<1x128xf32>
    %189 = arith.addf %188, %21 : vector<1x128xf32>
    %190 = vector.broadcast %189 : vector<1x128xf32> to vector<8x128xf32>
    %191 = arith.mulf %187, %190 : vector<8x128xf32>
    %192 = vector.broadcast %20 : vector<1x128xf32> to vector<8x128xf32>
    %193 = arith.addf %191, %192 : vector<8x128xf32>
    %194 = arith.truncf %193 : vector<8x128xf32> to vector<8x128xbf16>
    %c0_66 = arith.constant 0 : index
    %c0_67 = arith.constant 0 : index
    %195 = vector.load %arg12[%c0_66, %c0_67] : memref<128x512xbf16, #tpu.memory_space<vmem>>, vector<128x512xbf16>
    %cst_68 = arith.constant dense<0.000000e+00> : vector<8x512xf32>
    %196 = tpu.matmul %194, %195, %cst_68 {dimension_numbers = #tpu.dot_dimension_numbers<[1], [0], [0], [1], [0, 0, 1, 1], [], []>} : vector<8x128xbf16>, vector<128x512xbf16>, vector<8x512xf32> -> vector<8x512xf32>
    %c0_69 = arith.constant 0 : index
    %c0_70 = arith.constant 0 : index
    %197 = vector.load %arg13[%c0_69, %c0_70] : memref<1x512xf32, #tpu.memory_space<vmem>>, vector<1x512xf32>
    %198 = vector.broadcast %197 : vector<1x512xf32> to vector<8x512xf32>
    %199 = arith.addf %196, %198 : vector<8x512xf32>
    %cst_71 = arith.constant 5.000000e-01 : f32
    %200 = vector.broadcast %cst_71 : f32 to vector<8x512xf32>
    %201 = arith.mulf %200, %199 : vector<8x512xf32>
    %cst_72 = arith.constant 4.471500e-02 : f32
    %202 = vector.broadcast %cst_72 : f32 to vector<8x512xf32>
    %203 = arith.mulf %202, %199 : vector<8x512xf32>
    %204 = arith.mulf %203, %199 : vector<8x512xf32>
    %205 = arith.mulf %204, %199 : vector<8x512xf32>
    %206 = arith.addf %199, %205 : vector<8x512xf32>
    %cst_73 = arith.constant 0.797884583 : f32
    %207 = vector.broadcast %cst_73 : f32 to vector<8x512xf32>
    %208 = arith.mulf %207, %206 : vector<8x512xf32>
    %209 = math.tanh %208 : vector<8x512xf32>
    %cst_74 = arith.constant 1.000000e+00 : f32
    %210 = vector.broadcast %cst_74 : f32 to vector<8x512xf32>
    %211 = arith.addf %210, %209 : vector<8x512xf32>
    %212 = arith.mulf %201, %211 : vector<8x512xf32>
    %213 = arith.truncf %212 : vector<8x512xf32> to vector<8x512xbf16>
    %c0_75 = arith.constant 0 : index
    %c0_76 = arith.constant 0 : index
    %214 = vector.load %arg14[%c0_75, %c0_76] : memref<512x128xbf16, #tpu.memory_space<vmem>>, vector<512x128xbf16>
    %cst_77 = arith.constant dense<0.000000e+00> : vector<8x128xf32>
    %215 = tpu.matmul %213, %214, %cst_77 {dimension_numbers = #tpu.dot_dimension_numbers<[1], [0], [0], [1], [0, 0, 1, 1], [], []>} : vector<8x512xbf16>, vector<512x128xbf16>, vector<8x128xf32> -> vector<8x128xf32>
    %c0_78 = arith.constant 0 : index
    %c0_79 = arith.constant 0 : index
    %216 = vector.load %arg15[%c0_78, %c0_79] : memref<1x128xf32, #tpu.memory_space<vmem>>, vector<1x128xf32>
    %217 = vector.broadcast %216 : vector<1x128xf32> to vector<8x128xf32>
    %218 = arith.addf %215, %217 : vector<8x128xf32>
    %219 = vector.broadcast %22 : vector<1x128xf32> to vector<8x128xf32>
    %220 = arith.mulf %219, %218 : vector<8x128xf32>
    %221 = arith.addf %169, %220 : vector<8x128xf32>
    %c0_80 = arith.constant 0 : index
    %c0_81 = arith.constant 0 : index
    %c0_82 = arith.constant 0 : index
    %222 = vector.load %arg16[%c0_80, %c0_81, %c0_82] : memref<1x8x128xf32, #tpu.memory_space<vmem>>, vector<1x8x128xf32>
    %223 = vector.shape_cast %222 : vector<1x8x128xf32> to vector<8x128xf32>
    %224 = vector.shape_cast %221 : vector<8x128xf32> to vector<1x8x128xf32>
    tpu.vector_store %arg16[%c0_80, %c0_81, %c0_82], %224 {strides = array<i32>} : memref<1x8x128xf32, #tpu.memory_space<vmem>>, vector<1x8x128xf32>,
    return
  }
  func.func @transform_0(%arg0: i32) -> (i32, i32, i32) {
    %c0_i32 = arith.constant 0 : i32
    %c0_i32_0 = arith.constant 0 : i32
    %c0_i32_1 = arith.constant 0 : i32
    return %arg0, %c0_i32, %c0_i32_0 : i32, i32, i32
  }
  func.func @transform_1(%arg0: i32) -> (i32, i32, i32) {
    %c0_i32 = arith.constant 0 : i32
    %c0_i32_0 = arith.constant 0 : i32
    %c0_i32_1 = arith.constant 0 : i32
    return %arg0, %c0_i32, %c0_i32_0 : i32, i32, i32
  }
  func.func @transform_2(%arg0: i32) -> (i32, i32, i32) {
    %c0_i32 = arith.constant 0 : i32
    %c0_i32_0 = arith.constant 0 : i32
    %c0_i32_1 = arith.constant 0 : i32
    return %arg0, %c0_i32, %c0_i32_0 : i32, i32, i32
  }
  func.func @transform_3(%arg0: i32) -> (i32, i32) {
    %c0_i32 = arith.constant 0 : i32
    %c0_i32_0 = arith.constant 0 : i32
    %c0_i32_1 = arith.constant 0 : i32
    return %c0_i32, %c0_i32_0 : i32, i32
  }
  func.func @transform_4(%arg0: i32) -> (i32, i32) {
    %c0_i32 = arith.constant 0 : i32
    %c0_i32_0 = arith.constant 0 : i32
    %c0_i32_1 = arith.constant 0 : i32
    return %c0_i32, %c0_i32_0 : i32, i32
  }
  func.func @transform_5(%arg0: i32) -> (i32, i32) {
    %c0_i32 = arith.constant 0 : i32
    %c0_i32_0 = arith.constant 0 : i32
    %c0_i32_1 = arith.constant 0 : i32
    return %c0_i32, %c0_i32_0 : i32, i32
  }
  func.func @transform_6(%arg0: i32) -> (i32, i32) {
    %c0_i32 = arith.constant 0 : i32
    %c0_i32_0 = arith.constant 0 : i32
    %c0_i32_1 = arith.constant 0 : i32
    return %c0_i32, %c0_i32_0 : i32, i32
  }
  func.func @transform_7(%arg0: i32) -> (i32, i32) {
    %c0_i32 = arith.constant 0 : i32
    %c0_i32_0 = arith.constant 0 : i32
    %c0_i32_1 = arith.constant 0 : i32
    return %c0_i32, %c0_i32_0 : i32, i32
  }
  func.func @transform_8(%arg0: i32) -> (i32, i32) {
    %c0_i32 = arith.constant 0 : i32
    %c0_i32_0 = arith.constant 0 : i32
    %c0_i32_1 = arith.constant 0 : i32
    return %c0_i32, %c0_i32_0 : i32, i32
  }
  func.func @transform_9(%arg0: i32) -> (i32, i32) {
    %c0_i32 = arith.constant 0 : i32
    %c0_i32_0 = arith.constant 0 : i32
    %c0_i32_1 = arith.constant 0 : i32
    return %c0_i32, %c0_i32_0 : i32, i32
  }
  func.func @transform_10(%arg0: i32) -> (i32, i32) {
    %c0_i32 = arith.constant 0 : i32
    %c0_i32_0 = arith.constant 0 : i32
    %c0_i32_1 = arith.constant 0 : i32
    return %c0_i32, %c0_i32_0 : i32, i32
  }
  func.func @transform_11(%arg0: i32) -> (i32, i32) {
    %c0_i32 = arith.constant 0 : i32
    %c0_i32_0 = arith.constant 0 : i32
    %c0_i32_1 = arith.constant 0 : i32
    return %c0_i32, %c0_i32_0 : i32, i32
  }
  func.func @transform_12(%arg0: i32) -> (i32, i32) {
    %c0_i32 = arith.constant 0 : i32
    %c0_i32_0 = arith.constant 0 : i32
    %c0_i32_1 = arith.constant 0 : i32
    return %c0_i32, %c0_i32_0 : i32, i32
  }
  func.func @transform_13(%arg0: i32) -> (i32, i32) {
    %c0_i32 = arith.constant 0 : i32
    %c0_i32_0 = arith.constant 0 : i32
    %c0_i32_1 = arith.constant 0 : i32
    return %c0_i32, %c0_i32_0 : i32, i32
  }
  func.func @transform_14(%arg0: i32) -> (i32, i32) {
    %c0_i32 = arith.constant 0 : i32
    %c0_i32_0 = arith.constant 0 : i32
    %c0_i32_1 = arith.constant 0 : i32
    return %c0_i32, %c0_i32_0 : i32, i32
  }
  func.func @transform_15(%arg0: i32) -> (i32, i32, i32) {
    %c0_i32 = arith.constant 0 : i32
    %c0_i32_0 = arith.constant 0 : i32
    %c0_i32_1 = arith.constant 0 : i32
    return %arg0, %c0_i32, %c0_i32_0 : i32, i32, i32
  }
}

</mosaic_0001>

<bundles_post_ra>
// kernel: dit_forward.4
= control target key start
LH: loop header
LB: loop body
LE: loop exit
PB: predicated region body
PF: predicated region fallthrough
CT: control target
= control target key end

     0   :  { %s160_s0 = inlined_call_operand.vmem [shape: bf16[32,128], index: 0, kind: input, shape index: {}]   ;;  %s161_s1 = inlined_call_operand.vmem [shape: f32[1,128], index: 1, kind: input, shape index: {}]   ;;  %s162_s2 = inlined_call_operand.vmem [shape: f32[1,128], index: 2, kind: input, shape index: {}]   ;;  %s163_s3 = inlined_call_operand.vmem [shape: f32[32,128], index: 3, kind: output, shape index: {}]  }
   0x1   :  { %v100_v0 = vld [vmem:[%s160_s0] sm:$0xff]   ;;  %v107_v1 = vld [vmem:[%s160_s0 + $0x8] sm:$0xff]  }
   0x2   :  { %v101_v2 = vunpack.c.l.bf16 %v100_v0  ;;  %v105_v3 = vunpack.c.l.bf16 %v107_v1  ;;  %v102_v4 = vunpack.c.h.bf16 %v100_v0  ;;  %v106_v5 = vunpack.c.h.bf16 %v107_v1  ;;  %v97_v35 = vld [vmem:[%s161_s1] ss:$0 sm:$0xff] }
   0x3   :  { %v98_v37 = vld [vmem:[%s162_s2] ss:$0 sm:$0xff] }
   0x4   :  { %24 = vadd.xlane.f32.xlu0 %v101_v2  ;;  %28 = vadd.xlane.f32.xlu1 %v105_v3 }
   0x8   :  { %26 = vadd.xlane.f32.xlu0 %v102_v4  ;;  %30 = vadd.xlane.f32.xlu1 %v106_v5 }
  0x91   :  { %v25_v6 = vpop.xlane.xlu0 %24  ;;  %v29_v7 = vpop.xlane.xlu1 %28 }
  0x92   :  { %v33_v8 = vmul.f32 0.0078125, %v25_v6  ;;  %v35_v9 = vmul.f32 0.0078125, %v29_v7 }
  0x94   :  { %v37_v10 = vsub.f32 %v101_v2, %v33_v8  ;;  %v39_v11 = vsub.f32 %v105_v3, %v35_v9 }
  0x95   :  { %v27_v12 = vpop.xlane.xlu0 %26  ;;  %v31_v13 = vpop.xlane.xlu1 %30 }
  0x96   :  { %v34_v14 = vmul.f32 0.0078125, %v27_v12  ;;  %v41_v15 = vmul.f32 %v37_v10, %v37_v10  ;;  %v36_v16 = vmul.f32 0.0078125, %v31_v13  ;;  %v43_v19 = vmul.f32 %v39_v11, %v39_v11 }
  0x98   :  { %v38_v17 = vsub.f32 %v102_v4, %v34_v14  ;;  %45 = vadd.xlane.f32.xlu0 %v41_v15  ;;  %v40_v18 = vsub.f32 %v106_v5, %v36_v16 }
  0x9a   :  { %v42_v20 = vmul.f32 %v38_v17, %v38_v17  ;;  %v44_v21 = vmul.f32 %v40_v18, %v40_v18 }
  0x9c   :  { %49 = vadd.xlane.f32.xlu0 %v43_v19  ;;  %47 = vadd.xlane.f32.xlu1 %v42_v20 }
  0xa0   :  { %51 = vadd.xlane.f32.xlu1 %v44_v21 }
 0x125   :  { %v46_v22 = vpop.xlane.xlu0 %45 }
 0x126   :  { %v53_v23 = vmul.f32 0.0078125, %v46_v22 }
 0x128   :  { %v57_v24 = vadd.f32 1e-12, %v53_v23 }
 0x129   :  { %v48_v25 = vpop.xlane.xlu1 %47  ;;  %v50_v26 = vpop.xlane.xlu0 %49 }
 0x12a   :  { %108 = vrsqrt.f32 %v57_v24  ;;  %v54_v27 = vmul.f32 0.0078125, %v48_v25  ;;  %v55_v28 = vmul.f32 0.0078125, %v50_v26 }
 0x12c   :  { %v58_v29 = vadd.f32 1e-12, %v54_v27  ;;  %v59_v30 = vadd.f32 1e-12, %v55_v28 }
 0x12d   :  { %v52_v31 = vpop.xlane.xlu1 %51 }
 0x12e   :  { %110 = vrsqrt.f32 %v58_v29  ;;  %v56_v32 = vmul.f32 0.0078125, %v52_v31 }
 0x12f   :  { %112 = vrsqrt.f32 %v59_v30 }
 0x130   :  { %v60_v33 = vadd.f32 1e-12, %v56_v32 }
 0x132   :  { %114 = vrsqrt.f32 %v60_v33 }
 0x134   :  { %v109_v34 = vpop.eup %108 }
 0x135   :  { %v65_v36 = vmul.f32 %v109_v34, %v37_v10 }
 0x137   :  { %v75_v38 = vmul.f32 %v97_v35, %v65_v36 }
 0x138   :  { %v111_v39 = vpop.eup %110 }
 0x139   :  { %v113_v40 = vpop.eup %112  ;;  %v85_v41 = vadd.f32 %v98_v37, %v75_v38  ;;  %v66_v42 = vmul.f32 %v111_v39, %v38_v17 }
 0x13a   :  { %v67_v43 = vmul.f32 %v113_v40, %v39_v11 }
 0x13b   :  { %89 = vst [vmem:[%s163_s3] sm:$0xff] %v85_v41  ;;  %v76_v44 = vmul.f32 %v97_v35, %v66_v42 }
 0x13c   :  { %v115_v45 = vpop.eup %114  ;;  %v77_v46 = vmul.f32 %v97_v35, %v67_v43 }
 0x13d   :  { %v86_v47 = vadd.f32 %v98_v37, %v76_v44  ;;  %v68_v48 = vmul.f32 %v115_v45, %v40_v18 }
 0x13e   :  { %v87_v49 = vadd.f32 %v98_v37, %v77_v46 }
 0x13f   :  { %90 = vst [vmem:[%s163_s3 + $0x8] sm:$0xff] %v86_v47  ;;  %v78_v50 = vmul.f32 %v97_v35, %v68_v48 }
 0x140   :  { %91 = vst [vmem:[%s163_s3 + $0x10] sm:$0xff] %v87_v49 }
 0x141   :  { %v88_v51 = vadd.f32 %v98_v37, %v78_v50 }
 0x143   :  { %92 = vst [vmem:[%s163_s3 + $0x18] sm:$0xff] %v88_v51 }

// kernel: dit_forward.7
= control target key start
LH: loop header
LB: loop body
LE: loop exit
PB: predicated region body
PF: predicated region fallthrough
CT: control target
= control target key end

     0   :  { %s763_s0 = inlined_call_operand.vmem [shape: f32[32,128], index: 0, kind: input, shape index: {}]   ;;  %s764_s1 = inlined_call_operand.vmem [shape: f32[1,128], index: 1, kind: input, shape index: {}]   ;;  %s765_s2 = inlined_call_operand.vmem [shape: f32[1,128], index: 2, kind: input, shape index: {}]   ;;  %s766_s3 = inlined_call_operand.vmem [shape: bf16[128,128], index: 3, kind: input, shape index: {}]   ;;  %s767_s4 = inlined_call_operand.vmem [shape: f32[1,128], index: 4, kind: input, shape index: {}]   ;;  %s768_s5 = inlined_call_operand.vmem [shape: f32[1,128], index: 5, kind: input, shape index: {}]   ;;  %s769_s6 = inlined_call_operand.vmem [shape: f32[1,128], index: 6, kind: input, shape index: {}]   ;;  %s770_s7 = inlined_call_operand.vmem [shape: bf16[128,128], index: 7, kind: input, shape index: {}]   ;;  %s771_s8 = inlined_call_operand.vmem [shape: f32[1,128], index: 8, kind: input, shape index: {}]   ;;  %s772_s9 = inlined_call_operand.hbm [shape: f32[32,128], index: 9, kind: output, shape index: {}]  }
   0x1   :  { %v34_v0 = vld [vmem:[%s763_s0] sm:$0xff]  ;;  %v36_v1 = vld [vmem:[%s763_s0 + $0x10] sm:$0xff]  ;;  %v35_v2 = vld [vmem:[%s763_s0 + $0x8] sm:$0xff] }
   0x2   :  { %40 = vadd.xlane.f32.xlu0 %v34_v0  ;;  %44 = vadd.xlane.f32.xlu1 %v36_v1  ;;  %v37_v3 = vld [vmem:[%s763_s0 + $0x18] sm:$0xff] }
   0x6   :  { %42 = vadd.xlane.f32.xlu0 %v35_v2  ;;  %46 = vadd.xlane.f32.xlu1 %v37_v3 }
   0x7   :  { %14 = vsyncpa [#allocation3], 0  ;;  %v556_v4 = vld [vmem:[%s766_s3] sm:$0xff]   ;;  %v557_v21 = vld [vmem:[%s766_s3 + $0x8] sm:$0xff]  }
   0x8   :  { %513 = vmatprep.subr.bf16.mxu0 %v556_v4  ;;  %v558_v22 = vld [vmem:[%s766_s3 + $0x10] sm:$0xff]   ;;  %v559_v23 = vld [vmem:[%s766_s3 + $0x18] sm:$0xff]   ;;  %v560_v24 = vld [vmem:[%s766_s3 + $0x20] sm:$0xff]  }
   0x9   :  { %514 = vmatpush3.bf16.msra.mxu0 %v556_v4  ;;  %v561_v25 = vld [vmem:[%s766_s3 + $0x28] sm:$0xff]   ;;  %v562_v26 = vld [vmem:[%s766_s3 + $0x30] sm:$0xff]   ;;  %v563_v27 = vld [vmem:[%s766_s3 + $0x38] sm:$0xff]  }
   0xa   :  { %515 = vmatprep.subr.bf16.mxu0 %v557_v21  ;;  %v471_v42 = vld [vmem:[%s764_s1] ss:$0 sm:$0xff] }
   0xb   :  { %v472_v47 = vld [vmem:[%s765_s2] ss:$0 sm:$0xff] }
   0xc   :  { %v473_v60 = vld [vmem:[%s767_s4] ss:$0 sm:$0xff] }
   0xd   :  { %516 = vmatpush3.bf16.msra.mxu0 %v557_v21 }
   0xe   :  { %517 = vmatprep.subr.bf16.mxu0 %v558_v22 }
  0x11   :  { %518 = vmatpush3.bf16.msra.mxu0 %v558_v22 }
  0x12   :  { %519 = vmatprep.subr.bf16.mxu0 %v559_v23 }
  0x15   :  { %520 = vmatpush3.bf16.msra.mxu0 %v559_v23 }
  0x16   :  { %521 = vmatprep.subr.bf16.mxu0 %v560_v24 }
  0x19   :  { %522 = vmatpush3.bf16.msra.mxu0 %v560_v24 }
  0x1a   :  { %523 = vmatprep.subr.bf16.mxu0 %v561_v25 }
  0x1d   :  { %524 = vmatpush3.bf16.msra.mxu0 %v561_v25 }
  0x1e   :  { %525 = vmatprep.subr.bf16.mxu0 %v562_v26 }
  0x21   :  { %526 = vmatpush3.bf16.msra.mxu0 %v562_v26 }
  0x22   :  { %527 = vmatprep.subr.bf16.mxu0 %v563_v27 }
  0x25   :  { %528 = vmatpush3.bf16.msra.mxu0 %v563_v27 }
  0x8f   :  { %v41_v5 = vpop.xlane.xlu0 %40  ;;  %v45_v6 = vpop.xlane.xlu1 %44 }
  0x90   :  { %v49_v7 = vmul.f32 0.0078125, %v41_v5  ;;  %v51_v8 = vmul.f32 0.0078125, %v45_v6 }
  0x92   :  { %v53_v9 = vsub.f32 %v34_v0, %v49_v7  ;;  %v55_v10 = vsub.f32 %v36_v1, %v51_v8 }
  0x93   :  { %v43_v11 = vpop.xlane.xlu0 %42  ;;  %v47_v12 = vpop.xlane.xlu1 %46 }
  0x94   :  { %v50_v13 = vmul.f32 0.0078125, %v43_v11  ;;  %v57_v14 = vmul.f32 %v53_v9, %v53_v9  ;;  %v52_v15 = vmul.f32 0.0078125, %v47_v12  ;;  %v59_v18 = vmul.f32 %v55_v10, %v55_v10 }
  0x96   :  { %v54_v16 = vsub.f32 %v35_v2, %v50_v13  ;;  %61 = vadd.xlane.f32.xlu0 %v57_v14  ;;  %v56_v17 = vsub.f32 %v37_v3, %v52_v15 }
  0x98   :  { %v58_v19 = vmul.f32 %v54_v16, %v54_v16  ;;  %v60_v20 = vmul.f32 %v56_v17, %v56_v17 }
  0x9a   :  { %65 = vadd.xlane.f32.xlu0 %v59_v18  ;;  %63 = vadd.xlane.f32.xlu1 %v58_v19 }
  0x9e   :  { %67 = vadd.xlane.f32.xlu1 %v60_v20 }
 0x123   :  { %v62_v28 = vpop.xlane.xlu0 %61 }
 0x124   :  { %v69_v29 = vmul.f32 0.0078125, %v62_v28 }
 0x126   :  { %v73_v30 = vadd.f32 1e-05, %v69_v29 }
 0x127   :  { %v64_v31 = vpop.xlane.xlu1 %63  ;;  %v66_v32 = vpop.xlane.xlu0 %65 }
 0x128   :  { %572 = vrsqrt.f32 %v73_v30  ;;  %v70_v33 = vmul.f32 0.0078125, %v64_v31  ;;  %v71_v34 = vmul.f32 0.0078125, %v66_v32 }
 0x12a   :  { %v74_v35 = vadd.f32 1e-05, %v70_v33  ;;  %v75_v36 = vadd.f32 1e-05, %v71_v34 }
 0x12b   :  { %v68_v37 = vpop.xlane.xlu1 %67 }
 0x12c   :  { %574 = vrsqrt.f32 %v74_v35  ;;  %v72_v38 = vmul.f32 0.0078125, %v68_v37 }
 0x12d   :  { %576 = vrsqrt.f32 %v75_v36 }
 0x12e   :  { %v76_v39 = vadd.f32 1e-05, %v72_v38 }
 0x130   :  { %578 = vrsqrt.f32 %v76_v39 }
 0x132   :  { %v573_v40 = vpop.eup %572 }
 0x133   :  { %v81_v41 = vmul.f32 %v573_v40, %v53_v9 }
 0x135   :  { %v91_v46 = vmul.f32 %v471_v42, %v81_v41  ;;  %v564_v41 = vld [vmem:[%s770_s7] sm:$0xff]  }
 0x136   :  { %v575_v43 = vpop.eup %574  ;;  %533 = vmatprep.subr.bf16.mxu1 %v564_v41 }
 0x137   :  { %v577_v44 = vpop.eup %576  ;;  %v82_v45 = vmul.f32 %v575_v43, %v54_v16  ;;  %v101_v51 = vadd.f32 %v472_v47, %v91_v46  ;;  %534 = vmatpush3.bf16.xpose.msra.mxu1 %v564_v41  ;;  %v566_v43 = vld [vmem:[%s770_s7 + $0x10] sm:$0xff]  }
 0x138   :  { %v83_v48 = vmul.f32 %v577_v44, %v55_v10  ;;  %v567_v44 = vld [vmem:[%s770_s7 + $0x18] sm:$0xff]  }
 0x139   :  { %v92_v49 = vmul.f32 %v471_v42, %v82_v45  ;;  %v568_v45 = vld [vmem:[%s770_s7 + $0x20] sm:$0xff]  }
 0x13a   :  { %v579_v50 = vpop.eup %578  ;;  %v93_v54 = vmul.f32 %v471_v42, %v83_v48 }
 0x13b   :  { %v102_v52 = vadd.f32 %v472_v47, %v92_v49  ;;  %v84_v53 = vmul.f32 %v579_v50, %v56_v17 }
 0x13c   :  { %v103_v57 = vadd.f32 %v472_v47, %v93_v54 }
 0x13d   :  { %v105_v55 = vpack.c.bf16 %v102_v52, %v101_v51  ;;  %v94_v56 = vmul.f32 %v471_v42, %v84_v53  ;;  %v565_v42 = vld [vmem:[%s770_s7 + $0x8] sm:$0xff]  }
 0x13e   :  { %535 = vmatprep.subr.bf16.mxu1 %v565_v42 }
 0x13f   :  { %529 = vmatprep.mubr.bf16.mxu0 %v105_v55  ;;  %v104_v58 = vadd.f32 %v472_v47, %v94_v56  ;;  %536 = vmatpush3.bf16.xpose.msra.mxu1 %v565_v42 }
 0x140   :  { %537 = vmatprep.subr.bf16.mxu1 %v566_v43 }
 0x141   :  { %v106_v59 = vpack.c.bf16 %v104_v58, %v103_v57 }
 0x143   :  { %530 = vmatmul.mubr.bf16.vlgmr.msra.gmra.mrb[0].mxu0 %v106_v59 }
 0x147   :  { %538 = vmatpush3.bf16.xpose.msra.mxu1 %v566_v43 }
 0x148   :  { %539 = vmatprep.subr.bf16.mxu1 %v567_v44 }
 0x14f   :  { %540 = vmatpush3.bf16.xpose.msra.mxu1 %v567_v44 }
 0x150   :  { %541 = vmatprep.subr.bf16.mxu1 %v568_v45 }
 0x157   :  { %542 = vmatpush3.bf16.xpose.msra.mxu1 %v568_v45 }
 0x216   :  { %v531_v61 = vpop.f32.mrb[0].mxu0 }
 0x217   :  { %v221_v62 = vadd.f32 %v531_v61, %v473_v60  ;;  %v212_v63 = vpop.f32.mrb[1].mxu0 }
 0x218   :  { %v213_v0 = vadd.f32 %v473_v60, %v212_v63  ;;  %v532_v1 = vpop.f32.mrb[2].mxu0  ;;  %v570_v63 = vld [vmem:[%s770_s7 + $0x30] sm:$0xff]  }
 0x219   :  { %v233_v2 = vmul.f32 0.044715, %v221_v62  ;;  %v224_v3 = vadd.f32 %v532_v1, %v473_v60  ;;  %v215_v4 = vpop.f32.mrb[3].mxu0  ;;  %v229_v36 = vmul.f32 0.5, %v221_v62 }
 0x21a   :  { %v231_v5 = vmul.f32 0.044715, %v213_v0  ;;  %v216_v6 = vadd.f32 %v473_v60, %v215_v4  ;;  %v227_v28 = vmul.f32 0.5, %v213_v0 }
 0x21b   :  { %v234_v7 = vmul.f32 0.044715, %v224_v3  ;;  %v237_v8 = vmul.f32 %v233_v2, %v221_v62  ;;  %v230_v39 = vmul.f32 0.5, %v224_v3 }
 0x21c   :  { %v232_v9 = vmul.f32 0.044715, %v216_v6  ;;  %v235_v10 = vmul.f32 %v231_v5, %v213_v0  ;;  %v228_v32 = vmul.f32 0.5, %v216_v6 }
 0x21d   :  { %v241_v11 = vmul.f32 %v237_v8, %v221_v62  ;;  %v238_v12 = vmul.f32 %v234_v7, %v224_v3 }
 0x21e   :  { %v239_v13 = vmul.f32 %v235_v10, %v213_v0  ;;  %v236_v14 = vmul.f32 %v232_v9, %v216_v6 }
 0x21f   :  { %v245_v15 = vadd.f32 %v241_v11, %v221_v62  ;;  %v242_v16 = vmul.f32 %v238_v12, %v224_v3  ;;  %v569_v62 = vld [vmem:[%s770_s7 + $0x28] sm:$0xff]  }
 0x220   :  { %v243_v17 = vadd.f32 %v239_v13, %v213_v0  ;;  %v240_v18 = vmul.f32 %v236_v14, %v216_v6  ;;  %543 = vmatprep.subr.bf16.mxu1 %v569_v62  ;;  %v571_v0 = vld [vmem:[%s770_s7 + $0x38] sm:$0xff]   ;;  %v482_v14 = vld [vmem:[%s768_s5] ss:$0 sm:$0xff] }
 0x221   :  { %v249_v19 = vmul.f32 0.7978846, %v245_v15  ;;  %v246_v20 = vadd.f32 %v242_v16, %v224_v3  ;;  %544 = vmatpush3.bf16.xpose.msra.mxu1 %v569_v62 }
 0x222   :  { %v247_v21 = vmul.f32 0.7978846, %v243_v17  ;;  %v244_v22 = vadd.f32 %v240_v18, %v216_v6  ;;  %545 = vmatprep.subr.bf16.mxu1 %v570_v63 }
 0x223   :  { %580 = vtanh.f32 %v249_v19  ;;  %v250_v23 = vmul.f32 0.7978846, %v246_v20  ;;  %v483_v20 = vld [vmem:[%s769_s6] ss:$0 sm:$0xff]  ;;  %s620_s6 = smov [#allocation2]  }
 0x224   :  { %582 = vtanh.f32 %v247_v21  ;;  %v248_v24 = vmul.f32 0.7978846, %v244_v22  ;;  %s460_s3 = sshll.u32 %s620_s6, 4  ;;  %s461_s3 = int_to_ptr.vmem [resolvable:$true] %s460_s3 }
 0x225   :  { %584 = vtanh.f32 %v250_v23  ;;  %s596_s11 = scalar_lea.vmem %s461_s3, 512  ;;  %p601_p1 = scmp.lt.s32.totalorder %s461_s3, %s461_s3 }
 0x226   :  { %586 = vtanh.f32 %v248_v24  ;;  %p597_p0 = scmp.ne.s32.totalorder %s461_s3, %s596_s11  ;;  %p602_p2 = scmp.lt.s32.totalorder %s596_s11, %s596_s11 }
 0x228   :  { %p603_p3 = por %p602_p2, %p601_p1 }
 0x229   :  { %546 = vmatpush3.bf16.xpose.msra.mxu1 %v570_v63 }
 0x22a   :  { %547 = vmatprep.subr.bf16.mxu1 %v571_v0  ;;  %p604_p4 = pnand %p603_p3, %p597_p0 }
 0x22d   :  { %v581_v25 = vpop.eup %580 }
 0x22e   :  { %v583_v26 = vpop.eup %582  ;;  %v257_v34 = vadd.f32 1.0, %v581_v25 }
 0x22f   :  { %v585_v27 = vpop.eup %584  ;;  %v255_v29 = vadd.f32 1.0, %v583_v26 }
 0x230   :  { %v587_v30 = vpop.eup %586  ;;  %v258_v37 = vadd.f32 1.0, %v585_v27  ;;  %v261_v38 = vmul.f32 %v257_v34, %v229_v36 }
 0x231   :  { %v259_v31 = vmul.f32 %v255_v29, %v227_v28  ;;  %v256_v33 = vadd.f32 1.0, %v587_v30  ;;  %548 = vmatpush3.bf16.xpose.msra.mxu1 %v571_v0 }
 0x232   :  { %v262_v40 = vmul.f32 %v258_v37, %v230_v39 }
 0x233   :  { %265 = vadd.xlane.f32.xlu0 %v259_v31  ;;  %v260_v35 = vmul.f32 %v256_v33, %v228_v32  ;;  %v484_v33 = vld [vmem:[%s771_s8] ss:$0 sm:$0xff] }
 0x235   :  { %267 = vadd.xlane.f32.xlu1 %v260_v35 }
 0x237   :  { %269 = vadd.xlane.f32.xlu0 %v261_v38 }
 0x239   :  { %271 = vadd.xlane.f32.xlu1 %v262_v40 }
 0x2c0   :  { %v266_v46 = vpop.xlane.xlu0 %265 }
 0x2c1   :  { %v273_v47 = vmul.f32 0.0078125, %v266_v46 }
 0x2c2   :  { %v268_v48 = vpop.xlane.xlu1 %267 }
 0x2c3   :  { %v277_v49 = vsub.f32 %v259_v31, %v273_v47  ;;  %v274_v50 = vmul.f32 0.0078125, %v268_v48 }
 0x2c4   :  { %v270_v51 = vpop.xlane.xlu0 %269 }
 0x2c5   :  { %v278_v52 = vsub.f32 %v260_v35, %v274_v50  ;;  %v275_v53 = vmul.f32 0.0078125, %v270_v51  ;;  %v281_v54 = vmul.f32 %v277_v49, %v277_v49 }
 0x2c6   :  { %v272_v55 = vpop.xlane.xlu1 %271 }
 0x2c7   :  { %v279_v56 = vsub.f32 %v261_v38, %v275_v53  ;;  %v276_v57 = vmul.f32 0.0078125, %v272_v55  ;;  %285 = vadd.xlane.f32.xlu0 %v281_v54  ;;  %v282_v58 = vmul.f32 %v278_v52, %v278_v52 }
 0x2c9   :  { %v280_v59 = vsub.f32 %v262_v40, %v276_v57  ;;  %287 = vadd.xlane.f32.xlu1 %v282_v58  ;;  %v283_v60 = vmul.f32 %v279_v56, %v279_v56 }
 0x2cb   :  { %289 = vadd.xlane.f32.xlu0 %v283_v60  ;;  %v284_v61 = vmul.f32 %v280_v59, %v280_v59 }
 0x2cd   :  { %291 = vadd.xlane.f32.xlu1 %v284_v61 }
 0x354   :  { %v286_v1 = vpop.xlane.xlu0 %285 }
 0x355   :  { %v293_v2 = vmul.f32 0.0078125, %v286_v1 }
 0x356   :  { %v288_v3 = vpop.xlane.xlu1 %287 }
 0x357   :  { %v297_v4 = vadd.f32 1e-05, %v293_v2  ;;  %v294_v5 = vmul.f32 0.0078125, %v288_v3 }
 0x358   :  { %v290_v6 = vpop.xlane.xlu0 %289 }
 0x359   :  { %588 = vrsqrt.f32 %v297_v4  ;;  %v298_v7 = vadd.f32 1e-05, %v294_v5  ;;  %v295_v8 = vmul.f32 0.0078125, %v290_v6 }
 0x35a   :  { %v292_v9 = vpop.xlane.xlu1 %291 }
 0x35b   :  { %590 = vrsqrt.f32 %v298_v7  ;;  %v299_v10 = vadd.f32 1e-05, %v295_v8  ;;  %v296_v11 = vmul.f32 0.0078125, %v292_v9 }
 0x35d   :  { %592 = vrsqrt.f32 %v299_v10  ;;  %v300_v12 = vadd.f32 1e-05, %v296_v11 }
 0x35f   :  { %594 = vrsqrt.f32 %v300_v12 }
 0x363   :  { %v589_v13 = vpop.eup %588 }
 0x364   :  { %v305_v15 = vmul.f32 %v589_v13, %v277_v49 }
 0x365   :  { %v591_v16 = vpop.eup %590 }
 0x366   :  { %v306_v17 = vmul.f32 %v591_v16, %v278_v52  ;;  %v315_v18 = vmul.f32 %v482_v14, %v305_v15 }
 0x367   :  { %v593_v19 = vpop.eup %592 }
 0x368   :  { %v316_v21 = vmul.f32 %v482_v14, %v306_v17  ;;  %v307_v22 = vmul.f32 %v593_v19, %v279_v56  ;;  %v325_v24 = vadd.f32 %v483_v20, %v315_v18 }
 0x369   :  { %v595_v23 = vpop.eup %594 }
 0x36a   :  { %v326_v25 = vadd.f32 %v483_v20, %v316_v21  ;;  %v308_v26 = vmul.f32 %v595_v23, %v280_v59  ;;  %v317_v27 = vmul.f32 %v482_v14, %v307_v22 }
 0x36c   :  { %v329_v28 = vpack.c.bf16 %v326_v25, %v325_v24  ;;  %v318_v29 = vmul.f32 %v482_v14, %v308_v26  ;;  %v327_v30 = vadd.f32 %v483_v20, %v317_v27 }
 0x36e   :  { %549 = vmatprep.mubr.bf16.mxu1 %v329_v28  ;;  %v328_v31 = vadd.f32 %v483_v20, %v318_v29 }
 0x370   :  { %v330_v32 = vpack.c.bf16 %v328_v31, %v327_v30 }
 0x372   :  { %550 = vmatmul.mubr.bf16.vlgmr.msra.gmra.mrb[0].mxu1 %v330_v32 }
 0x445   :  { %v551_v34 = vpop.f32.mrb[0].mxu1 }
 0x446   :  { %v445_v35 = vadd.f32 %v551_v34, %v484_v33  ;;  %v436_v36 = vpop.f32.mrb[1].mxu1 }
 0x447   :  { %v437_v37 = vadd.f32 %v484_v33, %v436_v36  ;;  %v552_v38 = vpop.f32.mrb[2].mxu1 }
 0x448   :  { %453 = vst [vmem:[#allocation2 + $0x10] sm:$0xff] %v445_v35  ;;  %v448_v39 = vadd.f32 %v552_v38, %v484_v33  ;;  %v439_v40 = vpop.f32.mrb[3].mxu1 }
 0x449   :  { %451 = vst [vmem:[#allocation2] sm:$0xff] %v437_v37  ;;  %v440_v41 = vadd.f32 %v484_v33, %v439_v40 }
 0x44a   :  { %454 = vst [vmem:[#allocation2 + $0x18] sm:$0xff] %v448_v39 }
 0x44b   :  { %452 = vst [vmem:[#allocation2 + $0x8] sm:$0xff] %v440_v41 }
 0x44c   :  { %607 = shalt.err (!%p604_p4)
}
 0x44d   :  { %s608_s13 = scalar_lea.hbm %s772_s9, 512 }
 0x44e   :  { %p609_p5 = scmp.ne.s32.totalorder %s772_s9, %s608_s13  ;;  %p612_p6 = scmp.lt.u32.totalorder %s608_s13, %s772_s9 }
 0x450   :  { %p614_p7 = pnand %p612_p6, %p609_p5 }
 0x452   :  { %617 = shalt.err (!%p614_p7)
}
 0x453   :  { %s621_s15 = smov 128   ;;  %s622_s16 = smov 8  }
 0x454   :  { %466 = dma.vmem_to_hbm [thread:$0]  %s461_s3, 512, %s772_s9, [#allocation3], %s621_s15, %s621_s15, %s622_s16  }
 0x455   :  { %618 = dma.done.wait [#allocation3], 512  }
 0x456   :  { %619 = vsyncadd [#allocation3], 4294966784 }
 0x457   :  { %470 = vsyncpa [#allocation3], 1 }

// kernel: dit_forward.5
= control target key start
LH: loop header
LB: loop body
LE: loop exit
PB: predicated region body
PF: predicated region fallthrough
CT: control target
= control target key end

     0   :  { %17 = vsyncpa [#allocation3], 0  ;;  %s4090_s0 = inlined_call_operand.vmem [shape: f32[2,8,128], index: 0, kind: input, shape index: {}]   ;;  %s4091_s1 = inlined_call_operand.vmem [shape: f32[2,1,128], index: 1, kind: input, shape index: {}]   ;;  %s4092_s2 = inlined_call_operand.vmem [shape: bf16[128,1024], index: 2, kind: input, shape index: {}]   ;;  %s4093_s3 = inlined_call_operand.vmem [shape: f32[1,1024], index: 3, kind: input, shape index: {}]   ;;  %s4094_s4 = inlined_call_operand.hbm [shape: bf16[128,384], index: 4, kind: input, shape index: {}]   ;;  %s4095_s5 = inlined_call_operand.hbm [shape: f32[1,384], index: 5, kind: input, shape index: {}]   ;;  %s4096_s6 = inlined_call_operand.vmem [shape: bf16[128,128], index: 6, kind: input, shape index: {}]   ;;  %s4097_s7 = inlined_call_operand.vmem [shape: f32[1,128], index: 7, kind: input, shape index: {}]   ;;  %s4098_s8 = inlined_call_operand.vmem [shape: bf16[128,512], index: 8, kind: input, shape index: {}]   ;;  %s4099_s9 = inlined_call_operand.vmem [shape: f32[1,512], index: 9, kind: input, shape index: {}]   ;;  %s4100_s10 = inlined_call_operand.hbm [shape: bf16[512,128], index: 10, kind: input, shape index: {}]   ;;  %s4101_s11 = inlined_call_operand.vmem [shape: f32[1,128], index: 11, kind: input, shape index: {}]   ;;  %s4102_s12 = inlined_call_operand.vmem [shape: f32[2,8,128], index: 12, kind: output, shape index: {}]  }
   0x1   :  { %18 = vsyncpa [#allocation5], 0  ;;  %s3512_s21 = smov 0  }
   0x2 LB: > { %s3434_s22 = smov [#allocation4]   ;;  %s3518_s24 = sadd.s32 4294967295, %s3432_s21   ;;  %s3432_s21 = sphi %s3512_s21, %s24_s21  }
   0x3   : > { %s349_s23 = sshll.u32 %s3434_s22, 4  ;;  %p2802_p0 = scmp.ge.s32.totalorder %s3432_s21, 1  ;;  %s350_s23 = int_to_ptr.vmem [resolvable:$true] %s349_s23 }
   0x4   : > { %p317_p1 = scmp.lt.s32.totalorder %s3432_s21, 3  ;;  %p4103_p2 = scmp.eq.s32.totalorder %s3518_s24, 0 }
   0x5   : > { %s3435_s26 = smov [#allocation2]   ;;  %s3436_s29 = smov [#allocation6]  }
   0x6   : > { %p3523_p3 = pnand %p2802_p0, %p317_p1  ;;  %s335_s27 = sshll.u32 %s3435_s26, 4  ;;  %s3529_s27 = int_to_ptr.vmem [resolvable:$true] %s335_s27 }
   0x7   : > { %s371_s30 = sshll.u32 %s3436_s29, 4  ;;  %s3334_s15 = scalar_lea.hbm %s4095_s5, 48  ;;  %s3537_s30 = int_to_ptr.vmem [resolvable:$true] %s371_s30 }
   0x8   : > { %s4105_s25 = scalar_select %p3523_p3, 1, 0 }
   0x9   : > { %p3144_p4 = pneg %p3523_p3  ;;  %p3335_p6 = scmp.ne.s32.totalorder %s4095_s5, %s3334_s15 }
   0xa   : > { %p3341_p10 = scmp.lt.u32.totalorder %s3334_s15, %s4095_s5 }
   0xb   : > { %p3533_p5 = pnand %p4103_p2, %p3144_p4 }
   0xd   : > { %p3547_p7 = pneg %p3533_p5 }
   0xf   : > { %p3337_p8 = pnand %p3547_p7, %p3335_p6 }
  0x11   : > { %p3338_p9 = pneg %p3337_p8 }
  0x13   : > { %p3343_p11 = pnand %p3341_p10, %p3338_p9 }
  0x15   : > { %3346 = shalt.err (!%p3343_p11)
}
  0x16   : > { %s3347_s22 = scalar_lea.vmem %s350_s23, 48  ;;  %s3354_s26 = scalar_lea.vmem %s350_s23, 64 }
  0x17   : > { %p3348_p12 = scmp.ne.s32.totalorder %s350_s23, %s3347_s22  ;;  %p3355_p1 = scmp.lt.s32.totalorder %s350_s23, %s350_s23 }
  0x18   : > { %p3356_p4 = scmp.lt.s32.totalorder %s3354_s26, %s3347_s22 }
  0x19   : > { %p3350_p13 = pnand %p3348_p12, %p3547_p7 }
  0x1a   : > { %p3357_p2 = por %p3356_p4, %p3355_p1 }
  0x1b   : > { %p3351_p0 = pneg %p3350_p13 }
  0x1d   : > { %p3358_p3 = pnand %p3357_p2, %p3351_p0 }
  0x1f   : > { %3361 = shalt.err (!%p3358_p3)
}
  0x20   : > { %3150 = dma.hbm_to_vmem [thread:$0]  (!%p3533_p5), %s4095_s5, 48, %s350_s23, [#allocation5]  }
  0x21   : > { %s3362_s16 = scalar_lea.hbm %s4094_s4, 3072 }
  0x22   : > { %p3363_p6 = scmp.ne.s32.totalorder %s4094_s4, %s3362_s16  ;;  %p3369_p2 = scmp.lt.u32.totalorder %s3362_s16, %s4094_s4 }
  0x24   : > { %p3365_p8 = pnand %p3363_p6, %p3547_p7 }
  0x26   : > { %p3366_p9 = pneg %p3365_p8 }
  0x28   : > { %p3371_p3 = pnand %p3369_p2, %p3366_p9 }
  0x2a   : > { %3374 = shalt.err (!%p3371_p3)
}
  0x2b   : > { %s3375_s23 = scalar_lea.vmem %s3529_s27, 3072  ;;  %p3383_p13 = scmp.lt.s32.totalorder %s3529_s27, %s3529_s27 }
  0x2c   : > { %p3376_p10 = scmp.ne.s32.totalorder %s3529_s27, %s3375_s23  ;;  %p3384_p0 = scmp.lt.s32.totalorder %s3375_s23, %s3375_s23 }
  0x2e   : > { %p3378_p11 = pnand %p3376_p10, %p3547_p7  ;;  %p3385_p1 = por %p3384_p0, %p3383_p13 }
  0x30   : > { %p3379_p12 = pneg %p3378_p11 }
  0x32   : > { %p3386_p4 = pnand %p3385_p1, %p3379_p12 }
  0x34   : > { %3389 = shalt.err (!%p3386_p4)
}
  0x35   : > { %s3437_s26 = smov 192   ;;  %s3438_s29 = smov 12  }
  0x36   : > { %3147 = dma.hbm_to_vmem [thread:$0]  (!%p3533_p5), %s4094_s4, 3072, %s3529_s27, [#allocation3], %s3437_s26, %s3437_s26, %s3438_s29  }
  0x37   : > { %s3390_s17 = scalar_lea.hbm %s4100_s10, 4096 }
  0x38   : > { %p3391_p6 = scmp.ne.s32.totalorder %s4100_s10, %s3390_s17  ;;  %p3397_p2 = scmp.lt.u32.totalorder %s3390_s17, %s4100_s10 }
  0x3a   : > { %p3393_p8 = pnand %p3391_p6, %p3547_p7 }
  0x3c   : > { %p3394_p9 = pneg %p3393_p8 }
  0x3e   : > { %p3399_p3 = pnand %p3397_p2, %p3394_p9 }
  0x40   : > { %3402 = shalt.err (!%p3399_p3)
}
  0x41   : > { %s3403_s27 = scalar_lea.vmem %s3537_s30, 4096  ;;  %p3411_p13 = scmp.lt.s32.totalorder %s3537_s30, %s3537_s30 }
  0x42   : > { %p3404_p10 = scmp.ne.s32.totalorder %s3537_s30, %s3403_s27  ;;  %p3412_p0 = scmp.lt.s32.totalorder %s3403_s27, %s3403_s27 }
  0x44   : > { %p3406_p11 = pnand %p3404_p10, %p3547_p7  ;;  %p3413_p1 = por %p3412_p0, %p3411_p13 }
  0x46   : > { %p3407_p12 = pneg %p3406_p11 }
  0x48   : > { %p3414_p4 = pnand %p3413_p1, %p3407_p12 }
  0x4a   : > { %3417 = shalt.err (!%p3414_p4)
}
  0x4b   : > { %s3439_s26 = smov 64   ;;  %s3440_s29 = smov 4  }
  0x4c   : > { %3153 = dma.hbm_to_vmem [thread:$0]  (!%p3533_p5), %s4100_s10, 4096, %s3537_s30, [#allocation5], %s3439_s26, %s3439_s26, %s3440_s29  }
  0x4d   : > { %p4108_p6 = scmp.ne.s32.totalorder %s4105_s25, 0 }
  0x4e   : > { %p4109_p7 = scmp.eq.s32.totalorder (!%p4108_p6), %s3518_s24, 0 }
  0x4f   : > { %403 = sbr.rel (%p4108_p6) target bundleno = 4079 (0xfef), region = 68 }
  0x56   : > { %3423 = dma.done.wait (%p4109_p7), [#allocation3], 3072   ;;  %p4110_p8 = pmov %p4109_p7 }
  0x57   : > { %p4111_p9 = pmov %p4109_p7 }
  0x58   : > { %3425 = vsyncadd (%p4110_p8), [#allocation3], 4294964224 }
  0x59   : > { %3427 = dma.done.wait (%p4111_p9), [#allocation5], 4144   ;;  %p4112_p2 = pmov %p4109_p7 }
  0x5a   : > { %p454_p3 = scmp.lt.s32.totalorder %s3518_s24, 1  ;;  %v3441_v0 = vmov 0   ;;  %v476_v2 = vld [vmem:[%s4092_s2] sm:$0xff]  ;;  %v477_v34 = vld [vmem:[%s4092_s2 + $0x10] sm:$0xff]  ;;  %v478_v47 = vld [vmem:[%s4092_s2 + $0x18] sm:$0xff]  ;;  %vm3443_vm0 = vmmov 0  }
  0x5b   : > { %3429 = vsyncadd (%p4112_p2), [#allocation5], 4294963152  ;;  %828 = vmatprep.mubr.bf16.mxu0 %v3441_v0  ;;  %869 = vmatprep.mubr.bf16.mxu1 %v3441_v0  ;;  %v479_v3 = vld [vmem:[%s4092_s2 + $0x20] sm:$0xff]  ;;  %v480_v35 = vld [vmem:[%s4092_s2 + $0x30] sm:$0xff]  ;;  %vm1201_vm1 = vcmask 261120   ;;  %s3444_s19 = smov 96  }
  0x5c   : > { %s4114_s24 = smov (!%p454_p3, %s3518_s24), 1  ;;  %v2815_v4 = vcombine.high %v476_v2, %v479_v3  ;;  %v2814_v5 = vcombine.low %v476_v2, %v479_v3  ;;  %v482_v6 = vld [vmem:[%s4092_s2 + $0x40] sm:$0xff]  ;;  %v2817_v37 = vcombine.high %v477_v34, %v480_v35  ;;  %v2816_v38 = vcombine.low %v477_v34, %v480_v35  ;;  %v483_v39 = vld [vmem:[%s4092_s2 + $0x50] sm:$0xff]  ;;  %v481_v48 = vld [vmem:[%s4092_s2 + $0x38] sm:$0xff]  ;;  %s3445_s20 = smov 64  }
  0x5d   : > { %s2811_s25 = sshll.u32 %s4114_s24, 3  ;;  %v485_v7 = vld [vmem:[%s4092_s2 + $0x60] sm:$0xff]  ;;  %s460_s15 = scalar_lea.vmem %s4091_s1, %s4114_s24  ;;  %v486_v40 = vld [vmem:[%s4092_s2 + $0x70] sm:$0xff]  ;;  %v2819_v53 = vcombine.high %v478_v47, %v481_v48  ;;  %v484_v55 = vld [vmem:[%s4092_s2 + $0x58] sm:$0xff]  ;;  %v2818_v62 = vcombine.low %v478_v47, %v481_v48  ;;  %vm1279_vm2 = vcmask 64512   ;;  %vm1876_vm3 = vcmask 523264  }
  0x5e   : > { %s3631_s18 = scalar_lea.vmem %s4090_s0, %s2811_s25  ;;  %v2821_v8 = vcombine.high %v482_v6, %v485_v7  ;;  %v488_v9 = vld [vmem:[%s4092_s2 + $0x80] sm:$0xff]  ;;  %796 = vmatprep.subr.bf16.mxu0 %v2815_v4  ;;  %v2820_v11 = vcombine.low %v482_v6, %v485_v7  ;;  %v2823_v41 = vcombine.high %v483_v39, %v486_v40  ;;  %v489_v42 = vld [vmem:[%s4092_s2 + $0x90] sm:$0xff]  ;;  %837 = vmatprep.subr.bf16.mxu1 %v2817_v37  ;;  %v487_v58 = vld [vmem:[%s4092_s2 + $0x78] sm:$0xff]  ;;  %s3446_s22 = smov 32   ;;  %vm1878_vm4 = vcmask 785408  }
  0x5f   : > { %v3634_v1 = vld [vmem:[%s3631_s18] sm:$0xff]  ;;  %797 = vmatpush1.bf16.msra.mxu0 %v2814_v5  ;;  %v492_v44 = vld [vmem:[%s4092_s2 + $0xb0] sm:$0xff]  ;;  %838 = vmatpush1.bf16.msra.mxu1 %v2816_v38  ;;  %v2822_v46 = vcombine.low %v483_v39, %v486_v40  ;;  %v490_v63 = vld [vmem:[%s4092_s2 + $0x98] sm:$0xff]  ;;  %v2825_v6 = vcombine.high %v484_v55, %v487_v58  ;;  %s464_s23 = scalar_lea.vmem %s4102_s12, %s2811_s25 }
  0x60   : > { %919 = vadd.xlane.f32.xlu0 %v3634_v1  ;;  %v491_v10 = vld [vmem:[%s4092_s2 + $0xa0] sm:$0xff]  ;;  %798 = vmatprep.subr.bf16.mxu0 %v2821_v8  ;;  %v2829_v49 = vcombine.high %v489_v42, %v492_v44  ;;  %v495_v50 = vld [vmem:[%s4092_s2 + $0xd0] sm:$0xff]  ;;  %v2828_v54 = vcombine.low %v489_v42, %v492_v44  ;;  %v493_v2 = vld [vmem:[%s4092_s2 + $0xb8] sm:$0xff] }
  0x61   : > { %v2827_v12 = vcombine.high %v488_v9, %v491_v10  ;;  %v494_v13 = vld [vmem:[%s4092_s2 + $0xc0] sm:$0xff]  ;;  %v2826_v17 = vcombine.low %v488_v9, %v491_v10  ;;  %839 = vmatprep.subr.bf16.mxu1 %v2823_v41  ;;  %v498_v51 = vld [vmem:[%s4092_s2 + $0xf0] sm:$0xff]  ;;  %v2824_v9 = vcombine.low %v484_v55, %v487_v58  ;;  %v496_v10 = vld [vmem:[%s4092_s2 + $0xd8] sm:$0xff] }
  0x62   : > { %v497_v14 = vld [vmem:[%s4092_s2 + $0xe0] sm:$0xff]  ;;  %v2835_v56 = vcombine.high %v495_v50, %v498_v51  ;;  %v501_v59 = vld [vmem:[%s4092_s2 + $0x110] sm:$0xff]  ;;  %v2834_v3 = vcombine.low %v495_v50, %v498_v51  ;;  %v517_v34 = vld [vmem:[%s4092_s2 + $0x1b8] sm:$0xff]  ;;  %v3442_v50 = vmov 0.0  }
  0x63   : > { %v3665_v15 = vld [vmem:[%s460_s15] sm:$0x1]  ;;  %799 = vmatpush1.bf16.msra.mxu0 %v2820_v11  ;;  %v2833_v20 = vcombine.high %v494_v13, %v497_v14  ;;  %v2832_v21 = vcombine.low %v494_v13, %v497_v14  ;;  %840 = vmatpush1.bf16.msra.mxu1 %v2822_v46  ;;  %v504_v60 = vld [vmem:[%s4092_s2 + $0x130] sm:$0xff]  ;;  %v499_v11 = vld [vmem:[%s4092_s2 + $0xf8] sm:$0xff] }
  0x64   : > { %v2813_v16 = vmul.f32 -1.442695, %v3665_v15  ;;  %v500_v18 = vld [vmem:[%s4092_s2 + $0x100] sm:$0xff]  ;;  %800 = vmatprep.subr.bf16.mxu0 %v2827_v12  ;;  %841 = vmatprep.subr.bf16.mxu1 %v2829_v49  ;;  %v507_v4 = vld [vmem:[%s4092_s2 + $0x150] sm:$0xff]  ;;  %v2841_v7 = vcombine.high %v501_v59, %v504_v60  ;;  %v2840_v12 = vcombine.low %v501_v59, %v504_v60  ;;  %v3187_v38 = vld [vmem:[#allocation2 + $0x1c] ss:$12 sps:$4 sm:$0xff]  }
  0x65   : > { %v503_v19 = vld [vmem:[%s4092_s2 + $0x120] sm:$0xff]  ;;  %v510_v8 = vld [vmem:[%s4092_s2 + $0x170] sm:$0xff]  ;;  %v520_v40 = vld [vmem:[%s4092_s2 + $0x1d8] sm:$0xff] }
  0x66   : > { %3301 = vpow2.f32 %v2813_v16  ;;  %v506_v22 = vld [vmem:[%s4092_s2 + $0x140] sm:$0xff]  ;;  %v2839_v24 = vcombine.high %v500_v18, %v503_v19  ;;  %v2838_v25 = vcombine.low %v500_v18, %v503_v19  ;;  %v513_v13 = vld [vmem:[%s4092_s2 + $0x190] sm:$0xff]  ;;  %v2847_v16 = vcombine.high %v507_v4, %v510_v8  ;;  %v502_v18 = vld [vmem:[%s4092_s2 + $0x118] sm:$0xff] }
  0x67   : > { %801 = vmatpush1.bf16.msra.mxu0 %v2826_v17  ;;  %v509_v23 = vld [vmem:[%s4092_s2 + $0x160] sm:$0xff]  ;;  %842 = vmatpush1.bf16.msra.mxu1 %v2828_v54  ;;  %v516_v14 = vld [vmem:[%s4092_s2 + $0x1b0] sm:$0xff]  ;;  %v2830_v17 = vcombine.low %v490_v63, %v493_v2  ;;  %v505_v19 = vld [vmem:[%s4092_s2 + $0x138] sm:$0xff] }
  0x68   : > { %802 = vmatprep.subr.bf16.mxu0 %v2833_v20  ;;  %v512_v26 = vld [vmem:[%s4092_s2 + $0x180] sm:$0xff]  ;;  %v2845_v28 = vcombine.high %v506_v22, %v509_v23  ;;  %v2844_v31 = vcombine.low %v506_v22, %v509_v23  ;;  %843 = vmatprep.subr.bf16.mxu1 %v2835_v56  ;;  %v2846_v20 = vcombine.low %v507_v4, %v510_v8  ;;  %v522_v22 = vld [vmem:[%s4092_s2 + $0x1f0] sm:$0xff]  ;;  %v523_v41 = vld [vmem:[%s4092_s2 + $0x1f8] sm:$0xff] }
  0x69   : > { %v515_v27 = vld [vmem:[%s4092_s2 + $0x1a0] sm:$0xff]  ;;  %v2837_v23 = vcombine.high %v496_v10, %v499_v11  ;;  %v2861_v46 = vcombine.high %v520_v40, %v523_v41  ;;  %v3189_v47 = vld [vmem:[#allocation2 + $0x30] ss:$12 sps:$4 sm:$0xff]   ;;  %v2860_v48 = vcombine.low %v520_v40, %v523_v41  ;;  %v3184_v49 = vld [vmem:[#allocation2 + $0x8] ss:$12 sps:$4 sm:$0xff]  }
  0x6a   : > { %v2851_v32 = vcombine.high %v512_v26, %v515_v27  ;;  %v518_v33 = vld [vmem:[%s4092_s2 + $0x1c0] sm:$0xff]  ;;  %v2850_v43 = vcombine.low %v512_v26, %v515_v27  ;;  %v508_v26 = vld [vmem:[%s4092_s2 + $0x158] sm:$0xff]  ;;  %v3193_v58 = vld [vmem:[#allocation2 + $0x48] ss:$12 sps:$4 sm:$0xff]  }
  0x6b   : > { %803 = vmatpush1.bf16.msra.mxu0 %v2832_v21  ;;  %v521_v36 = vld [vmem:[%s4092_s2 + $0x1e0] sm:$0xff]  ;;  %844 = vmatpush1.bf16.msra.mxu1 %v2834_v3  ;;  %v519_v21 = vld [vmem:[%s4092_s2 + $0x1d0] sm:$0xff]  ;;  %v511_v27 = vld [vmem:[%s4092_s2 + $0x178] sm:$0xff] }
  0x6c   : > { %804 = vmatprep.subr.bf16.mxu0 %v2839_v24  ;;  %v2857_v45 = vcombine.high %v518_v33, %v521_v36  ;;  %v2856_v52 = vcombine.low %v518_v33, %v521_v36  ;;  %845 = vmatprep.subr.bf16.mxu1 %v2841_v7  ;;  %v2853_v24 = vcombine.high %v513_v13, %v516_v14  ;;  %v514_v33 = vld [vmem:[%s4092_s2 + $0x198] sm:$0xff]  ;;  %v3181_v37 = vld [vmem:[#allocation2] ss:$12 sps:$4 sm:$0xff]   ;;  %v3199_v60 = vld [vmem:[#allocation2 + $0x64] ss:$12 sps:$4 sm:$0xff]  }
  0x6d   : > { %v2858_v35 = vcombine.low %v519_v21, %v522_v22  ;;  %v2849_v36 = vcombine.high %v508_v26, %v511_v27  ;;  %v2848_v39 = vcombine.low %v508_v26, %v511_v27  ;;  %v2855_v42 = vcombine.high %v514_v33, %v517_v34  ;;  %v3191_v44 = vld [vmem:[#allocation2 + $0x34] ss:$12 sps:$4 sm:$0xff]   ;;  %v3192_v56 = vld [vmem:[#allocation2 + $0x38] ss:$12 sps:$4 sm:$0xff]   ;;  %v3196_v59 = vld [vmem:[#allocation2 + $0x50] ss:$12 sps:$4 sm:$0xff]  }
  0x6e   : > { %v3188_v51 = vld [vmem:[#allocation2 + $0x20] ss:$12 sps:$4 sm:$0xff]   ;;  %v3205_v4 = vld [vmem:[#allocation2 + $0x90] ss:$12 sps:$4 sm:$0xff]   ;;  %v3209_v7 = vld [vmem:[#allocation2 + $0xa8] ss:$12 sps:$4 sm:$0xff]  }
  0x6f   : > { %805 = vmatpush1.bf16.msra.mxu0 %v2838_v25  ;;  %846 = vmatpush1.bf16.msra.mxu1 %v2840_v12  ;;  %v2836_v25 = vcombine.low %v496_v10, %v499_v11  ;;  %v3207_v3 = vld [vmem:[#allocation2 + $0x94] ss:$12 sps:$4 sm:$0xff]   ;;  %v3212_v8 = vld [vmem:[#allocation2 + $0xb0] ss:$12 sps:$4 sm:$0xff]  }
  0x70   : > { %v3302_v29 = vpop.eup %3301  ;;  %806 = vmatprep.subr.bf16.mxu0 %v2845_v28  ;;  %847 = vmatprep.subr.bf16.mxu1 %v2847_v16  ;;  %v2852_v28 = vcombine.low %v513_v13, %v516_v14  ;;  %v766_v13 = vlaneseq }
  0x71   : > { %v471_v30 = vadd.f32 1.0, %v3302_v29  ;;  %v2843_v29 = vcombine.high %v502_v18, %v505_v19 }
  0x72   : > { %v3813_v14 = vshrl.u32 %v766_v13, 7 }
  0x73   : > { %3303 = vrcp.f32 %v471_v30  ;;  %807 = vmatpush1.bf16.msra.mxu0 %v2844_v31  ;;  %848 = vmatpush1.bf16.msra.mxu1 %v2846_v20  ;;  %v2859_v30 = vcombine.high %v519_v21, %v522_v22  ;;  %v3183_v31 = vld [vmem:[#allocation2 + $0x4] ss:$12 sps:$4 sm:$0xff]  }
  0x74   : > { %808 = vmatprep.subr.bf16.mxu0 %v2851_v32  ;;  %849 = vmatprep.subr.bf16.mxu1 %v2853_v24  ;;  %v2842_v32 = vcombine.low %v502_v18, %v505_v19  ;;  %v780_v16 = vsub.s32 5, %v3813_v14  ;;  %v784_v26 = vsub.s32 6, %v3813_v14  ;;  %v788_v27 = vsub.s32 7, %v3813_v14 }
  0x75   : > { %v3835_v41 = vsub.s32 0, %v3813_v14 }
  0x77   : > { %809 = vmatpush1.bf16.msra.mxu0 %v2850_v43  ;;  %850 = vmatpush1.bf16.msra.mxu1 %v2852_v28  ;;  %v3185_v43 = vld [vmem:[#allocation2 + $0x18] ss:$12 sps:$4 sm:$0xff]  }
  0x78   : > { %810 = vmatprep.subr.bf16.mxu0 %v2857_v45  ;;  %851 = vmatprep.subr.bf16.mxu1 %v2859_v30  ;;  %v2854_v45 = vcombine.low %v514_v33, %v517_v34 }
  0x7b   : > { %811 = vmatpush1.bf16.msra.mxu0 %v2856_v52  ;;  %852 = vmatpush1.bf16.msra.mxu1 %v2858_v35 }
  0x7c   : > { %878 = vmatprep.subr.bf16.mxu0 %v2819_v53  ;;  %1120 = vmatprep.subr.bf16.mxu1 %v3183_v31 }
  0x7d   : > { %v3304_v57 = vpop.eup %3303 }
  0x7e   : > { %v474_v61 = vmul.f32 %v3304_v57, %v3665_v15  ;;  %v2831_v15 = vcombine.high %v490_v63, %v493_v2  ;;  %v3195_v57 = vld [vmem:[#allocation2 + $0x4c] ss:$12 sps:$4 sm:$0xff]  }
  0x7f   : > { %v3201_v63 = vld [vmem:[#allocation2 + $0x78] ss:$12 sps:$4 sm:$0xff]   ;;  %v3204_v2 = vld [vmem:[#allocation2 + $0x80] ss:$12 sps:$4 sm:$0xff]  }
  0x80   : > { %v3744_v5 = vpack.c.bf16 %v474_v61, %v474_v61  ;;  %v3197_v61 = vld [vmem:[#allocation2 + $0x60] ss:$12 sps:$4 sm:$0xff]  }
  0x82   : > { %829 = vmatmul.mubr.bf16.vlgmr.msra.gmra.mrb[0].mxu0 %v3744_v5  ;;  %870 = vmatmul.mubr.bf16.vlgmr.msra.gmra.mrb[0].mxu1 %v3744_v5 }
  0x83   : > { %879 = vmatpush1.bf16.msra.mxu0 %v2818_v62  ;;  %910 = vmatprep.mubr.bf16.mxu0 %v3441_v0  ;;  %v3203_v62 = vld [vmem:[#allocation2 + $0x7c] ss:$12 sps:$4 sm:$0xff]  }
  0x84   : > { %880 = vmatprep.subr.bf16.mxu0 %v2825_v6  ;;  %1121 = vmatpush1.bf16.msra.mxu1 %v3181_v37  ;;  %v3211_v6 = vld [vmem:[#allocation2 + $0xac] ss:$12 sps:$4 sm:$0xff]  }
  0x85   : > { %1122 = vmatprep.subr.bf16.mxu1 %v3187_v38  ;;  %1152 = vmatprep.mubr.bf16.mxu1 %v3441_v0 }
  0x87   : > { %881 = vmatpush1.bf16.msra.mxu0 %v2824_v9 }
  0x88   : > { %882 = vmatprep.subr.bf16.mxu0 %v2831_v15  ;;  %1123 = vmatpush1.bf16.msra.mxu1 %v3185_v43  ;;  %v776_v15 = vsub.s32 4, %v3813_v14 }
  0x89   : > { %1124 = vmatprep.subr.bf16.mxu1 %v3191_v44 }
  0x8b   : > { %883 = vmatpush1.bf16.msra.mxu0 %v2830_v17  ;;  %v524_v17 = vld [vmem:[%s4093_s3] sm:$0xff] }
  0x8c   : > { %884 = vmatprep.subr.bf16.mxu0 %v2837_v23  ;;  %1125 = vmatpush1.bf16.msra.mxu1 %v3189_v47  ;;  %v777_v18 = vrot.slane %v524_v17, %v776_v15  ;;  %v781_v19 = vrot.slane %v524_v17, %v780_v16  ;;  %v785_v28 = vrot.slane %v524_v17, %v784_v26 }
  0x8d   : > { %1126 = vmatprep.subr.bf16.mxu1 %v3195_v57  ;;  %v769_v43 = vrot.slane %v524_v17, %v3835_v41 }
  0x8f   : > { %885 = vmatpush1.bf16.msra.mxu0 %v2836_v25 }
  0x90   : > { %886 = vmatprep.subr.bf16.mxu0 %v2843_v29  ;;  %1127 = vmatpush1.bf16.msra.mxu1 %v3193_v58  ;;  %v789_v29 = vrot.slane %v524_v17, %v788_v27 }
  0x91   : > { %1128 = vmatprep.subr.bf16.mxu1 %v3199_v60 }
  0x93   : > { %887 = vmatpush1.bf16.msra.mxu0 %v2842_v32 }
  0x94   : > { %888 = vmatprep.subr.bf16.mxu0 %v2849_v36  ;;  %1129 = vmatpush1.bf16.msra.mxu1 %v3197_v61  ;;  %v3831_v36 = vsub.s32 1, %v3813_v14 }
  0x95   : > { %1130 = vmatprep.subr.bf16.mxu1 %v3203_v62 }
  0x97   : > { %889 = vmatpush1.bf16.msra.mxu0 %v2848_v39  ;;  %v773_v39 = vrot.slane %v524_v17, %v3831_v36 }
  0x98   : > { %890 = vmatprep.subr.bf16.mxu0 %v2855_v42  ;;  %1131 = vmatpush1.bf16.msra.mxu1 %v3201_v63 }
  0x99   : > { %1132 = vmatprep.subr.bf16.mxu1 %v3207_v3 }
  0x9b   : > { %891 = vmatpush1.bf16.msra.mxu0 %v2854_v45 }
  0x9c   : > { %892 = vmatprep.subr.bf16.mxu0 %v2861_v46  ;;  %1133 = vmatpush1.bf16.msra.mxu1 %v3205_v4 }
  0x9d   : > { %1134 = vmatprep.subr.bf16.mxu1 %v3211_v6 }
  0x9f   : > { %893 = vmatpush1.bf16.msra.mxu0 %v2860_v48 }
  0xa0   : > { %3052 = vmatprep.subr.bf16.mxu0 %v3442_v50  ;;  %1135 = vmatpush1.bf16.msra.mxu1 %v3209_v7 }
  0xa1   : > { %3072 = vmatprep.subr.mxu1 %v3442_v50 }
  0xa2   : > { %911 = vmatmul.mubr.bf16.vlgmr.msra.gmra.mrb[4].mxu0 %v3744_v5  ;;  %v3208_v5 = vld [vmem:[#allocation2 + $0x98] ss:$12 sps:$4 sm:$0xff]  }
  0xa3   : > { %3053 = vmatpush3.bf16.msra.mxu0 %v3184_v49  ;;  %3068 = vmatprep.mubr.msk.bf16.mxu0 %vm3443_vm0, %v3442_v50 }
  0xa4   : > { %3054 = vmatprep.subr.bf16.mxu0 %v3442_v50 }
  0xa7   : > { %3055 = vmatpush3.bf16.msra.mxu0 %v3188_v51 }
  0xa8   : > { %3056 = vmatprep.subr.bf16.mxu0 %v3442_v50 }
  0xab   : > { %3057 = vmatpush3.bf16.msra.mxu0 %v3192_v56  ;;  %v987_v56 = vsub.s32 2, %v3813_v14 }
  0xac   : > { %3058 = vmatprep.subr.bf16.mxu0 %v3442_v50 }
  0xaf   : > { %3059 = vmatpush3.bf16.msra.mxu0 %v3196_v59 }
  0xb0   : > { %3060 = vmatprep.subr.bf16.mxu0 %v3442_v50 }
  0xed   : > { %v920_v52 = vpop.xlane.xlu0 %919 }
  0xee   : > { %v922_v53 = vmul.f32 0.0078125, %v920_v52 }
  0xf0   : > { %v3800_v54 = vsub.f32 %v3634_v1, %v922_v53  ;;  %v3200_v1 = vld [vmem:[#allocation2 + $0x68] ss:$12 sps:$4 sm:$0xff]  }
  0xf1   : > { %3061 = vmatpush3.bf16.msra.mxu0 %v3200_v1 }
  0xf2   : > { %v924_v55 = vmul.f32 %v3800_v54, %v3800_v54  ;;  %3062 = vmatprep.subr.bf16.mxu0 %v3442_v50 }
  0xf4   : > { %925 = vadd.xlane.f32.xlu0 %v924_v55  ;;  %v975_v55 = vld [vmem:[#allocation4] sm:$0x7] }
  0xf5   : > { %3063 = vmatpush3.bf16.msra.mxu0 %v3204_v2  ;;  %v984_v57 = vrot.slane %v975_v55, %v3831_v36  ;;  %v980_v59 = vrot.slane %v975_v55, %v3835_v41  ;;  %v988_v1 = vrot.slane %v975_v55, %v987_v56 }
  0xf6   : > { %3064 = vmatprep.subr.bf16.mxu0 %v3442_v50 }
  0xf9   : > { %3065 = vmatpush3.bf16.msra.mxu0 %v3208_v5 }
  0xfa   : > { %3066 = vmatprep.subr.bf16.mxu0 %v3442_v50 }
  0xfd   : > { %3067 = vmatpush3.bf16.msra.mxu0 %v3212_v8 }
  0xfe   : > { %3112 = vmatprep.subr.bf16.mxu0 %v3442_v50 }
 0x155   : > { %v830_v9 = vpop.f32.mrb[0].mxu0  ;;  %v871_v20 = vpop.f32.mrb[0].mxu1 }
 0x156   : > { %v832_v10 = vpop.f32.mrb[1].mxu0  ;;  %v3820_v21 = vadd.f32 %v871_v20, %v777_v18  ;;  %v873_v22 = vpop.f32.mrb[1].mxu1  ;;  %v831_v45 = vadd.f32 %v830_v9, %v769_v43 }
 0x157   : > { %v834_v11 = vpop.f32.mrb[2].mxu0  ;;  %v3822_v23 = vadd.f32 %v873_v22, %v781_v19  ;;  %v875_v24 = vpop.f32.mrb[2].mxu1  ;;  %v833_v42 = vadd.f32 %v832_v10, %v773_v39 }
 0x158   : > { %v835_v12 = vpop.f32.mrb[3].mxu0  ;;  %v876_v25 = vpop.f32.mrb[3].mxu1  ;;  %v940_v49 = vrot.slane %v831_v45, %v3835_v41 }
 0x159   : > { %v931_v44 = vadd.f32 1.0, %v833_v42 }
 0x15b   : > { %v935_v46 = vrot.slane %v931_v44, %v3835_v41 }
 0x175   : > { %v912_v30 = vpop.f32.mrb[4].mxu0 }
 0x176   : > { %v3826_v31 = vadd.f32 %v912_v30, %v785_v28  ;;  %v914_v32 = vpop.f32.mrb[5].mxu0 }
 0x177   : > { %v3828_v33 = vadd.f32 %v914_v32, %v789_v29  ;;  %v916_v34 = vpop.f32.mrb[6].mxu0 }
 0x178   : > { %v917_v35 = vpop.f32.mrb[7].mxu0 }
 0x181   : > { %v926_v37 = vpop.xlane.xlu0 %925 }
 0x182   : > { %v927_v38 = vmul.f32 0.0078125, %v926_v37 }
 0x184   : > { %v928_v40 = vadd.f32 1e-06, %v927_v38 }
 0x186   : > { %3305 = vrsqrt.f32 %v928_v40 }
 0x190   : > { %v3306_v47 = vpop.eup %3305 }
 0x191   : > { %v930_v48 = vmul.f32 %v3306_v47, %v3800_v54 }
 0x193   : > { %v936_v51 = vmul.f32 %v935_v46, %v930_v48 }
 0x195   : > { %v941_v52 = vadd.f32 %v940_v49, %v936_v51 }
 0x197   : > { %v942_v53 = vpack.c.bf16 %v941_v52, %v941_v52 }
 0x199   : > { %1153 = vmatmul.mubr.bf16.vlgmr.msra.gmra.mrb[4].mxu1 %v942_v53  ;;  %3069 = vmatmul.mubr.bf16.vlgmr.msra.gmra.mrb[8].mxu0 %v942_v53 }
 0x19a   : > { %3074 = vmatprep.mubr.msk.f32.mxu1 %vm3443_vm0, %v3442_v50  ;;  %3128 = vmatprep.mubr.msk.bf16.mxu0 %vm3443_vm0, %v3442_v50 }
 0x26c   : > { %v1154_v58 = vpop.f32.mrb[4].mxu1  ;;  %v1195_v54 = vpop.f32.mrb[8].mxu0 }
 0x26d   : > { %v1156_v60 = vpop.f32.mrb[5].mxu1  ;;  %v3070_v61 = vpop.f32.mrb[9].mxu0  ;;  %v3856_v5 = vadd.f32 %v1154_v58, %v980_v59  ;;  %v3859_v6 = vadd.f32 %v1195_v54, %v988_v1 }
 0x26e   : > { %v3850_v62 = vadd.f32 %v1156_v60, %v984_v57  ;;  %v1158_v63 = vpop.f32.mrb[6].mxu1  ;;  %v1198_v2 = vpop.f32.mrb[10].mxu0 }
 0x26f   : > { %v1159_v3 = vpop.f32.mrb[7].mxu1  ;;  %v3071_v4 = vpop.f32.mrb[11].mxu0 }
 0x270   : > { %1366 = vrot.lane.b32.xlu0 %v3850_v62, %s3444_s19  ;;  %3073 = vmatpush3.xpose.msk.msra.mxu1 %vm1201_vm1, %v3850_v62 }
 0x271   : > { %3077 = vmatprep.subr.mxu1 %v3442_v50 }
 0x273   : > { %3075 = vmatmul.mubr.msk.f32.vlgmr.msra.gmra.mrb[8].mxu1 %vm1201_vm1, %v3856_v5 }
 0x274   : > { %3078 = vmatpush3.msra.mxu1 %v3859_v6  ;;  %3079 = vmatprep.mubr.msk.f32.mxu1 %vm3443_vm0, %v3442_v50 }
 0x275   : > { %3082 = vmatprep.subr.mxu1 %v3442_v50 }
 0x2e2   : > { %v1367_v20 = vpop.permute.xlu0 %1366 }
 0x346   : > { %v1274_v7 = vpop.f32.mrb[8].mxu1 }
 0x347   : > { %v1278_v8 = vmul.f32 0.17677669, %v1274_v7  ;;  %v3076_v9 = vpop.f32.mrb[9].mxu1 }
 0x349   : > { %v1280_v10 = vsel %vm1279_vm2, %v1278_v8, -inf }
 0x34a   : > { %1281 = vmax.xlane.f32.xlu1 %v1280_v10 }
 0x3d7   : > { %v1282_v11 = vpop.xlane.xlu1 %1281 }
 0x3d8   : > { %v1283_v12 = vsub.f32 %v1278_v8, %v1282_v11 }
 0x3da   : > { %v1284_v13 = vmul.f32 1.442695, %v1283_v12 }
 0x3dc   : > { %3307 = vpow2.f32 %v1284_v13 }
 0x3e6   : > { %v3308_v15 = vpop.eup %3307 }
 0x3e7   : > { %v1286_v16 = vsel %vm1279_vm2, %v3308_v15, 0.0 }
 0x3e8   : > { %1287 = vadd.xlane.f32.xlu1 %v1286_v16 }
 0x3f9   : > { %1364 = vrot.lane.b32.xlu1 %v3856_v5, %s3444_s19 }
 0x475   : > { %v1288_v17 = vpop.xlane.xlu1 %1287 }
 0x476   : > { %3309 = vrcp.f32 %v1288_v17 }
 0x479   : > { %v1365_v22 = vpop.permute.xlu1 %1364 }
 0x480   : > { %v3310_v18 = vpop.eup %3309 }
 0x481   : > { %v1290_v19 = vmul.f32 %v3310_v18, %v3308_v15  ;;  %v3214_v18 = vld [vmem:[%s4096_s6 + $0x8] sm:$0xff]  }
 0x483   : > { %3080 = vmatmul.mubr.msk.f32.vlgmr.msra.gmra.mrb[10].mxu1 %vm1279_vm2, %v1290_v19  ;;  %v3215_v19 = vld [vmem:[%s4096_s6 + $0x10] sm:$0xff]  }
 0x484   : > { %3083 = vmatpush3.xpose.msk.msra.mxu1 %vm1201_vm1, %v1367_v20  ;;  %3084 = vmatprep.mubr.msk.f32.mxu1 %vm3443_vm0, %v3442_v50  ;;  %v3216_v20 = vld [vmem:[%s4096_s6 + $0x18] sm:$0xff]  }
 0x485   : > { %3087 = vmatprep.subr.mxu1 %v3442_v50 }
 0x487   : > { %3085 = vmatmul.mubr.msk.f32.vlgmr.msra.gmra.mrb[12].mxu1 %vm1201_vm1, %v1365_v22  ;;  %v3217_v22 = vld [vmem:[%s4096_s6 + $0x20] sm:$0xff]  }
 0x488   : > { %3089 = vmatprep.mubr.msk.f32.mxu1 %vm3443_vm0, %v3442_v50 }
 0x556   : > { %v3879_v24 = vpop.f32.mrb[10].mxu1 }
 0x557   : > { %v3081_v25 = vpop.f32.mrb[11].mxu1 }
 0x558   : > { %v3218_v25 = vld [vmem:[%s4096_s6 + $0x28] sm:$0xff]  }
 0x55a   : > { %v1438_v26 = vpop.f32.mrb[12].mxu1 }
 0x55b   : > { %v1442_v27 = vmul.f32 0.17677669, %v1438_v26  ;;  %v3086_v28 = vpop.f32.mrb[13].mxu1  ;;  %v3219_v26 = vld [vmem:[%s4096_s6 + $0x30] sm:$0xff]  }
 0x55d   : > { %v1443_v29 = vsel %vm1279_vm2, %v1442_v27, -inf }
 0x55e   : > { %1444 = vmax.xlane.f32.xlu1 %v1443_v29 }
 0x56f   : > { %1533 = vrot.lane.b32.xlu1 %v3850_v62, %s3445_s20 }
 0x573   : > { %1531 = vrot.lane.b32.xlu1 %v3856_v5, %s3445_s20 }
 0x5eb   : > { %v1445_v30 = vpop.xlane.xlu1 %1444 }
 0x5ec   : > { %v1446_v32 = vsub.f32 %v1442_v27, %v1445_v30  ;;  %v3220_v27 = vld [vmem:[%s4096_s6 + $0x38] sm:$0xff]  }
 0x5ee   : > { %v1447_v34 = vmul.f32 1.442695, %v1446_v32 }
 0x5ef   : > { %v1534_v42 = vpop.permute.xlu1 %1533 }
 0x5f0   : > { %3311 = vpow2.f32 %v1447_v34 }
 0x5f3   : > { %v1532_v44 = vpop.permute.xlu1 %1531 }
 0x5fa   : > { %v3312_v35 = vpop.eup %3311 }
 0x5fb   : > { %v1449_v37 = vsel %vm1279_vm2, %v3312_v35, 0.0 }
 0x5fc   : > { %1450 = vadd.xlane.f32.xlu0 %v1449_v37 }
 0x612   : > { %1455 = vrot.lane.b32.xlu0 %v3859_v6, %s3444_s19 }
 0x689   : > { %v1451_v38 = vpop.xlane.xlu0 %1450 }
 0x68a   : > { %3313 = vrcp.f32 %v1451_v38 }
 0x68d   : > { %v1456_v39 = vpop.permute.xlu0 %1455 }
 0x68e   : > { %3088 = vmatpush3.msra.mxu1 %v1456_v39  ;;  %v2898_v39 = vld [vmem:[%s4097_s7] ss:$0 sm:$0xff] }
 0x68f   : > { %3092 = vmatprep.subr.mxu1 %v3442_v50 }
 0x694   : > { %v3314_v40 = vpop.eup %3313 }
 0x695   : > { %v1453_v43 = vmul.f32 %v3314_v40, %v3312_v35 }
 0x697   : > { %3090 = vmatmul.mubr.msk.f32.vlgmr.msra.gmra.mrb[14].mxu1 %vm1279_vm2, %v1453_v43 }
 0x698   : > { %3093 = vmatpush3.xpose.msk.msra.mxu1 %vm1201_vm1, %v1534_v42  ;;  %3094 = vmatprep.mubr.msk.f32.mxu1 %vm3443_vm0, %v3442_v50  ;;  %v1995_v42 = vrot.slane %v3820_v21, %v3835_v41  ;;  %v3224_v21 = vld [vmem:[%s4098_s8 + $0x8] ss:$16 sps:$4 sm:$0xff]  }
 0x699   : > { %3097 = vmatprep.subr.mxu1 %v3442_v50 }
 0x69b   : > { %3095 = vmatmul.mubr.msk.f32.vlgmr.msra.gmra.mrb[16].mxu1 %vm1201_vm1, %v1532_v44 }
 0x69c   : > { %3099 = vmatprep.mubr.msk.f32.mxu1 %vm3443_vm0, %v3442_v50 }
 0x76a   : > { %v1527_v45 = vpop.f32.mrb[14].mxu1 }
 0x76b   : > { %v3091_v46 = vpop.f32.mrb[15].mxu1 }
 0x76e   : > { %v1605_v47 = vpop.f32.mrb[16].mxu1 }
 0x76f   : > { %v1609_v48 = vmul.f32 0.17677669, %v1605_v47  ;;  %v3096_v49 = vpop.f32.mrb[17].mxu1  ;;  %v3333_v47 = vld [vmem:[%s3631_s18] sm:$0xff] }
 0x770   : > { %v3223_v49 = vld [vmem:[%s4098_s8 + $0x4] ss:$16 sps:$4 sm:$0xff]  }
 0x771   : > { %v1610_v51 = vsel %vm1279_vm2, %v1609_v48, -inf }
 0x772   : > { %1611 = vmax.xlane.f32.xlu1 %v1610_v51  ;;  %v3226_v51 = vld [vmem:[%s4098_s8 + $0xc] ss:$16 sps:$4 sm:$0xff]  }
 0x783   : > { %1699 = vrot.lane.b32.xlu1 %v3850_v62, %s3446_s22 }
 0x787   : > { %1697 = vrot.lane.b32.xlu1 %v3856_v5, %s3446_s22 }
 0x7ff   : > { %v1612_v52 = vpop.xlane.xlu1 %1611 }
 0x800   : > { %v1613_v53 = vsub.f32 %v1609_v48, %v1612_v52  ;;  %v3229_v52 = vld [vmem:[%s4098_s8 + $0x24] ss:$16 sps:$4 sm:$0xff]  }
 0x802   : > { %v1614_v55 = vmul.f32 1.442695, %v1613_v53  ;;  %v3232_v53 = vld [vmem:[%s4098_s8 + $0x2c] ss:$16 sps:$4 sm:$0xff]  }
 0x803   : > { %v1700_v61 = vpop.permute.xlu1 %1699 }
 0x804   : > { %3315 = vpow2.f32 %v1614_v55  ;;  %v3227_v55 = vld [vmem:[%s4098_s8 + $0x20] ss:$16 sps:$4 sm:$0xff]  }
 0x807   : > { %v1698_v62 = vpop.permute.xlu1 %1697 }
 0x80e   : > { %v3316_v57 = vpop.eup %3315 }
 0x80f   : > { %v1616_v58 = vsel %vm1279_vm2, %v3316_v57, 0.0 }
 0x810   : > { %1617 = vadd.xlane.f32.xlu0 %v1616_v58  ;;  %v3235_v58 = vld [vmem:[%s4098_s8 + $0x44] ss:$16 sps:$4 sm:$0xff]  }
 0x826   : > { %1621 = vrot.lane.b32.xlu0 %v3859_v6, %s3445_s20 }
 0x89d   : > { %v1618_v54 = vpop.xlane.xlu0 %1617 }
 0x89e   : > { %3317 = vrcp.f32 %v1618_v54  ;;  %v3238_v54 = vld [vmem:[%s4098_s8 + $0x4c] ss:$16 sps:$4 sm:$0xff]  }
 0x8a1   : > { %v1622_v59 = vpop.permute.xlu0 %1621 }
 0x8a2   : > { %3098 = vmatpush3.msra.mxu1 %v1622_v59  ;;  %v3233_v59 = vld [vmem:[%s4098_s8 + $0x40] ss:$16 sps:$4 sm:$0xff]  }
 0x8a3   : > { %3102 = vmatprep.subr.mxu1 %v3442_v50 }
 0x8a8   : > { %v3318_v60 = vpop.eup %3317 }
 0x8a9   : > { %v1620_v1 = vmul.f32 %v3318_v60, %v3316_v57  ;;  %v3230_v57 = vld [vmem:[%s4098_s8 + $0x28] ss:$16 sps:$4 sm:$0xff]  }
 0x8aa   : > { %v3236_v60 = vld [vmem:[%s4098_s8 + $0x48] ss:$16 sps:$4 sm:$0xff]  }
 0x8ab   : > { %3100 = vmatmul.mubr.msk.f32.vlgmr.msra.gmra.mrb[18].mxu1 %vm1279_vm2, %v1620_v1 }
 0x8ac   : > { %3103 = vmatpush3.xpose.msk.msra.mxu1 %vm1201_vm1, %v1700_v61  ;;  %3104 = vmatprep.mubr.msk.f32.mxu1 %vm3443_vm0, %v3442_v50 }
 0x8ad   : > { %3107 = vmatprep.subr.mxu1 %v3442_v50 }
 0x8af   : > { %3105 = vmatmul.mubr.msk.f32.vlgmr.msra.gmra.mrb[20].mxu1 %vm1201_vm1, %v1698_v62 }
 0x8b0   : > { %3109 = vmatprep.mubr.msk.f32.mxu1 %vm3443_vm0, %v3442_v50 }
 0x97e   : > { %v1693_v63 = vpop.f32.mrb[18].mxu1 }
 0x97f   : > { %v3101_v2 = vpop.f32.mrb[19].mxu1 }
 0x980   : > { %v3241_v2 = vld [vmem:[%s4098_s8 + $0x64] ss:$16 sps:$4 sm:$0xff]  }
 0x982   : > { %v1771_v3 = vpop.f32.mrb[20].mxu1 }
 0x983   : > { %v1775_v4 = vmul.f32 0.17677669, %v1771_v3  ;;  %v3106_v5 = vpop.f32.mrb[21].mxu1  ;;  %v3244_v3 = vld [vmem:[%s4098_s8 + $0x6c] ss:$16 sps:$4 sm:$0xff]  }
 0x984   : > { %v3242_v5 = vld [vmem:[%s4098_s8 + $0x68] ss:$16 sps:$4 sm:$0xff]  }
 0x985   : > { %v1776_v7 = vsel %vm1279_vm2, %v1775_v4, -inf }
 0x986   : > { %1777 = vmax.xlane.f32.xlu0 %v1776_v7  ;;  %v3247_v7 = vld [vmem:[%s4098_s8 + $0x84] ss:$16 sps:$4 sm:$0xff]  }
 0x99c   : > { %1787 = vrot.lane.b32.xlu0 %v3859_v6, %s3446_s22  ;;  %v3213_v6 = vld [vmem:[%s4096_s6] sm:$0xff]  }
 0x99d   : > { %3113 = vmatpush3.bf16.msra.mxu0 %v3213_v6  ;;  %v3257_v6 = vld [vmem:[%s4098_s8 + $0xc0] ss:$16 sps:$4 sm:$0xff]  }
 0x99e   : > { %3114 = vmatprep.subr.bf16.mxu0 %v3442_v50 }
 0x9a0   : > { %1868 = vrot.lane.b32.xlu0 %v1693_v63, %s3445_s20 }
 0x9a1   : > { %3115 = vmatpush3.bf16.msra.mxu0 %v3214_v18  ;;  %v3260_v18 = vld [vmem:[%s4098_s8 + $0xc8] ss:$16 sps:$4 sm:$0xff]  }
 0x9a2   : > { %3116 = vmatprep.subr.bf16.mxu0 %v3442_v50 }
 0x9a5   : > { %3117 = vmatpush3.bf16.msra.mxu0 %v3215_v19  ;;  %v3265_v19 = vld [vmem:[%s4098_s8 + $0xe4] ss:$16 sps:$4 sm:$0xff]  }
 0x9a6   : > { %3118 = vmatprep.subr.bf16.mxu0 %v3442_v50 }
 0x9a9   : > { %3119 = vmatpush3.bf16.msra.mxu0 %v3216_v20  ;;  %v3268_v20 = vld [vmem:[%s4098_s8 + $0xec] ss:$16 sps:$4 sm:$0xff]  }
 0x9aa   : > { %3120 = vmatprep.subr.bf16.mxu0 %v3442_v50 }
 0x9ad   : > { %3121 = vmatpush3.bf16.msra.mxu0 %v3217_v22  ;;  %v3263_v22 = vld [vmem:[%s4098_s8 + $0xe0] ss:$16 sps:$4 sm:$0xff]  }
 0x9ae   : > { %3122 = vmatprep.subr.bf16.mxu0 %v3442_v50 }
 0x9b1   : > { %3123 = vmatpush3.bf16.msra.mxu0 %v3218_v25  ;;  %v3266_v25 = vld [vmem:[%s4098_s8 + $0xe8] ss:$16 sps:$4 sm:$0xff]  }
 0x9b2   : > { %3124 = vmatprep.subr.bf16.mxu0 %v3442_v50 }
 0x9b5   : > { %3125 = vmatpush3.bf16.msra.mxu0 %v3219_v26 }
 0x9b6   : > { %3126 = vmatprep.subr.bf16.mxu0 %v3442_v50 }
 0x9b9   : > { %3127 = vmatpush3.bf16.msra.mxu0 %v3220_v27 }
 0x9ba   : > { %2276 = vmatprep.subr.bf16.mxu0 %v3226_v51  ;;  %v3283_v51 = vld [vmem:[#allocation6 + $0x18] sm:$0xff]  }
 0xa13   : > { %v1778_v8 = vpop.xlane.xlu0 %1777 }
 0xa14   : > { %v1779_v9 = vsub.f32 %v1775_v4, %v1778_v8  ;;  %v3239_v4 = vld [vmem:[%s4098_s8 + $0x60] ss:$16 sps:$4 sm:$0xff]   ;;  %v3250_v8 = vld [vmem:[%s4098_s8 + $0x8c] ss:$16 sps:$4 sm:$0xff]  }
 0xa16   : > { %v1780_v10 = vmul.f32 1.442695, %v1779_v9  ;;  %v3245_v9 = vld [vmem:[%s4098_s8 + $0x80] ss:$16 sps:$4 sm:$0xff]  }
 0xa17   : > { %v1788_v11 = vpop.permute.xlu0 %1787 }
 0xa18   : > { %3319 = vpow2.f32 %v1780_v10  ;;  %3108 = vmatpush3.msra.mxu1 %v1788_v11  ;;  %v3248_v10 = vld [vmem:[%s4098_s8 + $0x88] ss:$16 sps:$4 sm:$0xff]   ;;  %v3253_v11 = vld [vmem:[%s4098_s8 + $0xa4] ss:$16 sps:$4 sm:$0xff]  }
 0xa19   : > { %2235 = vmatprep.subr.bf16.mxu1 %v3223_v49  ;;  %v3281_v49 = vld [vmem:[#allocation6 + $0x58] sm:$0xff]  }
 0xa1b   : > { %v1869_v34 = vpop.permute.xlu0 %1868 }
 0xa22   : > { %v3320_v12 = vpop.eup %3319 }
 0xa23   : > { %v1782_v13 = vsel %vm1279_vm2, %v3320_v12, 0.0 }
 0xa24   : > { %1783 = vadd.xlane.f32.xlu1 %v1782_v13  ;;  %v3251_v13 = vld [vmem:[%s4098_s8 + $0xa0] ss:$16 sps:$4 sm:$0xff]  }
 0xa35   : > { %1864 = vrot.lane.b32.xlu1 %v1527_v45, %s3446_s22 }
 0xab1   : > { %v1784_v15 = vpop.xlane.xlu1 %1783 }
 0xab2   : > { %3321 = vrcp.f32 %v1784_v15  ;;  %v3254_v15 = vld [vmem:[%s4098_s8 + $0xa8] ss:$16 sps:$4 sm:$0xff]  }
 0xab5   : > { %v1865_v30 = vpop.permute.xlu1 %1864 }
 0xab6   : > { %v1875_v32 = vsel %vm1201_vm1, %v3879_v24, %v1865_v30 }
 0xab7   : > { %v1877_v35 = vsel %vm1876_vm3, %v1875_v32, %v1869_v34 }
 0xabc   : > { %v3322_v16 = vpop.eup %3321 }
 0xabd   : > { %v1786_v17 = vmul.f32 %v3322_v16, %v3320_v12  ;;  %v3256_v12 = vld [vmem:[%s4098_s8 + $0xac] ss:$16 sps:$4 sm:$0xff]   ;;  %v3259_v16 = vld [vmem:[%s4098_s8 + $0xc4] ss:$16 sps:$4 sm:$0xff]  }
 0xabf   : > { %3110 = vmatmul.mubr.msk.f32.vlgmr.msra.gmra.mrb[22].mxu1 %vm1279_vm2, %v1786_v17  ;;  %v3262_v17 = vld [vmem:[%s4098_s8 + $0xcc] ss:$16 sps:$4 sm:$0xff]  }
 0xac0   : > { %2267 = vmatprep.mubr.bf16.mxu1 %v3441_v0 }
 0xb92   : > { %v1859_v28 = vpop.f32.mrb[22].mxu1 }
 0xb93   : > { %1872 = vrot.lane.b32.xlu1 %v1859_v28, %s3444_s19  ;;  %v3111_v29 = vpop.f32.mrb[23].mxu1 }
 0xb94   : > { %v2009_v29 = vadd.f32 1.0, %v3826_v31  ;;  %v3273_v31 = vld [vmem:[#allocation6 + $0x48] sm:$0xff]  }
 0xb96   : > { %v2013_v32 = vrot.slane %v2009_v29, %v3835_v41 }
 0xc05   : > { %v1873_v37 = vpop.permute.xlu1 %1872 }
 0xc06   : > { %v1879_v50 = vsel %vm1878_vm4, %v1877_v35, %v1873_v37  ;;  %v2018_v35 = vrot.slane %v3822_v23, %v3835_v41  ;;  %v3277_v23 = vld [vmem:[#allocation6 + $0x50] sm:$0xff]  }
 0xc07   : > { %v1880_v38 = vpack.c.bf16 %v1879_v50, %v1879_v50 }
 0xc09   : > { %3129 = vmatmul.mubr.bf16.vlgmr.msra.gmra.mrb[12].mxu0 %v1880_v38 }
 0xc0a   : > { %2308 = vmatprep.mubr.bf16.mxu0 %v3441_v0  ;;  %v3221_v0 = vld [vmem:[%s4098_s8] ss:$16 sps:$4 sm:$0xff]   ;;  %2277 = vmatpush1.bf16.msra.mxu0 %v3224_v21 }
 0xc0b   : > { %2236 = vmatpush1.bf16.msra.mxu1 %v3221_v0  ;;  %2278 = vmatprep.subr.bf16.mxu0 %v3232_v53  ;;  %v3280_v0 = vld [vmem:[#allocation6 + $0x90] sm:$0xff]   ;;  %v3282_v21 = vld [vmem:[#allocation6 + $0xd8] sm:$0xff]   ;;  %v3285_v53 = vld [vmem:[#allocation6 + $0x60] sm:$0xff]  }
 0xc0c   : > { %2237 = vmatprep.subr.bf16.mxu1 %v3229_v52  ;;  %v3284_v52 = vld [vmem:[#allocation6 + $0x98] sm:$0xff]  }
 0xc0e   : > { %2279 = vmatpush1.bf16.msra.mxu0 %v3230_v57  ;;  %v3287_v57 = vld [vmem:[#allocation6 + $0x20] sm:$0xff]  }
 0xc0f   : > { %2238 = vmatpush1.bf16.msra.mxu1 %v3227_v55  ;;  %2280 = vmatprep.subr.bf16.mxu0 %v3238_v54  ;;  %v3286_v55 = vld [vmem:[#allocation6 + $0xe0] sm:$0xff]   ;;  %v3289_v54 = vld [vmem:[#allocation6 + $0x68] sm:$0xff]  }
 0xc10   : > { %2239 = vmatprep.subr.bf16.mxu1 %v3235_v58  ;;  %v3288_v58 = vld [vmem:[#allocation6 + $0xa0] sm:$0xff]  }
 0xc12   : > { %2281 = vmatpush1.bf16.msra.mxu0 %v3236_v60  ;;  %v3291_v60 = vld [vmem:[#allocation6 + $0x28] sm:$0xff]  }
 0xc13   : > { %2240 = vmatpush1.bf16.msra.mxu1 %v3233_v59  ;;  %2282 = vmatprep.subr.bf16.mxu0 %v3244_v3  ;;  %v3290_v59 = vld [vmem:[#allocation6 + $0xe8] sm:$0xff]   ;;  %v3297_v3 = vld [vmem:[#allocation6 + $0x78] sm:$0xff]  }
 0xc14   : > { %2241 = vmatprep.subr.bf16.mxu1 %v3241_v2  ;;  %v3296_v2 = vld [vmem:[#allocation6 + $0xb0] sm:$0xff]  }
 0xc16   : > { %2283 = vmatpush1.bf16.msra.mxu0 %v3242_v5  ;;  %v3299_v5 = vld [vmem:[#allocation6 + $0x38] sm:$0xff]  }
 0xc17   : > { %2242 = vmatpush1.bf16.msra.mxu1 %v3239_v4  ;;  %2284 = vmatprep.subr.bf16.mxu0 %v3250_v8  ;;  %v3298_v4 = vld [vmem:[#allocation6 + $0xf8] sm:$0xff]  }
 0xc18   : > { %2243 = vmatprep.subr.bf16.mxu1 %v3247_v7  ;;  %v3300_v7 = vld [vmem:[#allocation6 + $0xb8] sm:$0xff]  }
 0xc19   : > { %v2053_v8 = vld [vmem:[%s4099_s9] sm:$0xf] }
 0xc1a   : > { %2285 = vmatpush1.bf16.msra.mxu0 %v3248_v10  ;;  %v2058_v10 = vrot.slane %v2053_v8, %v3835_v41 }
 0xc1b   : > { %2244 = vmatpush1.bf16.msra.mxu1 %v3245_v9  ;;  %2286 = vmatprep.subr.bf16.mxu0 %v3256_v12  ;;  %v2069_v9 = vsub.s32 3, %v3813_v14  ;;  %v2062_v12 = vrot.slane %v2053_v8, %v3831_v36 }
 0xc1c   : > { %2245 = vmatprep.subr.bf16.mxu1 %v3253_v11  ;;  %v2066_v11 = vrot.slane %v2053_v8, %v987_v56 }
 0xc1e   : > { %2287 = vmatpush1.bf16.msra.mxu0 %v3254_v15 }
 0xc1f   : > { %2246 = vmatpush1.bf16.msra.mxu1 %v3251_v13  ;;  %2288 = vmatprep.subr.bf16.mxu0 %v3262_v17  ;;  %v2070_v13 = vrot.slane %v2053_v8, %v2069_v9 }
 0xc20   : > { %2247 = vmatprep.subr.bf16.mxu1 %v3259_v16 }
 0xc22   : > { %2289 = vmatpush1.bf16.msra.mxu0 %v3260_v18 }
 0xc23   : > { %2248 = vmatpush1.bf16.msra.mxu1 %v3257_v6  ;;  %2290 = vmatprep.subr.bf16.mxu0 %v3268_v20 }
 0xc24   : > { %2249 = vmatprep.subr.bf16.mxu1 %v3265_v19 }
 0xc26   : > { %2291 = vmatpush1.bf16.msra.mxu0 %v3266_v25 }
 0xc27   : > { %2250 = vmatpush1.bf16.msra.mxu1 %v3263_v22 }
 0xcdc   : > { %v1986_v40 = vpop.f32.mrb[12].mxu0 }
 0xcdd   : > { %v1987_v24 = vadd.f32 %v2898_v39, %v1986_v40  ;;  %v3130_v43 = vpop.f32.mrb[13].mxu0  ;;  %v3269_v39 = vld [vmem:[#allocation6 + $0x40] sm:$0xff]  }
 0xcde   : > { %v1989_v44 = vpop.f32.mrb[14].mxu0  ;;  %v3270_v40 = vld [vmem:[#allocation6 + $0xc0] sm:$0xff]   ;;  %3008 = vmatprep.subr.bf16.mxu1 %v3269_v39  ;;  %v3274_v43 = vld [vmem:[#allocation6 + $0xc8] sm:$0xff]  }
 0xcdf   : > { %v1996_v45 = vmul.f32 %v1995_v42, %v1987_v24  ;;  %v3131_v46 = vpop.f32.mrb[15].mxu0  ;;  %v3271_v42 = vld [vmem:[#allocation6] sm:$0xff]   ;;  %3030 = vmatprep.subr.bf16.mxu0 %v3270_v40  ;;  %v3275_v44 = vld [vmem:[#allocation6 + $0x8] sm:$0xff]  }
 0xce0   : > { %v3272_v24 = vld [vmem:[#allocation6 + $0x80] sm:$0xff]   ;;  %v3278_v46 = vld [vmem:[#allocation6 + $0xd0] sm:$0xff]  }
 0xce1   : > { %v3964_v48 = vadd.f32 %v3333_v47, %v1996_v45  ;;  %v3276_v45 = vld [vmem:[#allocation6 + $0x88] sm:$0xff]   ;;  %v3279_v47 = vld [vmem:[#allocation6 + $0x10] sm:$0xff]  }
 0xce3   : > { %1998 = vadd.xlane.f32.xlu0 %v3964_v48 }
 0xd70   : > { %v1999_v61 = vpop.xlane.xlu0 %1998 }
 0xd71   : > { %v2000_v1 = vmul.f32 0.0078125, %v1999_v61  ;;  %v3292_v61 = vld [vmem:[#allocation6 + $0xa8] sm:$0xff]  }
 0xd73   : > { %v2001_v62 = vsub.f32 %v3964_v48, %v2000_v1  ;;  %v3293_v1 = vld [vmem:[#allocation6 + $0x70] sm:$0xff]  }
 0xd75   : > { %v2002_v63 = vmul.f32 %v2001_v62, %v2001_v62 }
 0xd77   : > { %2003 = vadd.xlane.f32.xlu1 %v2002_v63  ;;  %v3295_v63 = vld [vmem:[#allocation6 + $0x30] sm:$0xff]  }
 0xe04   : > { %v2004_v26 = vpop.xlane.xlu1 %2003 }
 0xe05   : > { %v2005_v27 = vmul.f32 0.0078125, %v2004_v26 }
 0xe07   : > { %v2006_v28 = vadd.f32 1e-06, %v2005_v27 }
 0xe09   : > { %3323 = vrsqrt.f32 %v2006_v28 }
 0xe13   : > { %v3324_v30 = vpop.eup %3323 }
 0xe14   : > { %v2008_v34 = vmul.f32 %v3324_v30, %v2001_v62  ;;  %v3294_v62 = vld [vmem:[#allocation6 + $0xf0] sm:$0xff]  }
 0xe16   : > { %v2014_v37 = vmul.f32 %v2013_v32, %v2008_v34 }
 0xe18   : > { %v2019_v50 = vadd.f32 %v2018_v35, %v2014_v37 }
 0xe1a   : > { %v2020_v38 = vpack.c.bf16 %v2019_v50, %v2019_v50 }
 0xe1c   : > { %2268 = vmatmul.mubr.bf16.vlgmr.msra.gmra.mrb[24].mxu1 %v2020_v38  ;;  %2309 = vmatmul.mubr.bf16.vlgmr.msra.gmra.mrb[16].mxu0 %v2020_v38 }
 0xe1d   : > { %3009 = vmatpush3.bf16.msra.mxu1 %v3271_v42  ;;  %3031 = vmatpush3.bf16.msra.mxu0 %v3272_v24 }
 0xe1e   : > { %3010 = vmatprep.subr.bf16.mxu1 %v3273_v31  ;;  %3032 = vmatprep.subr.bf16.mxu0 %v3274_v43 }
 0xe21   : > { %3011 = vmatpush3.bf16.msra.mxu1 %v3275_v44  ;;  %3033 = vmatpush3.bf16.msra.mxu0 %v3276_v45 }
 0xe22   : > { %3012 = vmatprep.subr.bf16.mxu1 %v3277_v23  ;;  %3034 = vmatprep.subr.bf16.mxu0 %v3278_v46 }
 0xe25   : > { %3013 = vmatpush3.bf16.msra.mxu1 %v3279_v47  ;;  %3035 = vmatpush3.bf16.msra.mxu0 %v3280_v0 }
 0xe26   : > { %3014 = vmatprep.subr.bf16.mxu1 %v3281_v49  ;;  %3036 = vmatprep.subr.bf16.mxu0 %v3282_v21 }
 0xe29   : > { %3015 = vmatpush3.bf16.msra.mxu1 %v3283_v51  ;;  %3037 = vmatpush3.bf16.msra.mxu0 %v3284_v52 }
 0xe2a   : > { %3016 = vmatprep.subr.bf16.mxu1 %v3285_v53  ;;  %3038 = vmatprep.subr.bf16.mxu0 %v3286_v55 }
 0xe2d   : > { %3017 = vmatpush3.bf16.msra.mxu1 %v3287_v57  ;;  %3039 = vmatpush3.bf16.msra.mxu0 %v3288_v58 }
 0xe2e   : > { %3018 = vmatprep.subr.bf16.mxu1 %v3289_v54  ;;  %3040 = vmatprep.subr.bf16.mxu0 %v3290_v59 }
 0xe31   : > { %3019 = vmatpush3.bf16.msra.mxu1 %v3291_v60  ;;  %3041 = vmatpush3.bf16.msra.mxu0 %v3292_v61 }
 0xe32   : > { %3020 = vmatprep.subr.bf16.mxu1 %v3293_v1  ;;  %3042 = vmatprep.subr.bf16.mxu0 %v3294_v62 }
 0xe35   : > { %3021 = vmatpush3.bf16.msra.mxu1 %v3295_v63  ;;  %3043 = vmatpush3.bf16.msra.mxu0 %v3296_v2 }
 0xe36   : > { %3022 = vmatprep.subr.bf16.mxu1 %v3297_v3  ;;  %3044 = vmatprep.subr.bf16.mxu0 %v3298_v4 }
 0xe39   : > { %3023 = vmatpush3.bf16.msra.mxu1 %v3299_v5  ;;  %3045 = vmatpush3.bf16.msra.mxu0 %v3300_v7  ;;  %v2939_v7 = vld [vmem:[%s4101_s11] ss:$0 sm:$0xff] }
 0xeef   : > { %v2269_v15 = vpop.f32.mrb[24].mxu1  ;;  %v2310_v16 = vpop.f32.mrb[16].mxu0 }
 0xef0   : > { %v2270_v17 = vadd.f32 %v2269_v15, %v2058_v10  ;;  %v2311_v6 = vadd.f32 %v2310_v16, %v2066_v11  ;;  %v2271_v18 = vpop.f32.mrb[25].mxu1  ;;  %v2312_v19 = vpop.f32.mrb[17].mxu0 }
 0xef1   : > { %v2272_v20 = vadd.f32 %v2271_v18, %v2062_v12  ;;  %v2313_v22 = vadd.f32 %v2312_v19, %v2070_v13  ;;  %v2273_v25 = vpop.f32.mrb[26].mxu1  ;;  %v2314_v26 = vpop.f32.mrb[18].mxu0 }
 0xef2   : > { %v2321_v27 = vmul.f32 0.044715, %v2270_v17  ;;  %v2323_v28 = vmul.f32 0.044715, %v2311_v6  ;;  %v2274_v29 = vpop.f32.mrb[27].mxu1  ;;  %v2315_v30 = vpop.f32.mrb[19].mxu0 }
 0xef3   : > { %v2322_v32 = vmul.f32 0.044715, %v2272_v20  ;;  %v2324_v14 = vmul.f32 0.044715, %v2313_v22  ;;  %v2317_v0 = vmul.f32 0.5, %v2270_v17  ;;  %v2318_v51 = vmul.f32 0.5, %v2272_v20 }
 0xef4   : > { %v2325_v56 = vmul.f32 %v2321_v27, %v2270_v17  ;;  %v2327_v34 = vmul.f32 %v2323_v28, %v2311_v6  ;;  %v2320_v55 = vmul.f32 0.5, %v2313_v22  ;;  %v2319_v59 = vmul.f32 0.5, %v2311_v6 }
 0xef5   : > { %v2326_v36 = vmul.f32 %v2322_v32, %v2272_v20  ;;  %v2328_v35 = vmul.f32 %v2324_v14, %v2313_v22 }
 0xef6   : > { %v2329_v37 = vmul.f32 %v2325_v56, %v2270_v17  ;;  %v2331_v50 = vmul.f32 %v2327_v34, %v2311_v6 }
 0xef7   : > { %v2330_v38 = vmul.f32 %v2326_v36, %v2272_v20  ;;  %v2332_v39 = vmul.f32 %v2328_v35, %v2313_v22 }
 0xef8   : > { %v2333_v40 = vadd.f32 %v2329_v37, %v2270_v17  ;;  %v2335_v42 = vadd.f32 %v2331_v50, %v2311_v6  ;;  %v2703_v6 = vrot.slane %v3828_v33, %v3835_v41 }
 0xef9   : > { %v2334_v24 = vadd.f32 %v2330_v38, %v2272_v20  ;;  %v2336_v31 = vadd.f32 %v2332_v39, %v2313_v22 }
 0xefa   : > { %v2337_v43 = vmul.f32 0.7978846, %v2333_v40  ;;  %v2339_v23 = vmul.f32 0.7978846, %v2335_v42 }
 0xefb   : > { %v2338_v44 = vmul.f32 0.7978846, %v2334_v24  ;;  %v2340_v45 = vmul.f32 0.7978846, %v2336_v31 }
 0xefc   : > { %3325 = vtanh.f32 %v2337_v43 }
 0xefd   : > { %3327 = vtanh.f32 %v2338_v44 }
 0xefe   : > { %3329 = vtanh.f32 %v2340_v45 }
 0xeff   : > { %3331 = vtanh.f32 %v2339_v23 }
 0xf06   : > { %v3326_v46 = vpop.eup %3325 }
 0xf07   : > { %v3328_v47 = vpop.eup %3327  ;;  %v2345_v49 = vadd.f32 1.0, %v3326_v46 }
 0xf08   : > { %v3330_v21 = vpop.eup %3329  ;;  %v2346_v52 = vadd.f32 1.0, %v3328_v47 }
 0xf09   : > { %v3332_v53 = vpop.eup %3331  ;;  %v2348_v57 = vadd.f32 1.0, %v3330_v21  ;;  %v2349_v58 = vmul.f32 %v2345_v49, %v2317_v0 }
 0xf0a   : > { %v2350_v54 = vmul.f32 %v2346_v52, %v2318_v51  ;;  %v2347_v60 = vadd.f32 1.0, %v3332_v53 }
 0xf0b   : > { %v2352_v61 = vmul.f32 %v2348_v57, %v2320_v55  ;;  %v2353_v2 = vpack.c.bf16 %v2349_v58, %v2349_v58 }
 0xf0c   : > { %v2354_v1 = vpack.c.bf16 %v2350_v54, %v2350_v54  ;;  %v2351_v62 = vmul.f32 %v2347_v60, %v2319_v59 }
 0xf0d   : > { %v2356_v63 = vpack.c.bf16 %v2352_v61, %v2352_v61 }
 0xf0e   : > { %2652 = vmatprep.mubr.bf16.mxu1 %v2354_v1  ;;  %v2355_v3 = vpack.c.bf16 %v2351_v62, %v2351_v62 }
 0xf0f   : > { %2692 = vmatprep.mubr.bf16.mxu0 %v2356_v63  ;;  %2653 = vmatmul.mubr.bf16.vlgmr.msra.gmra.mrb[28].mxu1 %v2353_v2 }
 0xf10   : > { %2693 = vmatmul.mubr.bf16.vlgmr.msra.gmra.mrb[20].mxu0 %v2355_v3 }
 0xfe2   : > { %v3024_v4 = vpop.f32.mrb[28].mxu1 }
 0xfe3   : > { %v3046_v5 = vpop.f32.mrb[20].mxu0  ;;  %v3025_v8 = vpop.f32.mrb[29].mxu1 }
 0xfe4   : > { %v3026_v9 = vadd.f32 %v3025_v8, %v3024_v4  ;;  %v3047_v10 = vpop.f32.mrb[21].mxu0  ;;  %v3027_v11 = vpop.f32.mrb[30].mxu1 }
 0xfe5   : > { %v3048_v12 = vadd.f32 %v3047_v10, %v3046_v5  ;;  %v3049_v13 = vpop.f32.mrb[22].mxu0  ;;  %v3028_v15 = vpop.f32.mrb[31].mxu1 }
 0xfe6   : > { %v2655_v16 = vadd.f32 %v3026_v9, %v2939_v7  ;;  %v3050_v17 = vpop.f32.mrb[23].mxu0 }
 0xfe8   : > { %v2695_v18 = vadd.f32 %v3048_v12, %v2655_v16 }
 0xfea   : > { %v2704_v19 = vmul.f32 %v2703_v6, %v2695_v18 }
 0xfec   : > { %v2705_v20 = vadd.f32 %v2704_v19, %v3964_v48 }
 0xfee   : > { %2706 = vst [vmem:[%s464_s23] sm:$0xff] %v2705_v20 }
 0xfef PF: > { %s24_s21 = sadd.s32 1, %s3432_s21  }
 0xff0   : > { %p21_p5 = scmp.ge.s32.totalorder %s24_s21, 4  }
 0xff2   :  { %23 = sbr.rel (!%p21_p5) target bundleno = 2 (0x2), region = 114 }
 0xff9   :  { %2726 = vsyncpa [#allocation3], 1 }
 0xffa   :  { %2728 = vsyncpa [#allocation3 + $0x1], 1 }
 0xffb   :  { %2729 = vsyncpa [#allocation5], 1 }

// kernel: dit_forward.6
= control target key start
LH: loop header
LB: loop body
LE: loop exit
PB: predicated region body
PF: predicated region fallthrough
CT: control target
= control target key end

     0   :  { %s5241_s0 = inlined_call_operand.vmem [shape: f32[2,8,128], index: 0, kind: input, shape index: {}]   ;;  %s5242_s1 = inlined_call_operand.vmem [shape: f32[2,1,128], index: 1, kind: input, shape index: {}]   ;;  %s5243_s2 = inlined_call_operand.vmem [shape: f32[2,8,128], index: 2, kind: input, shape index: {}]   ;;  %s5244_s3 = inlined_call_operand.vmem [shape: bf16[128,1024], index: 3, kind: input, shape index: {}]   ;;  %s5245_s4 = inlined_call_operand.vmem [shape: f32[1,1024], index: 4, kind: input, shape index: {}]   ;;  %s5246_s5 = inlined_call_operand.vmem [shape: bf16[128,384], index: 5, kind: input, shape index: {}]   ;;  %s5247_s6 = inlined_call_operand.hbm [shape: f32[1,384], index: 6, kind: input, shape index: {}]   ;;  %s5248_s7 = inlined_call_operand.vmem [shape: bf16[128,256], index: 7, kind: input, shape index: {}]   ;;  %s5249_s8 = inlined_call_operand.hbm [shape: f32[1,256], index: 8, kind: input, shape index: {}]   ;;  %s5250_s9 = inlined_call_operand.hbm [shape: bf16[128,128], index: 9, kind: input, shape index: {}]   ;;  %s5251_s10 = inlined_call_operand.hbm [shape: f32[1,128], index: 10, kind: input, shape index: {}]   ;;  %s5252_s11 = inlined_call_operand.vmem [shape: bf16[128,512], index: 11, kind: input, shape index: {}]   ;;  %s5253_s12 = inlined_call_operand.hbm [shape: f32[1,512], index: 12, kind: input, shape index: {}]   ;;  %s5254_s13 = inlined_call_operand.vmem [shape: bf16[512,128], index: 13, kind: input, shape index: {}]   ;;  %s5255_s14 = inlined_call_operand.hbm [shape: f32[1,128], index: 14, kind: input, shape index: {}]   ;;  %s5256_s15 = inlined_call_operand.vmem [shape: f32[2,8,128], index: 15, kind: output, shape index: {}]  }
   0x1   :  { %5261 = sst [smem:[#allocation17_spill]] %s5247_s6 }
   0x2   :  { %5262 = sst [smem:[#allocation18_spill]] %s5249_s8 }
   0x3   :  { %5263 = sst [smem:[#allocation19_spill]] %s5251_s10 }
   0x4   :  { %5264 = sst [smem:[#allocation20_spill]] %s5254_s13 }
   0x5   :  { %5265 = sst [smem:[#allocation21_spill]] %s5256_s15 }
   0x6   :  { %20 = vsyncpa [#allocation3], 0 }
   0x7   :  { %21 = vsyncpa [#allocation5], 0 }
   0x8   :  { %22 = vsyncpa [#allocation8], 0 }
   0x9   :  { %23 = vsyncpa [#allocation11], 0  ;;  %s4321_s18 = smov 0  }
   0xa LB: > { %5266 = sst [smem:[#allocation16_spill]] %s4224_s18  ;;  %s4226_s19 = smov [#allocation4]   ;;  %s4224_s18 = sphi %s4321_s18, %s29_s18  }
   0xb   : > { %s426_s20 = sshll.u32 %s4226_s19, 4  ;;  %s4327_s21 = sadd.s32 4294967295, %s4224_s18   ;;  %s4332_s20 = int_to_ptr.vmem [resolvable:$true] %s426_s20 }
   0xc   : > { %p3322_p0 = scmp.ge.s32.totalorder %s4224_s18, 1  ;;  %p390_p1 = scmp.lt.s32.totalorder %s4224_s18, 3 }
   0xd   : > { %p5259_p2 = scmp.eq.s32.totalorder %s4327_s21, 0  ;;  %s4227_s23 = smov [#allocation7]  }
   0xe   : > { %p4334_p3 = pnand %p3322_p0, %p390_p1  ;;  %s450_s24 = sshll.u32 %s4227_s23, 4  ;;  %s4340_s24 = int_to_ptr.vmem [resolvable:$true] %s450_s24 }
   0xf   : > { %s4228_s25 = smov [#allocation2]   ;;  %s4229_s28 = smov [#allocation6]  }
  0x10   : > { %s5267_s22 = scalar_select %p4334_p3, 1, 0 }
  0x11   : > { %p3771_p4 = pneg %p4334_p3  ;;  %s412_s26 = sshll.u32 %s4228_s25, 4  ;;  %s4348_s26 = int_to_ptr.vmem [resolvable:$true] %s412_s26 }
  0x12   : > { %s436_s29 = sshll.u32 %s4229_s28, 4  ;;  %s5269_s8 = sld [smem:[#allocation18_spill]]  ;;  %s4350_s29 = int_to_ptr.vmem [resolvable:$true] %s436_s29 }
  0x13   : > { %p4344_p5 = pnand %p5259_p2, %p3771_p4 }
  0x15   : > { %p4360_p7 = pneg %p4344_p5 }
  0x18   : > { %s4034_s17 = scalar_lea.hbm %s5269_s8, 32 }
  0x19   : > { %p4035_p6 = scmp.ne.s32.totalorder %s5269_s8, %s4034_s17  ;;  %p4041_p10 = scmp.lt.u32.totalorder %s4034_s17, %s5269_s8 }
  0x1b   : > { %p4037_p8 = pnand %p4360_p7, %p4035_p6 }
  0x1d   : > { %p4038_p9 = pneg %p4037_p8 }
  0x1f   : > { %p4043_p11 = pnand %p4041_p10, %p4038_p9 }
  0x21   : > { %4046 = shalt.err (!%p4043_p11)
}
  0x22   : > { %s4047_s30 = scalar_lea.vmem %s4332_s20, 32  ;;  %p4055_p1 = scmp.lt.s32.totalorder %s4332_s20, %s4332_s20 }
  0x23   : > { %p4048_p12 = scmp.ne.s32.totalorder %s4332_s20, %s4047_s30  ;;  %p4056_p4 = scmp.lt.s32.totalorder %s4047_s30, %s4047_s30 }
  0x25   : > { %p4050_p13 = pnand %p4048_p12, %p4360_p7  ;;  %p4057_p6 = por %p4056_p4, %p4055_p1 }
  0x27   : > { %p4051_p0 = pneg %p4050_p13 }
  0x29   : > { %p4058_p8 = pnand %p4057_p6, %p4051_p0 }
  0x2b   : > { %4061 = shalt.err (!%p4058_p8)
}
  0x2c   : > { %3777 = dma.hbm_to_vmem [thread:$0]  (!%p4344_p5), %s5269_s8, 32, %s4332_s20, [#allocation5]  }
  0x2d   : > { %s5271_s10 = sld [smem:[#allocation19_spill]] }
  0x33   : > { %s4062_s23 = scalar_lea.hbm %s5271_s10, 16 }
  0x34   : > { %p4063_p9 = scmp.ne.s32.totalorder %s5271_s10, %s4062_s23  ;;  %p4069_p12 = scmp.lt.u32.totalorder %s4062_s23, %s5271_s10 }
  0x36   : > { %p4065_p10 = pnand %p4063_p9, %p4360_p7 }
  0x38   : > { %p4066_p11 = pneg %p4065_p10 }
  0x3a   : > { %p4071_p13 = pnand %p4069_p12, %p4066_p11 }
  0x3c   : > { %4074 = shalt.err (!%p4071_p13)
}
  0x3d   : > { %s4075_s20 = scalar_lea.vmem %s4340_s24, 16  ;;  %s4082_s15 = scalar_lea.vmem %s4340_s24, 32 }
  0x3e   : > { %p4076_p0 = scmp.ne.s32.totalorder %s4340_s24, %s4075_s20  ;;  %p4083_p6 = scmp.lt.s32.totalorder %s4340_s24, %s4340_s24 }
  0x3f   : > { %p4084_p8 = scmp.lt.s32.totalorder %s4082_s15, %s4075_s20 }
  0x40   : > { %p4078_p1 = pnand %p4076_p0, %p4360_p7 }
  0x41   : > { %p4085_p9 = por %p4084_p8, %p4083_p6 }
  0x42   : > { %p4079_p4 = pneg %p4078_p1 }
  0x44   : > { %p4086_p10 = pnand %p4085_p9, %p4079_p4 }
  0x46   : > { %4089 = shalt.err (!%p4086_p10)
}
  0x47   : > { %3783 = dma.hbm_to_vmem [thread:$0]  (!%p4344_p5), %s5271_s10, 16, %s4340_s24, [#allocation8]  }
  0x48   : > { %s5272_s6 = sld [smem:[#allocation17_spill]] }
  0x4e   : > { %s4090_s19 = scalar_lea.hbm %s5272_s6, 48 }
  0x4f   : > { %p4091_p11 = scmp.ne.s32.totalorder %s5272_s6, %s4090_s19  ;;  %p4097_p0 = scmp.lt.u32.totalorder %s4090_s19, %s5272_s6 }
  0x51   : > { %p4093_p12 = pnand %p4091_p11, %p4360_p7 }
  0x53   : > { %p4094_p13 = pneg %p4093_p12 }
  0x55   : > { %p4099_p1 = pnand %p4097_p0, %p4094_p13 }
  0x57   : > { %4102 = shalt.err (!%p4099_p1)
}
  0x58   : > { %s4103_s24 = scalar_lea.vmem %s4348_s26, 48  ;;  %s4110_s15 = scalar_lea.vmem %s4348_s26, 64 }
  0x59   : > { %p4104_p4 = scmp.ne.s32.totalorder %s4348_s26, %s4103_s24  ;;  %p4111_p9 = scmp.lt.s32.totalorder %s4348_s26, %s4348_s26 }
  0x5a   : > { %p4112_p10 = scmp.lt.s32.totalorder %s4110_s15, %s4103_s24 }
  0x5b   : > { %p4106_p6 = pnand %p4104_p4, %p4360_p7 }
  0x5c   : > { %p4113_p11 = por %p4112_p10, %p4111_p9 }
  0x5d   : > { %p4107_p8 = pneg %p4106_p6 }
  0x5f   : > { %p4114_p12 = pnand %p4113_p11, %p4107_p8 }
  0x61   : > { %4117 = shalt.err (!%p4114_p12)
}
  0x62   : > { %3774 = dma.hbm_to_vmem [thread:$0]  (!%p4344_p5), %s5272_s6, 48, %s4348_s26, [#allocation3]  }
  0x63   : > { %s4118_s19 = scalar_lea.hbm %s5250_s9, 1024 }
  0x64   : > { %p4119_p13 = scmp.ne.s32.totalorder %s5250_s9, %s4118_s19  ;;  %p4125_p4 = scmp.lt.u32.totalorder %s4118_s19, %s5250_s9 }
  0x66   : > { %p4121_p0 = pnand %p4119_p13, %p4360_p7 }
  0x68   : > { %p4122_p1 = pneg %p4121_p0 }
  0x6a   : > { %p4127_p6 = pnand %p4125_p4, %p4122_p1 }
  0x6c   : > { %4130 = shalt.err (!%p4127_p6)
}
  0x6d   : > { %s4131_s26 = scalar_lea.vmem %s4350_s29, 1024  ;;  %p4139_p11 = scmp.lt.s32.totalorder %s4350_s29, %s4350_s29 }
  0x6e   : > { %p4132_p8 = scmp.ne.s32.totalorder %s4350_s29, %s4131_s26  ;;  %p4140_p12 = scmp.lt.s32.totalorder %s4131_s26, %s4131_s26 }
  0x70   : > { %p4134_p9 = pnand %p4132_p8, %p4360_p7  ;;  %p4141_p13 = por %p4140_p12, %p4139_p11 }
  0x72   : > { %p4135_p10 = pneg %p4134_p9 }
  0x74   : > { %p4142_p0 = pnand %p4141_p13, %p4135_p10 }
  0x76   : > { %4145 = shalt.err (!%p4142_p0)
}
  0x77   : > { %s4230_s24 = smov 64   ;;  %s4231_s15 = smov 4  }
  0x78   : > { %3780 = dma.hbm_to_vmem [thread:$0]  (!%p4344_p5), %s5250_s9, 1024, %s4350_s29, [#allocation5], %s4230_s24, %s4230_s24, %s4231_s15  }
  0x79   : > { %s4232_s16 = smov [#allocation9]   ;;  %s4233_s19 = smov [#allocation10]  }
  0x7a   : > { %s464_s17 = sshll.u32 %s4232_s16, 4  ;;  %s478_s23 = sshll.u32 %s4233_s19, 4  ;;  %s465_s17 = int_to_ptr.vmem [resolvable:$true] %s464_s17  ;;  %s479_s23 = int_to_ptr.vmem [resolvable:$true] %s478_s23 }
  0x7b   : > { %s4146_s20 = scalar_lea.hbm %s5253_s12, 64 }
  0x7c   : > { %p4147_p1 = scmp.ne.s32.totalorder %s5253_s12, %s4146_s20  ;;  %p4153_p8 = scmp.lt.u32.totalorder %s4146_s20, %s5253_s12 }
  0x7e   : > { %p4149_p4 = pnand %p4147_p1, %p4360_p7 }
  0x80   : > { %p4150_p6 = pneg %p4149_p4 }
  0x82   : > { %p4155_p9 = pnand %p4153_p8, %p4150_p6 }
  0x84   : > { %4158 = shalt.err (!%p4155_p9)
}
  0x85   : > { %s4159_s29 = scalar_lea.vmem %s465_s17, 64  ;;  %p4167_p13 = scmp.lt.s32.totalorder %s465_s17, %s465_s17 }
  0x86   : > { %p4160_p10 = scmp.ne.s32.totalorder %s465_s17, %s4159_s29  ;;  %p4168_p0 = scmp.lt.s32.totalorder %s4159_s29, %s4159_s29 }
  0x88   : > { %p4162_p11 = pnand %p4160_p10, %p4360_p7  ;;  %p4169_p2 = por %p4168_p0, %p4167_p13 }
  0x8a   : > { %p4163_p12 = pneg %p4162_p11 }
  0x8c   : > { %p4170_p3 = pnand %p4169_p2, %p4163_p12 }
  0x8e   : > { %4173 = shalt.err (!%p4170_p3)
}
  0x8f   : > { %3786 = dma.hbm_to_vmem [thread:$0]  (!%p4344_p5), %s5253_s12, 64, %s465_s17, [#allocation8]  }
  0x90   : > { %s4174_s15 = scalar_lea.hbm %s5255_s14, 16 }
  0x91   : > { %p4175_p1 = scmp.ne.s32.totalorder %s5255_s14, %s4174_s15  ;;  %p4181_p3 = scmp.lt.u32.totalorder %s4174_s15, %s5255_s14 }
  0x93   : > { %p4177_p4 = pnand %p4175_p1, %p4360_p7 }
  0x95   : > { %p4178_p2 = pneg %p4177_p4 }
  0x97   : > { %p4183_p6 = pnand %p4181_p3, %p4178_p2 }
  0x99   : > { %4186 = shalt.err (!%p4183_p6)
}
  0x9a   : > { %s4187_s28 = scalar_lea.vmem %s479_s23, 16  ;;  %s4194_s17 = scalar_lea.vmem %s479_s23, 32 }
  0x9b   : > { %p4188_p8 = scmp.ne.s32.totalorder %s479_s23, %s4187_s28  ;;  %p4195_p11 = scmp.lt.s32.totalorder %s479_s23, %s479_s23 }
  0x9c   : > { %p4196_p12 = scmp.lt.s32.totalorder %s4194_s17, %s4187_s28 }
  0x9d   : > { %p4190_p9 = pnand %p4188_p8, %p4360_p7 }
  0x9e   : > { %p4197_p13 = por %p4196_p12, %p4195_p11 }
  0x9f   : > { %p4191_p10 = pneg %p4190_p9 }
  0xa1   : > { %p4198_p0 = pnand %p4197_p13, %p4191_p10 }
  0xa3   : > { %4201 = shalt.err (!%p4198_p0)
}
  0xa4   : > { %3789 = dma.hbm_to_vmem [thread:$0]  (!%p4344_p5), %s5255_s14, 16, %s479_s23, [#allocation11]  }
  0xa5   : > { %p5273_p1 = scmp.ne.s32.totalorder %s5267_s22, 0 }
  0xa6   : > { %p5274_p4 = scmp.eq.s32.totalorder (!%p5273_p1), %s4327_s21, 0 }
  0xa7   : > { %511 = sbr.rel (%p5273_p1) target bundleno = 4228 (0x1084), region = 80 }
  0xae   : > { %4207 = dma.done.wait (%p5274_p4), [#allocation3], 48   ;;  %p5275_p7 = pmov %p5274_p4 }
  0xaf   : > { %p5276_p2 = pmov %p5274_p4 }
  0xb0   : > { %4209 = vsyncadd (%p5275_p7), [#allocation3], 4294967248 }
  0xb1   : > { %4211 = dma.done.wait (%p5276_p2), [#allocation5], 1056   ;;  %p5277_p3 = pmov %p5276_p2 }
  0xb2   : > { %p5278_p6 = pmov %p5276_p2 }
  0xb3   : > { %4213 = vsyncadd (%p5277_p3), [#allocation5], 4294966240 }
  0xb4   : > { %4215 = dma.done.wait (%p5278_p6), [#allocation8], 80   ;;  %p5279_p5 = pmov %p5276_p2 }
  0xb5   : > { %p5280_p8 = pmov %p5276_p2 }
  0xb6   : > { %4217 = vsyncadd (%p5279_p5), [#allocation8], 4294967216 }
  0xb7   : > { %4219 = dma.done.wait (%p5280_p8), [#allocation11], 16   ;;  %p5281_p9 = pmov %p5276_p2 }
  0xb8   : > { %p584_p10 = scmp.lt.s32.totalorder %s4327_s21, 1  ;;  %v4234_v0 = vmov 0   ;;  %v610_v3 = vld [vmem:[%s5244_s3] sm:$0xff]  ;;  %v611_v10 = vld [vmem:[%s5244_s3 + $0x8] sm:$0xff]  ;;  %vm4236_vm0 = vmmov 0   ;;  %vm1655_vm1 = vcmask 261120  }
  0xb9   : > { %4221 = vsyncadd (%p5281_p9), [#allocation11], 4294967280  ;;  %1068 = vmatprep.mubr.bf16.mxu0 %v4234_v0  ;;  %1109 = vmatprep.mubr.bf16.mxu1 %v4234_v0  ;;  %v614_v4 = vld [vmem:[%s5244_s3 + $0x20] sm:$0xff]  ;;  %v615_v11 = vld [vmem:[%s5244_s3 + $0x28] sm:$0xff]  ;;  %vm1736_vm3 = vcmask 130048   ;;  %s4240_s24 = smov 32  }
  0xba   : > { %s5288_s21 = smov (!%p584_p10, %s4327_s21), 1  ;;  %v618_v5 = vld [vmem:[%s5244_s3 + $0x40] sm:$0xff]  ;;  %v3342_v7 = vcombine.high %v610_v3, %v614_v4  ;;  %v3341_v8 = vcombine.low %v610_v3, %v614_v4  ;;  %v3344_v13 = vcombine.high %v611_v10, %v615_v11  ;;  %v3343_v15 = vcombine.low %v611_v10, %v615_v11  ;;  %v619_v16 = vld [vmem:[%s5244_s3 + $0x48] sm:$0xff]  ;;  %v613_v11 = vld [vmem:[%s5244_s3 + $0x18] sm:$0xff]  ;;  %s5284_s30 = sld [smem:[#allocation20_spill]] }
  0xbb   : > { %s4513_s22 = sshll.u32 %s5288_s21, 3  ;;  %v622_v6 = vld [vmem:[%s5244_s3 + $0x60] sm:$0xff]  ;;  %v623_v17 = vld [vmem:[%s5244_s3 + $0x68] sm:$0xff]  ;;  %s590_s17 = scalar_lea.vmem %s5242_s1, %s5288_s21  ;;  %vm4932_vm2 = vmpackc.low %vm1655_vm1, %vm1655_vm1  ;;  %vm2355_vm4 = vcmask 523264   ;;  %vm2357_vm5 = vcmask 785408  }
  0xbc   : > { %s4519_s23 = scalar_lea.vmem %s5241_s0, %s4513_s22  ;;  %s594_s6 = scalar_lea.vmem %s5243_s2, %s4513_s22  ;;  %v3350_v9 = vcombine.high %v618_v5, %v622_v6  ;;  %v626_v12 = vld [vmem:[%s5244_s3 + $0x80] sm:$0xff]  ;;  %1036 = vmatprep.subr.bf16.mxu0 %v3342_v7  ;;  %v3352_v18 = vcombine.high %v619_v16, %v623_v17  ;;  %v3349_v19 = vcombine.low %v618_v5, %v622_v6  ;;  %v627_v20 = vld [vmem:[%s5244_s3 + $0x88] sm:$0xff]  ;;  %1077 = vmatprep.subr.bf16.mxu1 %v3344_v13  ;;  %v612_v7 = vld [vmem:[%s5244_s3 + $0x10] sm:$0xff] }
  0xbd   : > { %v4526_v1 = vld [vmem:[%s4519_s23] sm:$0xff]  ;;  %1037 = vmatpush1.bf16.msra.mxu0 %v3341_v8  ;;  %v631_v21 = vld [vmem:[%s5244_s3 + $0xa8] sm:$0xff]  ;;  %1078 = vmatpush1.bf16.msra.mxu1 %v3343_v15  ;;  %v3351_v25 = vcombine.low %v619_v16, %v623_v17  ;;  %v616_v8 = vld [vmem:[%s5244_s3 + $0x30] sm:$0xff]  ;;  %s4239_s21 = smov 64   ;;  %s5285_s10 = sld [smem:[#allocation21_spill]] }
  0xbe   : > { %v4528_v2 = vld [vmem:[%s594_s6] sm:$0xff]  ;;  %1200 = vadd.xlane.f32.xlu0 %v4526_v1  ;;  %1038 = vmatprep.subr.bf16.mxu0 %v3350_v9  ;;  %v3360_v26 = vcombine.high %v627_v20, %v631_v21  ;;  %v635_v28 = vld [vmem:[%s5244_s3 + $0xc8] sm:$0xff]  ;;  %v3359_v34 = vcombine.low %v627_v20, %v631_v21  ;;  %v3346_v13 = vcombine.high %v612_v7, %v616_v8  ;;  %v620_v16 = vld [vmem:[%s5244_s3 + $0x50] sm:$0xff]  ;;  %s4238_s6 = smov 96  }
  0xbf   : > { %v630_v14 = vld [vmem:[%s5244_s3 + $0xa0] sm:$0xff]  ;;  %1079 = vmatprep.subr.bf16.mxu1 %v3352_v18  ;;  %v639_v29 = vld [vmem:[%s5244_s3 + $0xe8] sm:$0xff]  ;;  %v624_v18 = vld [vmem:[%s5244_s3 + $0x70] sm:$0xff] }
  0xc0   : > { %v3358_v22 = vcombine.high %v626_v12, %v630_v14  ;;  %v634_v23 = vld [vmem:[%s5244_s3 + $0xc0] sm:$0xff]  ;;  %v3357_v27 = vcombine.low %v626_v12, %v630_v14  ;;  %v643_v35 = vld [vmem:[%s5244_s3 + $0x108] sm:$0xff]  ;;  %v3368_v38 = vcombine.high %v635_v28, %v639_v29  ;;  %v3367_v43 = vcombine.low %v635_v28, %v639_v29  ;;  %v617_v12 = vld [vmem:[%s5244_s3 + $0x38] sm:$0xff] }
  0xc1   : > { %v638_v24 = vld [vmem:[%s5244_s3 + $0xe0] sm:$0xff]  ;;  %1039 = vmatpush1.bf16.msra.mxu0 %v3349_v19  ;;  %1080 = vmatpush1.bf16.msra.mxu1 %v3351_v25  ;;  %v647_v36 = vld [vmem:[%s5244_s3 + $0x128] sm:$0xff]  ;;  %v3348_v15 = vcombine.high %v613_v11, %v617_v12  ;;  %v621_v19 = vld [vmem:[%s5244_s3 + $0x58] sm:$0xff]  ;;  %v3354_v29 = vcombine.high %v620_v16, %v624_v18 }
  0xc2   : > { %1483 = vadd.xlane.f32.xlu0 %v4528_v2  ;;  %1040 = vmatprep.subr.bf16.mxu0 %v3358_v22  ;;  %v3366_v30 = vcombine.high %v634_v23, %v638_v24  ;;  %v642_v31 = vld [vmem:[%s5244_s3 + $0x100] sm:$0xff]  ;;  %v3365_v39 = vcombine.low %v634_v23, %v638_v24  ;;  %v651_v44 = vld [vmem:[%s5244_s3 + $0x148] sm:$0xff]  ;;  %v3376_v46 = vcombine.high %v643_v35, %v647_v36  ;;  %v625_v20 = vld [vmem:[%s5244_s3 + $0x78] sm:$0xff] }
  0xc3   : > { %v646_v32 = vld [vmem:[%s5244_s3 + $0x120] sm:$0xff]  ;;  %1081 = vmatprep.subr.bf16.mxu1 %v3360_v26  ;;  %v655_v45 = vld [vmem:[%s5244_s3 + $0x168] sm:$0xff]  ;;  %v3375_v51 = vcombine.low %v643_v35, %v647_v36  ;;  %v3345_v22 = vcombine.low %v612_v7, %v616_v8  ;;  %v3347_v23 = vcombine.low %v613_v11, %v617_v12  ;;  %v628_v24 = vld [vmem:[%s5244_s3 + $0x90] sm:$0xff]  ;;  %s598_s15 = scalar_lea.vmem %s5285_s10, %s4513_s22 }
  0xc4   : > { %v4590_v33 = vld [vmem:[%s590_s17] sm:$0x1]  ;;  %v3374_v42 = vcombine.high %v642_v31, %v646_v32  ;;  %v3373_v47 = vcombine.low %v642_v31, %v646_v32  ;;  %v659_v52 = vld [vmem:[%s5244_s3 + $0x188] sm:$0xff]  ;;  %v3384_v54 = vcombine.high %v651_v44, %v655_v45  ;;  %v3383_v60 = vcombine.low %v651_v44, %v655_v45  ;;  %v632_v25 = vld [vmem:[%s5244_s3 + $0xb0] sm:$0xff] }
  0xc5   : > { %v3340_v37 = vmul.f32 -1.442695, %v4590_v33  ;;  %1041 = vmatpush1.bf16.msra.mxu0 %v3357_v27  ;;  %v650_v40 = vld [vmem:[%s5244_s3 + $0x140] sm:$0xff]  ;;  %1082 = vmatpush1.bf16.msra.mxu1 %v3359_v34  ;;  %v663_v53 = vld [vmem:[%s5244_s3 + $0x1a8] sm:$0xff]  ;;  %v629_v26 = vld [vmem:[%s5244_s3 + $0x98] sm:$0xff]  ;;  %v3353_v31 = vcombine.low %v620_v16, %v624_v18  ;;  %v3355_v32 = vcombine.low %v621_v19, %v625_v20 }
  0xc6   : > { %v654_v41 = vld [vmem:[%s5244_s3 + $0x160] sm:$0xff]  ;;  %1042 = vmatprep.subr.bf16.mxu0 %v3366_v30  ;;  %1083 = vmatprep.subr.bf16.mxu1 %v3368_v38  ;;  %v3392_v61 = vcombine.high %v659_v52, %v663_v53  ;;  %v667_v3 = vld [vmem:[%s5244_s3 + $0x1c8] sm:$0xff]  ;;  %v3391_v6 = vcombine.low %v659_v52, %v663_v53  ;;  %v633_v27 = vld [vmem:[%s5244_s3 + $0xb8] sm:$0xff]  ;;  %v3356_v30 = vcombine.high %v621_v19, %v625_v20  ;;  %v4235_v20 = vmov 0.0  }
  0xc7   : > { %3999 = vpow2.f32 %v3340_v37  ;;  %v658_v48 = vld [vmem:[%s5244_s3 + $0x180] sm:$0xff]  ;;  %v3382_v50 = vcombine.high %v650_v40, %v654_v41  ;;  %v3381_v55 = vcombine.low %v650_v40, %v654_v41  ;;  %v671_v4 = vld [vmem:[%s5244_s3 + $0x1e8] sm:$0xff]  ;;  %v640_v34 = vld [vmem:[%s5244_s3 + $0xf0] sm:$0xff]  ;;  %v3362_v37 = vcombine.high %v628_v24, %v632_v25 }
  0xc8   : > { %v662_v49 = vld [vmem:[%s5244_s3 + $0x1a0] sm:$0xff]  ;;  %v3400_v9 = vcombine.high %v667_v3, %v671_v4  ;;  %v3399_v14 = vcombine.low %v667_v3, %v671_v4  ;;  %v637_v35 = vld [vmem:[%s5244_s3 + $0xd8] sm:$0xff]  ;;  %v3364_v38 = vcombine.high %v629_v26, %v633_v27  ;;  %v3363_v40 = vcombine.low %v629_v26, %v633_v27  ;;  %v644_v41 = vld [vmem:[%s5244_s3 + $0x110] sm:$0xff] }
  0xc9   : > { %1043 = vmatpush1.bf16.msra.mxu0 %v3365_v39  ;;  %1084 = vmatpush1.bf16.msra.mxu1 %v3367_v43  ;;  %v666_v56 = vld [vmem:[%s5244_s3 + $0x1c0] sm:$0xff]  ;;  %v3390_v58 = vcombine.high %v658_v48, %v662_v49  ;;  %v3389_v63 = vcombine.low %v658_v48, %v662_v49  ;;  %v641_v36 = vld [vmem:[%s5244_s3 + $0xf8] sm:$0xff]  ;;  %v3361_v39 = vcombine.low %v628_v24, %v632_v25  ;;  %v652_v49 = vld [vmem:[%s5244_s3 + $0x150] sm:$0xff] }
  0xca   : > { %1044 = vmatprep.subr.bf16.mxu0 %v3374_v42  ;;  %1085 = vmatprep.subr.bf16.mxu1 %v3376_v46  ;;  %v670_v57 = vld [vmem:[%s5244_s3 + $0x1e0] sm:$0xff]  ;;  %v648_v42 = vld [vmem:[%s5244_s3 + $0x130] sm:$0xff]  ;;  %v645_v43 = vld [vmem:[%s5244_s3 + $0x118] sm:$0xff]  ;;  %v3372_v46 = vcombine.high %v637_v35, %v641_v36  ;;  %v3371_v48 = vcombine.low %v637_v35, %v641_v36 }
  0xcb   : > { %v3398_v5 = vcombine.high %v666_v56, %v670_v57  ;;  %v3397_v10 = vcombine.low %v666_v56, %v670_v57  ;;  %v649_v44 = vld [vmem:[%s5244_s3 + $0x138] sm:$0xff]  ;;  %v3378_v53 = vcombine.high %v644_v41, %v648_v42  ;;  %v660_v57 = vld [vmem:[%s5244_s3 + $0x190] sm:$0xff]  ;;  %v3871_v36 = vld [vmem:[%s5246_s5 + $0x60] ss:$12 sps:$4 sm:$0xff]  }
  0xcc   : > { %v657_v52 = vld [vmem:[%s5244_s3 + $0x178] sm:$0xff]  ;;  %v3379_v56 = vcombine.low %v645_v43, %v649_v44  ;;  %v668_v4 = vld [vmem:[%s5244_s3 + $0x1d0] sm:$0xff] }
  0xcd   : > { %1045 = vmatpush1.bf16.msra.mxu0 %v3373_v47  ;;  %1086 = vmatpush1.bf16.msra.mxu1 %v3375_v51  ;;  %v653_v51 = vld [vmem:[%s5244_s3 + $0x158] sm:$0xff]  ;;  %v3858_v18 = vld [vmem:[%s5246_s5 + $0x8] ss:$12 sps:$4 sm:$0xff]   ;;  %v3873_v35 = vld [vmem:[%s5246_s5 + $0x64] ss:$12 sps:$4 sm:$0xff]  }
  0xce   : > { %1046 = vmatprep.subr.bf16.mxu0 %v3382_v50  ;;  %1087 = vmatprep.subr.bf16.mxu1 %v3384_v54  ;;  %v656_v50 = vld [vmem:[%s5244_s3 + $0x170] sm:$0xff]  ;;  %v3380_v54 = vcombine.high %v645_v43, %v649_v44  ;;  %v3387_v3 = vcombine.low %v653_v51, %v657_v52  ;;  %v673_v7 = vld [vmem:[%s5244_s3 + $0x1f8] sm:$0xff] }
  0xcf   : > { %v3861_v19 = vld [vmem:[%s5246_s5 + $0x1c] ss:$12 sps:$4 sm:$0xff]   ;;  %v3882_v43 = vld [vmem:[%s5246_s5 + $0x98] ss:$12 sps:$4 sm:$0xff]  }
  0xd0   : > { %v3863_v24 = vld [vmem:[%s5246_s5 + $0x30] ss:$12 sps:$4 sm:$0xff]   ;;  %v3885_v44 = vld [vmem:[%s5246_s5 + $0xac] ss:$12 sps:$4 sm:$0xff]  }
  0xd1   : > { %v4000_v59 = vpop.eup %3999  ;;  %1047 = vmatpush1.bf16.msra.mxu0 %v3381_v55  ;;  %1088 = vmatpush1.bf16.msra.mxu1 %v3383_v60  ;;  %v3377_v55 = vcombine.low %v644_v41, %v648_v42  ;;  %v665_v60 = vld [vmem:[%s5244_s3 + $0x1b8] sm:$0xff]  ;;  %v3881_v41 = vld [vmem:[%s5246_s5 + $0x94] ss:$12 sps:$4 sm:$0xff]  }
  0xd2   : > { %v605_v62 = vadd.f32 1.0, %v4000_v59  ;;  %1048 = vmatprep.subr.bf16.mxu0 %v3390_v58  ;;  %1089 = vmatprep.subr.bf16.mxu1 %v3392_v61  ;;  %v664_v58 = vld [vmem:[%s5244_s3 + $0x1b0] sm:$0xff]  ;;  %v661_v59 = vld [vmem:[%s5244_s3 + $0x198] sm:$0xff]  ;;  %v3386_v61 = vcombine.high %v652_v49, %v656_v50 }
  0xd3   : > { %v3394_v8 = vcombine.high %v660_v57, %v664_v58  ;;  %v3395_v11 = vcombine.low %v661_v59, %v665_v60  ;;  %v3879_v42 = vld [vmem:[%s5246_s5 + $0x90] ss:$12 sps:$4 sm:$0xff]  }
  0xd4   : > { %4001 = vrcp.f32 %v605_v62  ;;  %v3388_v62 = vcombine.high %v653_v51, %v657_v52 }
  0xd5   : > { %1049 = vmatpush1.bf16.msra.mxu0 %v3389_v63  ;;  %1090 = vmatpush1.bf16.msra.mxu1 %v3391_v6  ;;  %v3385_v63 = vcombine.low %v652_v49, %v656_v50  ;;  %v669_v6 = vld [vmem:[%s5244_s3 + $0x1d8] sm:$0xff] }
  0xd6   : > { %1050 = vmatprep.subr.bf16.mxu0 %v3398_v5  ;;  %1091 = vmatprep.subr.bf16.mxu1 %v3400_v9  ;;  %v672_v5 = vld [vmem:[%s5244_s3 + $0x1f0] sm:$0xff]  ;;  %v3396_v9 = vcombine.high %v661_v59, %v665_v60  ;;  %v3403_v16 = vcombine.low %v669_v6, %v673_v7 }
  0xd7   : > { %v3402_v12 = vcombine.high %v668_v4, %v672_v5 }
  0xd9   : > { %1051 = vmatpush1.bf16.msra.mxu0 %v3397_v10  ;;  %1092 = vmatpush1.bf16.msra.mxu1 %v3399_v14  ;;  %v3393_v10 = vcombine.low %v660_v57, %v664_v58  ;;  %v3857_v14 = vld [vmem:[%s5246_s5 + $0x4] ss:$12 sps:$4 sm:$0xff]  }
  0xda   : > { %1118 = vmatprep.subr.bf16.mxu0 %v3346_v13  ;;  %1159 = vmatprep.subr.bf16.mxu1 %v3348_v15  ;;  %v3404_v13 = vcombine.high %v669_v6, %v673_v7  ;;  %v3401_v15 = vcombine.low %v668_v4, %v672_v5 }
  0xde   : > { %v4002_v17 = vpop.eup %4001 }
  0xdf   : > { %v608_v21 = vmul.f32 %v4002_v17, %v4590_v33  ;;  %v636_v33 = vld [vmem:[%s5244_s3 + $0xd0] sm:$0xff]  ;;  %v3855_v17 = vld [vmem:[%s5246_s5] ss:$12 sps:$4 sm:$0xff]  }
  0xe0   : > { %v3370_v45 = vcombine.high %v636_v33, %v640_v34  ;;  %v3369_v47 = vcombine.low %v636_v33, %v640_v34  ;;  %v3866_v33 = vld [vmem:[%s5246_s5 + $0x38] ss:$12 sps:$4 sm:$0xff]   ;;  %v3867_v34 = vld [vmem:[%s5246_s5 + $0x48] ss:$12 sps:$4 sm:$0xff]  }
  0xe1   : > { %v4672_v28 = vpack.c.bf16 %v608_v21, %v608_v21  ;;  %v3859_v21 = vld [vmem:[%s5246_s5 + $0x18] ss:$12 sps:$4 sm:$0xff]  }
  0xe3   : > { %1069 = vmatmul.mubr.bf16.vlgmr.msra.gmra.mrb[0].mxu0 %v4672_v28  ;;  %1110 = vmatmul.mubr.bf16.vlgmr.msra.gmra.mrb[0].mxu1 %v4672_v28 }
  0xe4   : > { %1119 = vmatpush1.bf16.msra.mxu0 %v3345_v22  ;;  %1160 = vmatpush1.bf16.msra.mxu1 %v3347_v23  ;;  %v3862_v22 = vld [vmem:[%s5246_s5 + $0x20] ss:$12 sps:$4 sm:$0xff]  }
  0xe5   : > { %1120 = vmatprep.subr.bf16.mxu0 %v3354_v29  ;;  %1161 = vmatprep.subr.bf16.mxu1 %v3356_v30  ;;  %v3865_v23 = vld [vmem:[%s5246_s5 + $0x34] ss:$12 sps:$4 sm:$0xff]  }
  0xe6   : > { %1150 = vmatprep.mubr.bf16.mxu0 %v4234_v0  ;;  %1191 = vmatprep.mubr.bf16.mxu1 %v4234_v0 }
  0xe8   : > { %1121 = vmatpush1.bf16.msra.mxu0 %v3353_v31  ;;  %1162 = vmatpush1.bf16.msra.mxu1 %v3355_v32 }
  0xe9   : > { %1122 = vmatprep.subr.bf16.mxu0 %v3362_v37  ;;  %1163 = vmatprep.subr.bf16.mxu1 %v3364_v38  ;;  %v3874_v37 = vld [vmem:[%s5246_s5 + $0x68] ss:$12 sps:$4 sm:$0xff]  }
  0xea   : > { %v3877_v38 = vld [vmem:[%s5246_s5 + $0x7c] ss:$12 sps:$4 sm:$0xff]  }
  0xec   : > { %1123 = vmatpush1.bf16.msra.mxu0 %v3361_v39  ;;  %1164 = vmatpush1.bf16.msra.mxu1 %v3363_v40  ;;  %v3875_v39 = vld [vmem:[%s5246_s5 + $0x78] ss:$12 sps:$4 sm:$0xff]   ;;  %v3878_v40 = vld [vmem:[%s5246_s5 + $0x80] ss:$12 sps:$4 sm:$0xff]  }
  0xed   : > { %1124 = vmatprep.subr.bf16.mxu0 %v3370_v45  ;;  %1165 = vmatprep.subr.bf16.mxu1 %v3372_v46  ;;  %v3883_v45 = vld [vmem:[%s5246_s5 + $0xa8] ss:$12 sps:$4 sm:$0xff]   ;;  %v3886_v46 = vld [vmem:[%s5246_s5 + $0xb0] ss:$12 sps:$4 sm:$0xff]  }
  0xf0   : > { %1125 = vmatpush1.bf16.msra.mxu0 %v3369_v47  ;;  %1166 = vmatpush1.bf16.msra.mxu1 %v3371_v48  ;;  %v3889_v47 = vld [vmem:[%s5248_s7 + $0x4] ss:$8 sps:$4 sm:$0xff]   ;;  %v996_v48 = vlaneseq }
  0xf1   : > { %1126 = vmatprep.subr.bf16.mxu0 %v3378_v53  ;;  %1167 = vmatprep.subr.bf16.mxu1 %v3380_v54  ;;  %v674_v54 = vld [vmem:[%s5245_s4] sm:$0xff] }
  0xf2   : > { %v4836_v49 = vshrl.u32 %v996_v48, 7 }
  0xf4   : > { %1127 = vmatpush1.bf16.msra.mxu0 %v3377_v55  ;;  %1168 = vmatpush1.bf16.msra.mxu1 %v3379_v56  ;;  %v1014_v50 = vsub.s32 4, %v4836_v49  ;;  %v1018_v51 = vsub.s32 5, %v4836_v49  ;;  %v1022_v52 = vsub.s32 6, %v4836_v49  ;;  %v1026_v53 = vsub.s32 7, %v4836_v49 }
  0xf5   : > { %1128 = vmatprep.subr.bf16.mxu0 %v3386_v61  ;;  %1169 = vmatprep.subr.bf16.mxu1 %v3388_v62 }
  0xf6   : > { %v1015_v55 = vrot.slane %v674_v54, %v1014_v50  ;;  %v1019_v56 = vrot.slane %v674_v54, %v1018_v51  ;;  %v1023_v57 = vrot.slane %v674_v54, %v1022_v52  ;;  %v1027_v58 = vrot.slane %v674_v54, %v1026_v53  ;;  %v3887_v50 = vld [vmem:[%s5248_s7] ss:$8 sps:$4 sm:$0xff]  }
  0xf8   : > { %1129 = vmatpush1.bf16.msra.mxu0 %v3385_v63  ;;  %1170 = vmatpush1.bf16.msra.mxu1 %v3387_v3 }
  0xf9   : > { %1130 = vmatprep.subr.bf16.mxu0 %v3394_v8  ;;  %1171 = vmatprep.subr.bf16.mxu1 %v3396_v9 }
  0xfc   : > { %1131 = vmatpush1.bf16.msra.mxu0 %v3393_v10  ;;  %1172 = vmatpush1.bf16.msra.mxu1 %v3395_v11 }
  0xfd   : > { %1132 = vmatprep.subr.bf16.mxu0 %v3402_v12  ;;  %1173 = vmatprep.subr.bf16.mxu1 %v3404_v13 }
 0x100   : > { %1133 = vmatpush1.bf16.msra.mxu0 %v3401_v15  ;;  %1174 = vmatpush1.bf16.msra.mxu1 %v3403_v16 }
 0x101   : > { %1401 = vmatprep.subr.bf16.mxu0 %v3857_v14  ;;  %3623 = vmatprep.subr.bf16.mxu1 %v4235_v20 }
 0x103   : > { %1151 = vmatmul.mubr.bf16.vlgmr.msra.gmra.mrb[4].mxu0 %v4672_v28  ;;  %1192 = vmatmul.mubr.bf16.vlgmr.msra.gmra.mrb[4].mxu1 %v4672_v28 }
 0x104   : > { %1402 = vmatpush1.bf16.msra.mxu0 %v3855_v17  ;;  %3624 = vmatpush3.bf16.msra.mxu1 %v3858_v18  ;;  %v4854_v18 = vsub.s32 1, %v4836_v49 }
 0x105   : > { %1403 = vmatprep.subr.bf16.mxu0 %v3861_v19  ;;  %3625 = vmatprep.subr.bf16.mxu1 %v4235_v20 }
 0x106   : > { %1433 = vmatprep.mubr.bf16.mxu0 %v4234_v0  ;;  %3639 = vmatprep.mubr.msk.bf16.mxu1 %vm4236_vm0, %v4235_v20 }
 0x108   : > { %1404 = vmatpush1.bf16.msra.mxu0 %v3859_v21  ;;  %3626 = vmatpush3.bf16.msra.mxu1 %v3862_v22  ;;  %v1003_v22 = vrot.slane %v674_v54, %v4854_v18 }
 0x109   : > { %1405 = vmatprep.subr.bf16.mxu0 %v3865_v23  ;;  %3627 = vmatprep.subr.bf16.mxu1 %v4235_v20  ;;  %v1010_v23 = vsub.s32 3, %v4836_v49 }
 0x10c   : > { %1406 = vmatpush1.bf16.msra.mxu0 %v3863_v24  ;;  %3628 = vmatpush3.bf16.msra.mxu1 %v3866_v33  ;;  %v4864_v33 = vsub.s32 2, %v4836_v49 }
 0x10d   : > { %3629 = vmatprep.subr.bf16.mxu1 %v4235_v20 }
 0x14b   : > { %v1201_v25 = vpop.xlane.xlu0 %1200 }
 0x14c   : > { %v1203_v26 = vmul.f32 0.0078125, %v1201_v25 }
 0x14e   : > { %v4769_v27 = vsub.f32 %v4526_v1, %v1203_v26  ;;  %v3869_v1 = vld [vmem:[%s5246_s5 + $0x4c] ss:$12 sps:$4 sm:$0xff]  }
 0x14f   : > { %v1484_v28 = vpop.xlane.xlu0 %1483  ;;  %1407 = vmatprep.subr.bf16.mxu0 %v3869_v1 }
 0x150   : > { %v1485_v29 = vmul.f32 0.0078125, %v1484_v28  ;;  %v1205_v30 = vmul.f32 %v4769_v27, %v4769_v27  ;;  %1408 = vmatpush1.bf16.msra.mxu0 %v3867_v34  ;;  %v4859_v28 = vsub.s32 0, %v4836_v49 }
 0x151   : > { %1409 = vmatprep.subr.bf16.mxu0 %v3873_v35  ;;  %v1007_v35 = vrot.slane %v674_v54, %v4864_v33 }
 0x152   : > { %v4774_v31 = vsub.f32 %v4528_v2, %v1485_v29  ;;  %1206 = vadd.xlane.f32.xlu1 %v1205_v30  ;;  %v3870_v2 = vld [vmem:[%s5246_s5 + $0x50] ss:$12 sps:$4 sm:$0xff]   ;;  %v1011_v30 = vrot.slane %v674_v54, %v1010_v23  ;;  %v999_v1 = vrot.slane %v674_v54, %v4859_v28 }
 0x153   : > { %3630 = vmatpush3.bf16.msra.mxu1 %v3870_v2  ;;  %v3890_v54 = vld [vmem:[%s5248_s7 + $0x10] ss:$8 sps:$4 sm:$0xff]  }
 0x154   : > { %v1487_v32 = vmul.f32 %v4774_v31, %v4774_v31  ;;  %3631 = vmatprep.subr.bf16.mxu1 %v4235_v20  ;;  %1410 = vmatpush1.bf16.msra.mxu0 %v3871_v36 }
 0x155   : > { %1411 = vmatprep.subr.bf16.mxu0 %v3877_v38 }
 0x156   : > { %1488 = vadd.xlane.f32.xlu1 %v1487_v32 }
 0x157   : > { %3632 = vmatpush3.bf16.msra.mxu1 %v3874_v37 }
 0x158   : > { %3633 = vmatprep.subr.bf16.mxu1 %v4235_v20  ;;  %1412 = vmatpush1.bf16.msra.mxu0 %v3875_v39 }
 0x159   : > { %1413 = vmatprep.subr.bf16.mxu0 %v3881_v41 }
 0x15b   : > { %3634 = vmatpush3.bf16.msra.mxu1 %v3878_v40 }
 0x15c   : > { %3635 = vmatprep.subr.bf16.mxu1 %v4235_v20  ;;  %1414 = vmatpush1.bf16.msra.mxu0 %v3879_v42 }
 0x15d   : > { %1415 = vmatprep.subr.bf16.mxu0 %v3885_v44 }
 0x15f   : > { %3636 = vmatpush3.bf16.msra.mxu1 %v3882_v43 }
 0x160   : > { %3637 = vmatprep.subr.bf16.mxu1 %v4235_v20  ;;  %1416 = vmatpush1.bf16.msra.mxu0 %v3883_v45 }
 0x161   : > { %1614 = vmatprep.subr.bf16.mxu0 %v3889_v47 }
 0x163   : > { %3638 = vmatpush3.bf16.msra.mxu1 %v3886_v46 }
 0x1b6   : > { %v1070_v59 = vpop.f32.mrb[0].mxu0  ;;  %v1111_v60 = vpop.f32.mrb[0].mxu1 }
 0x1b7   : > { %v1072_v61 = vpop.f32.mrb[1].mxu0  ;;  %v1113_v62 = vpop.f32.mrb[1].mxu1  ;;  %v1071_v36 = vadd.f32 %v1070_v59, %v999_v1  ;;  %v1112_v41 = vadd.f32 %v1111_v60, %v1007_v35  ;;  %v3899_v59 = vld [vmem:[%s5248_s7 + $0x40] ss:$8 sps:$4 sm:$0xff]   ;;  %v3904_v60 = vld [vmem:[%s5248_s7 + $0x54] ss:$8 sps:$4 sm:$0xff]  }
 0x1b8   : > { %v1074_v63 = vpop.f32.mrb[2].mxu0  ;;  %v1115_v3 = vpop.f32.mrb[2].mxu1  ;;  %v1073_v29 = vadd.f32 %v1072_v61, %v1003_v22  ;;  %v1114_v2 = vadd.f32 %v1113_v62, %v1011_v30  ;;  %v3902_v61 = vld [vmem:[%s5248_s7 + $0x50] ss:$8 sps:$4 sm:$0xff]   ;;  %v3907_v62 = vld [vmem:[%s5248_s7 + $0x64] ss:$8 sps:$4 sm:$0xff]  }
 0x1b9   : > { %v1075_v4 = vpop.f32.mrb[3].mxu0  ;;  %v1116_v5 = vpop.f32.mrb[3].mxu1  ;;  %v1221_v42 = vrot.slane %v1071_v36, %v4859_v28  ;;  %v1503_v47 = vrot.slane %v1112_v41, %v4859_v28  ;;  %v3905_v63 = vld [vmem:[%s5248_s7 + $0x60] ss:$8 sps:$4 sm:$0xff]   ;;  %v3910_v3 = vld [vmem:[%s5248_s7 + $0x74] ss:$8 sps:$4 sm:$0xff]  }
 0x1ba   : > { %v1212_v34 = vadd.f32 1.0, %v1073_v29  ;;  %v1494_v38 = vadd.f32 1.0, %v1114_v2  ;;  %v3908_v4 = vld [vmem:[%s5248_s7 + $0x70] ss:$8 sps:$4 sm:$0xff]   ;;  %v1522_v22 = vld [vmem:[#allocation4] sm:$0x3] }
 0x1bb   : > { %v1531_v29 = vrot.slane %v1522_v22, %v4854_v18 }
 0x1bc   : > { %v1216_v37 = vrot.slane %v1212_v34, %v4859_v28  ;;  %v1498_v44 = vrot.slane %v1494_v38, %v4859_v28 }
 0x1d6   : > { %v1152_v6 = vpop.f32.mrb[4].mxu0  ;;  %v1193_v7 = vpop.f32.mrb[4].mxu1 }
 0x1d7   : > { %v4845_v8 = vadd.f32 %v1152_v6, %v1015_v55  ;;  %v1154_v9 = vpop.f32.mrb[5].mxu0  ;;  %v4847_v10 = vadd.f32 %v1193_v7, %v1023_v57  ;;  %v1195_v11 = vpop.f32.mrb[5].mxu1  ;;  %v3893_v55 = vld [vmem:[%s5248_s7 + $0x20] ss:$8 sps:$4 sm:$0xff]   ;;  %v3896_v57 = vld [vmem:[%s5248_s7 + $0x30] ss:$8 sps:$4 sm:$0xff]  }
 0x1d8   : > { %v4849_v12 = vadd.f32 %v1154_v9, %v1019_v56  ;;  %v1156_v13 = vpop.f32.mrb[6].mxu0  ;;  %v4851_v14 = vadd.f32 %v1195_v11, %v1027_v58  ;;  %v1197_v15 = vpop.f32.mrb[6].mxu1  ;;  %v3898_v56 = vld [vmem:[%s5248_s7 + $0x34] ss:$8 sps:$4 sm:$0xff]   ;;  %v3901_v58 = vld [vmem:[%s5248_s7 + $0x44] ss:$8 sps:$4 sm:$0xff]  }
 0x1d9   : > { %v1157_v16 = vpop.f32.mrb[7].mxu0  ;;  %v1198_v17 = vpop.f32.mrb[7].mxu1  ;;  %v4237_v6 = vmov 0.0|0.0  }
 0x1da   : > { %3719 = vmatprep.subr.bf16.mxu1 %v4237_v6 }
 0x1df   : > { %v1207_v19 = vpop.xlane.xlu1 %1206 }
 0x1e0   : > { %v1208_v21 = vmul.f32 0.0078125, %v1207_v19 }
 0x1e2   : > { %v1209_v24 = vadd.f32 1e-06, %v1208_v21  ;;  %v1256_v21 = vld [vmem:[#allocation2] sm:$0x7] }
 0x1e3   : > { %v1489_v25 = vpop.xlane.xlu1 %1488 }
 0x1e4   : > { %4003 = vrsqrt.f32 %v1209_v24  ;;  %v1490_v26 = vmul.f32 0.0078125, %v1489_v25  ;;  %v1265_v24 = vrot.slane %v1256_v21, %v4854_v18  ;;  %v1527_v25 = vrot.slane %v1522_v22, %v4859_v28 }
 0x1e6   : > { %v1491_v32 = vadd.f32 1e-06, %v1490_v26  ;;  %v1269_v26 = vrot.slane %v1256_v21, %v4864_v33 }
 0x1e8   : > { %4005 = vrsqrt.f32 %v1491_v32 }
 0x1ee   : > { %v4004_v39 = vpop.eup %4003 }
 0x1ef   : > { %v1211_v40 = vmul.f32 %v4004_v39, %v4769_v27  ;;  %v3892_v27 = vld [vmem:[%s5248_s7 + $0x14] ss:$8 sps:$4 sm:$0xff]  }
 0x1f1   : > { %v1217_v43 = vmul.f32 %v1216_v37, %v1211_v40 }
 0x1f2   : > { %v4006_v45 = vpop.eup %4005 }
 0x1f3   : > { %v1222_v46 = vadd.f32 %v1221_v42, %v1217_v43  ;;  %v1493_v48 = vmul.f32 %v4006_v45, %v4774_v31  ;;  %v3895_v31 = vld [vmem:[%s5248_s7 + $0x24] ss:$8 sps:$4 sm:$0xff]   ;;  %v1261_v43 = vrot.slane %v1256_v21, %v4859_v28 }
 0x1f5   : > { %v1499_v51 = vmul.f32 %v1498_v44, %v1493_v48  ;;  %v1223_v52 = vpack.c.bf16 %v1222_v46, %v1222_v46 }
 0x1f7   : > { %v1504_v53 = vadd.f32 %v1503_v47, %v1499_v51  ;;  %1434 = vmatmul.mubr.bf16.vlgmr.msra.gmra.mrb[8].mxu0 %v1223_v52  ;;  %3640 = vmatmul.mubr.bf16.vlgmr.msra.gmra.mrb[8].mxu1 %v1223_v52 }
 0x1f8   : > { %1615 = vmatpush1.bf16.msra.mxu0 %v3887_v50  ;;  %1646 = vmatprep.mubr.bf16.mxu0 %v4234_v0 }
 0x1f9   : > { %1616 = vmatprep.subr.bf16.mxu0 %v3892_v27  ;;  %3647 = vmatprep.mubr.msk.f32.mxu1 %vm4236_vm0, %v4235_v20  ;;  %v1505_v5 = vpack.c.bf16 %v1504_v53, %v1504_v53 }
 0x1fc   : > { %1617 = vmatpush1.bf16.msra.mxu0 %v3890_v54 }
 0x1fd   : > { %1618 = vmatprep.subr.bf16.mxu0 %v3895_v31 }
 0x200   : > { %1619 = vmatpush1.bf16.msra.mxu0 %v3893_v55 }
 0x201   : > { %1620 = vmatprep.subr.bf16.mxu0 %v3898_v56 }
 0x204   : > { %1621 = vmatpush1.bf16.msra.mxu0 %v3896_v57 }
 0x205   : > { %1622 = vmatprep.subr.bf16.mxu0 %v3901_v58 }
 0x208   : > { %1623 = vmatpush1.bf16.msra.mxu0 %v3899_v59 }
 0x209   : > { %1624 = vmatprep.subr.bf16.mxu0 %v3904_v60 }
 0x20c   : > { %1625 = vmatpush1.bf16.msra.mxu0 %v3902_v61 }
 0x20d   : > { %1626 = vmatprep.subr.bf16.mxu0 %v3907_v62 }
 0x210   : > { %1627 = vmatpush1.bf16.msra.mxu0 %v3905_v63 }
 0x211   : > { %1628 = vmatprep.subr.bf16.mxu0 %v3910_v3 }
 0x214   : > { %1629 = vmatpush1.bf16.msra.mxu0 %v3908_v4 }
 0x215   : > { %3699 = vmatprep.subr.bf16.mxu0 %v4235_v20 }
 0x217   : > { %1647 = vmatmul.mubr.bf16.vlgmr.msra.gmra.mrb[12].mxu0 %v1505_v5 }
 0x218   : > { %3715 = vmatprep.mubr.msk.bf16.mxu0 %vm4236_vm0, %v4235_v20 }
 0x2ca   : > { %v1435_v7 = vpop.f32.mrb[8].mxu0  ;;  %v1476_v9 = vpop.f32.mrb[8].mxu1 }
 0x2cb   : > { %v1437_v11 = vpop.f32.mrb[9].mxu0  ;;  %v3641_v13 = vpop.f32.mrb[9].mxu1  ;;  %v1477_v2 = vadd.f32 %v1476_v9, %v1269_v26  ;;  %v4944_v44 = vadd.f32 %v1435_v7, %v1261_v43 }
 0x2cc   : > { %v1439_v15 = vpop.f32.mrb[10].mxu0  ;;  %v1479_v16 = vpop.f32.mrb[10].mxu1  ;;  %v1438_v32 = vadd.f32 %v1437_v11, %v1265_v24 }
 0x2cd   : > { %v1440_v17 = vpop.f32.mrb[11].mxu0  ;;  %v3642_v19 = vpop.f32.mrb[11].mxu1 }
 0x2ea   : > { %v1648_v30 = vpop.f32.mrb[12].mxu0 }
 0x2eb   : > { %v1649_v1 = vadd.f32 %v1648_v30, %v1527_v25  ;;  %v1650_v34 = vpop.f32.mrb[13].mxu0 }
 0x2ec   : > { %v1651_v35 = vadd.f32 %v1650_v34, %v1531_v29  ;;  %v1652_v36 = vpop.f32.mrb[14].mxu0 }
 0x2ed   : > { %v3720_v38 = vpack.c.bf16 %v1438_v32, %v1649_v1  ;;  %v1653_v39 = vpop.f32.mrb[15].mxu0  ;;  %v4936_v40 = vpack.i.bf16 %v1438_v32, %v1649_v1 }
 0x2ee   : > { %v3724_v41 = vpack.c.bf16 %v1477_v2, %v1651_v35  ;;  %v4938_v42 = vpack.i.bf16 %v1477_v2, %v1651_v35 }
 0x2ef   : > { %3722 = vmatpush3.bf16.xpose.msk.msra.mxu1 %vm4932_vm2, %v3720_v38 }
 0x2f0   : > { %3723 = vmatprep.subr.bf16.mxu1 %v4237_v6 }
 0x2f6   : > { %3648 = vmatmul.mubr.msk.f32.vlgmr.msra.gmra.mrb[12].mxu1 %vm1655_vm1, %v4944_v44 }
 0x2f7   : > { %3725 = vmatpush3.bf16.msra.mxu1 %v3724_v41  ;;  %3654 = vmatprep.mubr.msk.f32.mxu1 %vm4236_vm0, %v4235_v20 }
 0x2f8   : > { %3726 = vmatprep.subr.bf16.mxu1 %v4237_v6 }
 0x3c9   : > { %v1731_v45 = vpop.f32.mrb[12].mxu1 }
 0x3ca   : > { %v1735_v46 = vmul.f32 0.17677669, %v1731_v45  ;;  %v3649_v47 = vpop.f32.mrb[13].mxu1 }
 0x3cc   : > { %v1737_v48 = vsel %vm1736_vm3, %v1735_v46, -inf }
 0x3cd   : > { %1738 = vmax.xlane.f32.xlu0 %v1737_v48 }
 0x3e3   : > { %3826 = vrot.lane.b32.xlu0 %v4936_v40, %s4238_s6 }
 0x45a   : > { %v1739_v50 = vpop.xlane.xlu0 %1738 }
 0x45b   : > { %v1740_v51 = vsub.f32 %v1735_v46, %v1739_v50 }
 0x45d   : > { %v1741_v52 = vmul.f32 1.442695, %v1740_v51 }
 0x45e   : > { %v3827_v31 = vpop.permute.xlu0 %3826 }
 0x45f   : > { %4007 = vpow2.f32 %v1741_v52  ;;  %v3829_v55 = vunpack.i.h.bf16 %v3827_v31  ;;  %v3828_v56 = vunpack.i.l.bf16 %v3827_v31 }
 0x461   : > { %v3727_v59 = vpack.c.bf16 %v3829_v55, %v3828_v56 }
 0x469   : > { %v4008_v27 = vpop.eup %4007 }
 0x46a   : > { %v1743_v53 = vsel %vm1736_vm3, %v4008_v27, 0.0 }
 0x46b   : > { %1744 = vadd.xlane.f32.xlu1 %v1743_v53 }
 0x47c   : > { %1821 = vrot.lane.b32.xlu1 %v4944_v44, %s4238_s6 }
 0x4f8   : > { %v1745_v54 = vpop.xlane.xlu1 %1744 }
 0x4f9   : > { %4009 = vrcp.f32 %v1745_v54 }
 0x4fc   : > { %v1822_v60 = vpop.permute.xlu1 %1821 }
 0x503   : > { %v4010_v57 = vpop.eup %4009 }
 0x504   : > { %v1747_v58 = vmul.f32 %v4010_v57, %v4008_v27 }
 0x506   : > { %3655 = vmatmul.mubr.msk.f32.vlgmr.msra.gmra.mrb[14].mxu1 %vm1736_vm3, %v1747_v58 }
 0x507   : > { %3729 = vmatpush3.bf16.xpose.msk.msra.mxu1 %vm4932_vm2, %v3727_v59  ;;  %3661 = vmatprep.mubr.msk.f32.mxu1 %vm4236_vm0, %v4235_v20 }
 0x508   : > { %3730 = vmatprep.subr.bf16.mxu1 %v4237_v6 }
 0x50e   : > { %3662 = vmatmul.mubr.msk.f32.vlgmr.msra.gmra.mrb[16].mxu1 %vm1655_vm1, %v1822_v60 }
 0x50f   : > { %3668 = vmatprep.mubr.msk.f32.mxu1 %vm4236_vm0, %v4235_v20 }
 0x5d9   : > { %v4966_v61 = vpop.f32.mrb[14].mxu1 }
 0x5da   : > { %v3656_v62 = vpop.f32.mrb[15].mxu1 }
 0x5e1   : > { %v1899_v63 = vpop.f32.mrb[16].mxu1 }
 0x5e2   : > { %v1903_v3 = vmul.f32 0.17677669, %v1899_v63  ;;  %v3663_v4 = vpop.f32.mrb[17].mxu1 }
 0x5e4   : > { %v1904_v5 = vsel %vm1736_vm3, %v1903_v3, -inf }
 0x5e5   : > { %1905 = vmax.xlane.f32.xlu1 %v1904_v5 }
 0x5f6   : > { %3836 = vrot.lane.b32.xlu1 %v4936_v40, %s4239_s21 }
 0x5fa   : > { %1996 = vrot.lane.b32.xlu1 %v4944_v44, %s4239_s21 }
 0x672   : > { %v1906_v7 = vpop.xlane.xlu1 %1905 }
 0x673   : > { %v1907_v9 = vsub.f32 %v1903_v3, %v1906_v7 }
 0x675   : > { %v1908_v11 = vmul.f32 1.442695, %v1907_v9 }
 0x676   : > { %v3837_v24 = vpop.permute.xlu1 %3836 }
 0x677   : > { %4011 = vpow2.f32 %v1908_v11  ;;  %v3839_v26 = vunpack.i.h.bf16 %v3837_v24  ;;  %v3838_v29 = vunpack.i.l.bf16 %v3837_v24  ;;  %v3915_v24 = vld [vmem:[#allocation6 + $0x20] sm:$0xff]  }
 0x679   : > { %v3734_v32 = vpack.c.bf16 %v3839_v26, %v3838_v29  ;;  %v3917_v26 = vld [vmem:[#allocation6 + $0x30] sm:$0xff]   ;;  %v3918_v29 = vld [vmem:[#allocation6 + $0x38] sm:$0xff]  }
 0x67a   : > { %v1997_v1 = vpop.permute.xlu1 %1996 }
 0x681   : > { %v4012_v13 = vpop.eup %4011 }
 0x682   : > { %v1910_v15 = vsel %vm1736_vm3, %v4012_v13, 0.0 }
 0x683   : > { %1911 = vadd.xlane.f32.xlu0 %v1910_v15 }
 0x699   : > { %3831 = vrot.lane.b32.xlu0 %v4938_v42, %s4238_s6 }
 0x710   : > { %v1912_v16 = vpop.xlane.xlu0 %1911 }
 0x711   : > { %4013 = vrcp.f32 %v1912_v16 }
 0x714   : > { %v3832_v17 = vpop.permute.xlu0 %3831 }
 0x715   : > { %v3834_v19 = vunpack.i.h.bf16 %v3832_v17  ;;  %v3833_v21 = vunpack.i.l.bf16 %v3832_v17  ;;  %v3911_v17 = vld [vmem:[#allocation6] sm:$0xff]  }
 0x716   : > { %3700 = vmatpush3.bf16.msra.mxu0 %v3911_v17  ;;  %v3960_v17 = vld [vmem:[%s5252_s11 + $0xcc] ss:$16 sps:$4 sm:$0xff]  }
 0x717   : > { %v3731_v22 = vpack.c.bf16 %v3834_v19, %v3833_v21  ;;  %v3912_v19 = vld [vmem:[#allocation6 + $0x8] sm:$0xff]   ;;  %3701 = vmatprep.subr.bf16.mxu0 %v4235_v20  ;;  %v3913_v21 = vld [vmem:[#allocation6 + $0x10] sm:$0xff]  }
 0x719   : > { %3732 = vmatpush3.bf16.msra.mxu1 %v3731_v22  ;;  %v3914_v22 = vld [vmem:[#allocation6 + $0x18] sm:$0xff]  }
 0x71a   : > { %3733 = vmatprep.subr.bf16.mxu1 %v4237_v6  ;;  %3702 = vmatpush3.bf16.msra.mxu0 %v3912_v19  ;;  %v3955_v19 = vld [vmem:[%s5252_s11 + $0xc0] ss:$16 sps:$4 sm:$0xff]  }
 0x71b   : > { %v4014_v25 = vpop.eup %4013  ;;  %3703 = vmatprep.subr.bf16.mxu0 %v4235_v20 }
 0x71c   : > { %v1914_v30 = vmul.f32 %v4014_v25, %v4012_v13  ;;  %v3916_v25 = vld [vmem:[#allocation6 + $0x28] sm:$0xff]  }
 0x71e   : > { %3669 = vmatmul.mubr.msk.f32.vlgmr.msra.gmra.mrb[18].mxu1 %vm1736_vm3, %v1914_v30  ;;  %3704 = vmatpush3.bf16.msra.mxu0 %v3913_v21  ;;  %v3958_v21 = vld [vmem:[%s5252_s11 + $0xc8] ss:$16 sps:$4 sm:$0xff]  }
 0x71f   : > { %3675 = vmatprep.mubr.msk.f32.mxu1 %vm4236_vm0, %v4235_v20  ;;  %3705 = vmatprep.subr.bf16.mxu0 %v4235_v20 }
 0x722   : > { %3736 = vmatpush3.bf16.xpose.msk.msra.mxu1 %vm4932_vm2, %v3734_v32  ;;  %3706 = vmatpush3.bf16.msra.mxu0 %v3914_v22  ;;  %v3963_v22 = vld [vmem:[%s5252_s11 + $0xe4] ss:$16 sps:$4 sm:$0xff]  }
 0x723   : > { %3737 = vmatprep.subr.bf16.mxu1 %v4237_v6  ;;  %3707 = vmatprep.subr.bf16.mxu0 %v4235_v20 }
 0x726   : > { %3708 = vmatpush3.bf16.msra.mxu0 %v3915_v24  ;;  %v3961_v24 = vld [vmem:[%s5252_s11 + $0xe0] ss:$16 sps:$4 sm:$0xff]  }
 0x727   : > { %3709 = vmatprep.subr.bf16.mxu0 %v4235_v20 }
 0x729   : > { %3676 = vmatmul.mubr.msk.f32.vlgmr.msra.gmra.mrb[20].mxu1 %vm1655_vm1, %v1997_v1 }
 0x72a   : > { %3682 = vmatprep.mubr.msk.f32.mxu1 %vm4236_vm0, %v4235_v20  ;;  %3710 = vmatpush3.bf16.msra.mxu0 %v3916_v25  ;;  %v3964_v25 = vld [vmem:[%s5252_s11 + $0xe8] ss:$16 sps:$4 sm:$0xff]  }
 0x72b   : > { %3711 = vmatprep.subr.bf16.mxu0 %v4235_v20 }
 0x72e   : > { %3712 = vmatpush3.bf16.msra.mxu0 %v3917_v26  ;;  %v3966_v26 = vld [vmem:[%s5252_s11 + $0xec] ss:$16 sps:$4 sm:$0xff]  }
 0x72f   : > { %3713 = vmatprep.subr.bf16.mxu0 %v4235_v20 }
 0x732   : > { %3714 = vmatpush3.bf16.msra.mxu0 %v3918_v29 }
 0x7f1   : > { %v1992_v34 = vpop.f32.mrb[18].mxu1 }
 0x7f2   : > { %v3670_v2 = vpop.f32.mrb[19].mxu1 }
 0x7fc   : > { %v2074_v35 = vpop.f32.mrb[20].mxu1 }
 0x7fd   : > { %v2078_v36 = vmul.f32 0.17677669, %v2074_v35  ;;  %v3677_v38 = vpop.f32.mrb[21].mxu1 }
 0x7ff   : > { %v2079_v39 = vsel %vm1736_vm3, %v2078_v36, -inf }
 0x800   : > { %2080 = vmax.xlane.f32.xlu1 %v2079_v39 }
 0x811   : > { %3846 = vrot.lane.b32.xlu1 %v4936_v40, %s4240_s24 }
 0x815   : > { %2169 = vrot.lane.b32.xlu1 %v4944_v44, %s4240_s24 }
 0x88d   : > { %v2081_v41 = vpop.xlane.xlu1 %2080 }
 0x88e   : > { %v2082_v43 = vsub.f32 %v2078_v36, %v2081_v41 }
 0x890   : > { %v2083_v45 = vmul.f32 1.442695, %v2082_v43  ;;  %v2474_v43 = vrot.slane %v4845_v8, %v4859_v28  ;;  %v3922_v8 = vld [vmem:[%s5252_s11 + $0x8] ss:$16 sps:$4 sm:$0xff]  }
 0x891   : > { %v3847_v27 = vpop.permute.xlu1 %3846 }
 0x892   : > { %4015 = vpow2.f32 %v2083_v45  ;;  %v3849_v53 = vunpack.i.h.bf16 %v3847_v27  ;;  %v3848_v54 = vunpack.i.l.bf16 %v3847_v27  ;;  %v3927_v27 = vld [vmem:[%s5252_s11 + $0x24] ss:$16 sps:$4 sm:$0xff]  }
 0x894   : > { %v3741_v55 = vpack.c.bf16 %v3849_v53, %v3848_v54  ;;  %v3925_v53 = vld [vmem:[%s5252_s11 + $0x20] ss:$16 sps:$4 sm:$0xff]   ;;  %v3928_v54 = vld [vmem:[%s5252_s11 + $0x28] ss:$16 sps:$4 sm:$0xff]  }
 0x895   : > { %v2170_v56 = vpop.permute.xlu1 %2169 }
 0x89c   : > { %v4016_v46 = vpop.eup %4015 }
 0x89d   : > { %v2085_v47 = vsel %vm1736_vm3, %v4016_v46, 0.0 }
 0x89e   : > { %2086 = vadd.xlane.f32.xlu0 %v2085_v47 }
 0x8b4   : > { %3841 = vrot.lane.b32.xlu0 %v4938_v42, %s4239_s21 }
 0x92b   : > { %v2087_v48 = vpop.xlane.xlu0 %2086 }
 0x92c   : > { %4017 = vrcp.f32 %v2087_v48 }
 0x92f   : > { %v3842_v50 = vpop.permute.xlu0 %3841 }
 0x930   : > { %v3844_v51 = vunpack.i.h.bf16 %v3842_v50  ;;  %v3843_v52 = vunpack.i.l.bf16 %v3842_v50  ;;  %v4033_v50 = vld [vmem:[%s4519_s23] sm:$0xff] }
 0x932   : > { %v3738_v40 = vpack.c.bf16 %v3844_v51, %v3843_v52  ;;  %v3919_v52 = vld [vmem:[%s5252_s11] ss:$16 sps:$4 sm:$0xff]  }
 0x934   : > { %3739 = vmatpush3.bf16.msra.mxu1 %v3738_v40  ;;  %v3924_v40 = vld [vmem:[%s5252_s11 + $0xc] ss:$16 sps:$4 sm:$0xff]  }
 0x935   : > { %3740 = vmatprep.subr.bf16.mxu1 %v4237_v6  ;;  %2755 = vmatprep.subr.bf16.mxu0 %v3924_v40  ;;  %v3980_v40 = vld [vmem:[%s5284_s30 + $0xd8] sm:$0xff]  }
 0x936   : > { %v4018_v44 = vpop.eup %4017 }
 0x937   : > { %v2089_v31 = vmul.f32 %v4018_v44, %v4016_v46  ;;  %v3930_v44 = vld [vmem:[%s5252_s11 + $0x2c] ss:$16 sps:$4 sm:$0xff]  }
 0x939   : > { %3683 = vmatmul.mubr.msk.f32.vlgmr.msra.gmra.mrb[22].mxu1 %vm1736_vm3, %v2089_v31  ;;  %v3933_v31 = vld [vmem:[%s5252_s11 + $0x44] ss:$16 sps:$4 sm:$0xff]  }
 0x93a   : > { %3689 = vmatprep.mubr.msk.f32.mxu1 %vm4236_vm0, %v4235_v20 }
 0x93d   : > { %3743 = vmatpush3.bf16.xpose.msk.msra.mxu1 %vm4932_vm2, %v3741_v55  ;;  %v3936_v55 = vld [vmem:[%s5252_s11 + $0x4c] ss:$16 sps:$4 sm:$0xff]  }
 0x93e   : > { %3744 = vmatprep.subr.bf16.mxu1 %v4237_v6 }
 0x944   : > { %3690 = vmatmul.mubr.msk.f32.vlgmr.msra.gmra.mrb[24].mxu1 %vm1655_vm1, %v2170_v56  ;;  %v3931_v56 = vld [vmem:[%s5252_s11 + $0x40] ss:$16 sps:$4 sm:$0xff]  }
 0x945   : > { %3696 = vmatprep.mubr.msk.f32.mxu1 %vm4236_vm0, %v4235_v20  ;;  %v3461_v20 = vld [vmem:[#allocation7] ss:$0 sm:$0xff] }
 0xa0c   : > { %v2165_v57 = vpop.f32.mrb[22].mxu1 }
 0xa0d   : > { %v3684_v58 = vpop.f32.mrb[23].mxu1 }
 0xa17   : > { %v2247_v59 = vpop.f32.mrb[24].mxu1 }
 0xa18   : > { %v2251_v60 = vmul.f32 0.17677669, %v2247_v59  ;;  %v3691_v62 = vpop.f32.mrb[25].mxu1 }
 0xa1a   : > { %v2252_v63 = vsel %vm1736_vm3, %v2251_v60, -inf }
 0xa1b   : > { %2253 = vmax.xlane.f32.xlu0 %v2252_v63  ;;  %v3939_v63 = vld [vmem:[%s5252_s11 + $0x64] ss:$16 sps:$4 sm:$0xff]  }
 0xa31   : > { %3851 = vrot.lane.b32.xlu0 %v4938_v42, %s4240_s24 }
 0xa35   : > { %2347 = vrot.lane.b32.xlu0 %v2165_v57, %s4239_s21  ;;  %v3934_v57 = vld [vmem:[%s5252_s11 + $0x48] ss:$16 sps:$4 sm:$0xff]  }
 0xaa8   : > { %v2254_v6 = vpop.xlane.xlu0 %2253 }
 0xaa9   : > { %v2255_v37 = vsub.f32 %v2251_v60, %v2254_v6  ;;  %v3942_v6 = vld [vmem:[%s5252_s11 + $0x6c] ss:$16 sps:$4 sm:$0xff]  }
 0xaab   : > { %v2256_v3 = vmul.f32 1.442695, %v2255_v37  ;;  %v3937_v37 = vld [vmem:[%s5252_s11 + $0x60] ss:$16 sps:$4 sm:$0xff]  }
 0xaac   : > { %v3852_v4 = vpop.permute.xlu0 %3851 }
 0xaad   : > { %4019 = vpow2.f32 %v2256_v3  ;;  %v3854_v5 = vunpack.i.h.bf16 %v3852_v4  ;;  %v3853_v7 = vunpack.i.l.bf16 %v3852_v4  ;;  %v3940_v3 = vld [vmem:[%s5252_s11 + $0x68] ss:$16 sps:$4 sm:$0xff]   ;;  %v3945_v4 = vld [vmem:[%s5252_s11 + $0x84] ss:$16 sps:$4 sm:$0xff]  }
 0xaaf   : > { %v3745_v9 = vpack.c.bf16 %v3854_v5, %v3853_v7  ;;  %v3948_v5 = vld [vmem:[%s5252_s11 + $0x8c] ss:$16 sps:$4 sm:$0xff]   ;;  %v3943_v7 = vld [vmem:[%s5252_s11 + $0x80] ss:$16 sps:$4 sm:$0xff]  }
 0xab0   : > { %v2348_v2 = vpop.permute.xlu0 %2347 }
 0xab1   : > { %3746 = vmatpush3.bf16.msra.mxu1 %v3745_v9  ;;  %v3946_v9 = vld [vmem:[%s5252_s11 + $0x88] ss:$16 sps:$4 sm:$0xff]  }
 0xab7   : > { %v4020_v11 = vpop.eup %4019 }
 0xab8   : > { %v2258_v13 = vsel %vm1736_vm3, %v4020_v11, 0.0 }
 0xab9   : > { %2259 = vadd.xlane.f32.xlu1 %v2258_v13  ;;  %v3954_v13 = vld [vmem:[%s5252_s11 + $0xac] ss:$16 sps:$4 sm:$0xff]  }
 0xaca   : > { %2343 = vrot.lane.b32.xlu1 %v1992_v34, %s4240_s24 }
 0xb46   : > { %v2260_v15 = vpop.xlane.xlu1 %2259 }
 0xb47   : > { %4021 = vrcp.f32 %v2260_v15  ;;  %v3949_v15 = vld [vmem:[%s5252_s11 + $0xa0] ss:$16 sps:$4 sm:$0xff]  }
 0xb4a   : > { %v2344_v1 = vpop.permute.xlu1 %2343 }
 0xb4b   : > { %v2354_v34 = vsel %vm1655_vm1, %v4966_v61, %v2344_v1  ;;  %v2488_v1 = vadd.f32 1.0, %v4847_v10  ;;  %v3968_v10 = vld [vmem:[%s5284_s30 + $0xc0] sm:$0xff]  }
 0xb4c   : > { %v2356_v35 = vsel %vm2355_vm4, %v2354_v34, %v2348_v2 }
 0xb4d   : > { %v2492_v2 = vrot.slane %v2488_v1, %v4859_v28 }
 0xb51   : > { %v4022_v42 = vpop.eup %4021 }
 0xb52   : > { %v2262_v16 = vmul.f32 %v4022_v42, %v4020_v11  ;;  %v3951_v11 = vld [vmem:[%s5252_s11 + $0xa4] ss:$16 sps:$4 sm:$0xff]   ;;  %v3952_v42 = vld [vmem:[%s5252_s11 + $0xa8] ss:$16 sps:$4 sm:$0xff]  }
 0xb54   : > { %3697 = vmatmul.mubr.msk.f32.vlgmr.msra.gmra.mrb[26].mxu1 %vm1736_vm3, %v2262_v16  ;;  %v3957_v16 = vld [vmem:[%s5252_s11 + $0xc4] ss:$16 sps:$4 sm:$0xff]  }
 0xb55   : > { %2746 = vmatprep.mubr.bf16.mxu1 %v4234_v0 }
 0xc27   : > { %v2338_v30 = vpop.f32.mrb[26].mxu1 }
 0xc28   : > { %2351 = vrot.lane.b32.xlu1 %v2338_v30, %s4238_s6  ;;  %v3698_v32 = vpop.f32.mrb[27].mxu1 }
 0xc9a   : > { %v2352_v36 = vpop.permute.xlu1 %2351 }
 0xc9b   : > { %v2358_v38 = vsel %vm2357_vm5, %v2356_v35, %v2352_v36  ;;  %v2497_v36 = vrot.slane %v4849_v12, %v4859_v28  ;;  %v3970_v12 = vld [vmem:[%s5284_s30 + $0x80] sm:$0xff]  }
 0xc9c   : > { %v2359_v39 = vpack.c.bf16 %v2358_v38, %v2358_v38 }
 0xc9e   : > { %3716 = vmatmul.mubr.bf16.vlgmr.msra.gmra.mrb[16].mxu0 %v2359_v39 }
 0xc9f   : > { %2787 = vmatprep.mubr.bf16.mxu0 %v4234_v0  ;;  %v3921_v0 = vld [vmem:[%s5252_s11 + $0x4] ss:$16 sps:$4 sm:$0xff]   ;;  %2756 = vmatpush1.bf16.msra.mxu0 %v3922_v8  ;;  %v3979_v8 = vld [vmem:[%s5284_s30 + $0x58] sm:$0xff]  }
 0xca0   : > { %2714 = vmatprep.subr.bf16.mxu1 %v3921_v0  ;;  %2757 = vmatprep.subr.bf16.mxu0 %v3930_v44  ;;  %v3978_v0 = vld [vmem:[%s5284_s30 + $0x90] sm:$0xff]   ;;  %v3982_v44 = vld [vmem:[%s5284_s30 + $0x98] sm:$0xff]  }
 0xca1   : > { %2715 = vmatpush1.bf16.msra.mxu1 %v3919_v52  ;;  %v3977_v52 = vld [vmem:[%s5284_s30 + $0x10] sm:$0xff]  }
 0xca2   : > { %2716 = vmatprep.subr.bf16.mxu1 %v3927_v27  ;;  %v3981_v27 = vld [vmem:[%s5284_s30 + $0x18] sm:$0xff]  }
 0xca3   : > { %2758 = vmatpush1.bf16.msra.mxu0 %v3928_v54  ;;  %v3984_v54 = vld [vmem:[%s5284_s30 + $0xe0] sm:$0xff]  }
 0xca4   : > { %2759 = vmatprep.subr.bf16.mxu0 %v3936_v55  ;;  %v3986_v55 = vld [vmem:[%s5284_s30 + $0xa0] sm:$0xff]  }
 0xca5   : > { %2717 = vmatpush1.bf16.msra.mxu1 %v3925_v53  ;;  %v3983_v53 = vld [vmem:[%s5284_s30 + $0x60] sm:$0xff]  }
 0xca6   : > { %2718 = vmatprep.subr.bf16.mxu1 %v3933_v31  ;;  %v3985_v31 = vld [vmem:[%s5284_s30 + $0x20] sm:$0xff]  }
 0xca7   : > { %2760 = vmatpush1.bf16.msra.mxu0 %v3934_v57  ;;  %v3988_v57 = vld [vmem:[%s5284_s30 + $0xe8] sm:$0xff]  }
 0xca8   : > { %2761 = vmatprep.subr.bf16.mxu0 %v3942_v6  ;;  %v3994_v6 = vld [vmem:[%s5284_s30 + $0xb0] sm:$0xff]  }
 0xca9   : > { %2719 = vmatpush1.bf16.msra.mxu1 %v3931_v56  ;;  %v3987_v56 = vld [vmem:[%s5284_s30 + $0x68] sm:$0xff]  }
 0xcaa   : > { %2720 = vmatprep.subr.bf16.mxu1 %v3939_v63  ;;  %v3993_v63 = vld [vmem:[%s5284_s30 + $0x30] sm:$0xff]  }
 0xcab   : > { %2762 = vmatpush1.bf16.msra.mxu0 %v3940_v3  ;;  %v3996_v3 = vld [vmem:[%s5284_s30 + $0xf8] sm:$0xff]  }
 0xcac   : > { %2763 = vmatprep.subr.bf16.mxu0 %v3948_v5  ;;  %v3998_v5 = vld [vmem:[%s5284_s30 + $0xb8] sm:$0xff]  }
 0xcad   : > { %2721 = vmatpush1.bf16.msra.mxu1 %v3937_v37  ;;  %v3995_v37 = vld [vmem:[%s5284_s30 + $0x78] sm:$0xff]  }
 0xcae   : > { %2722 = vmatprep.subr.bf16.mxu1 %v3945_v4  ;;  %v3997_v4 = vld [vmem:[%s5284_s30 + $0x38] sm:$0xff]  }
 0xcaf   : > { %2764 = vmatpush1.bf16.msra.mxu0 %v3946_v9 }
 0xcb0   : > { %2765 = vmatprep.subr.bf16.mxu0 %v3954_v13 }
 0xcb1   : > { %2723 = vmatpush1.bf16.msra.mxu1 %v3943_v7  ;;  %v2532_v7 = vld [vmem:[#allocation9] sm:$0xf] }
 0xcb2   : > { %2724 = vmatprep.subr.bf16.mxu1 %v3951_v11  ;;  %v2537_v9 = vrot.slane %v2532_v7, %v4859_v28  ;;  %v2545_v11 = vrot.slane %v2532_v7, %v4864_v33  ;;  %v2541_v13 = vrot.slane %v2532_v7, %v4854_v18 }
 0xcb3   : > { %2766 = vmatpush1.bf16.msra.mxu0 %v3952_v42 }
 0xcb4   : > { %2767 = vmatprep.subr.bf16.mxu0 %v3960_v17 }
 0xcb5   : > { %2725 = vmatpush1.bf16.msra.mxu1 %v3949_v15  ;;  %v2549_v15 = vrot.slane %v2532_v7, %v1010_v23 }
 0xcb6   : > { %2726 = vmatprep.subr.bf16.mxu1 %v3957_v16 }
 0xcb7   : > { %2768 = vmatpush1.bf16.msra.mxu0 %v3958_v21 }
 0xcb8   : > { %2769 = vmatprep.subr.bf16.mxu0 %v3966_v26 }
 0xcb9   : > { %2727 = vmatpush1.bf16.msra.mxu1 %v3955_v19 }
 0xcba   : > { %2728 = vmatprep.subr.bf16.mxu1 %v3963_v22 }
 0xcbb   : > { %2770 = vmatpush1.bf16.msra.mxu0 %v3964_v25 }
 0xcbc   : > { %3601 = vmatprep.subr.bf16.mxu0 %v3968_v10 }
 0xcbd   : > { %2729 = vmatpush1.bf16.msra.mxu1 %v3961_v24 }
 0xd71   : > { %v2465_v41 = vpop.f32.mrb[16].mxu0 }
 0xd72   : > { %v2466_v45 = vadd.f32 %v3461_v20, %v2465_v41  ;;  %v3717_v46 = vpop.f32.mrb[17].mxu0  ;;  %v3967_v41 = vld [vmem:[%s5284_s30 + $0x40] sm:$0xff]  }
 0xd73   : > { %v2468_v47 = vpop.f32.mrb[18].mxu0  ;;  %3579 = vmatprep.subr.bf16.mxu1 %v3967_v41  ;;  %v3972_v46 = vld [vmem:[%s5284_s30 + $0xc8] sm:$0xff]  }
 0xd74   : > { %v2475_v61 = vmul.f32 %v2474_v43, %v2466_v45  ;;  %v3718_v48 = vpop.f32.mrb[19].mxu0  ;;  %v3969_v43 = vld [vmem:[%s5284_s30] sm:$0xff]   ;;  %v3971_v45 = vld [vmem:[%s5284_s30 + $0x48] sm:$0xff]  }
 0xd75   : > { %v3973_v47 = vld [vmem:[%s5284_s30 + $0x8] sm:$0xff]   ;;  %v3975_v48 = vld [vmem:[%s5284_s30 + $0x50] sm:$0xff]  }
 0xd76   : > { %v5026_v51 = vadd.f32 %v4033_v50, %v2475_v61  ;;  %v3974_v61 = vld [vmem:[%s5284_s30 + $0x88] sm:$0xff]   ;;  %v3976_v50 = vld [vmem:[%s5284_s30 + $0xd0] sm:$0xff]  }
 0xd78   : > { %2477 = vadd.xlane.f32.xlu0 %v5026_v51 }
 0xe05   : > { %v2478_v58 = vpop.xlane.xlu0 %2477 }
 0xe06   : > { %v2479_v59 = vmul.f32 0.0078125, %v2478_v58  ;;  %v3989_v58 = vld [vmem:[%s5284_s30 + $0x28] sm:$0xff]  }
 0xe08   : > { %v2480_v60 = vsub.f32 %v5026_v51, %v2479_v59  ;;  %v3990_v59 = vld [vmem:[%s5284_s30 + $0xa8] sm:$0xff]  }
 0xe0a   : > { %v2481_v62 = vmul.f32 %v2480_v60, %v2480_v60 }
 0xe0c   : > { %2482 = vadd.xlane.f32.xlu1 %v2481_v62  ;;  %v3992_v62 = vld [vmem:[%s5284_s30 + $0xf0] sm:$0xff]  }
 0xe99   : > { %v2483_v29 = vpop.xlane.xlu1 %2482 }
 0xe9a   : > { %v2484_v30 = vmul.f32 0.0078125, %v2483_v29 }
 0xe9c   : > { %v2485_v32 = vadd.f32 1e-06, %v2484_v30 }
 0xe9e   : > { %4023 = vrsqrt.f32 %v2485_v32 }
 0xea8   : > { %v4024_v34 = vpop.eup %4023 }
 0xea9   : > { %v2487_v35 = vmul.f32 %v4024_v34, %v2480_v60  ;;  %v3991_v60 = vld [vmem:[%s5284_s30 + $0x70] sm:$0xff]  }
 0xeab   : > { %v2493_v38 = vmul.f32 %v2492_v2, %v2487_v35 }
 0xead   : > { %v2498_v39 = vadd.f32 %v2497_v36, %v2493_v38 }
 0xeaf   : > { %v2499_v20 = vpack.c.bf16 %v2498_v39, %v2498_v39 }
 0xeb1   : > { %2747 = vmatmul.mubr.bf16.vlgmr.msra.gmra.mrb[28].mxu1 %v2499_v20  ;;  %2788 = vmatmul.mubr.bf16.vlgmr.msra.gmra.mrb[20].mxu0 %v2499_v20 }
 0xeb2   : > { %3580 = vmatpush3.bf16.msra.mxu1 %v3969_v43  ;;  %3602 = vmatpush3.bf16.msra.mxu0 %v3970_v12 }
 0xeb3   : > { %3581 = vmatprep.subr.bf16.mxu1 %v3971_v45  ;;  %3603 = vmatprep.subr.bf16.mxu0 %v3972_v46 }
 0xeb6   : > { %3582 = vmatpush3.bf16.msra.mxu1 %v3973_v47  ;;  %3604 = vmatpush3.bf16.msra.mxu0 %v3974_v61 }
 0xeb7   : > { %3583 = vmatprep.subr.bf16.mxu1 %v3975_v48  ;;  %3605 = vmatprep.subr.bf16.mxu0 %v3976_v50 }
 0xeba   : > { %3584 = vmatpush3.bf16.msra.mxu1 %v3977_v52  ;;  %3606 = vmatpush3.bf16.msra.mxu0 %v3978_v0 }
 0xebb   : > { %3585 = vmatprep.subr.bf16.mxu1 %v3979_v8  ;;  %3607 = vmatprep.subr.bf16.mxu0 %v3980_v40 }
 0xebe   : > { %3586 = vmatpush3.bf16.msra.mxu1 %v3981_v27  ;;  %3608 = vmatpush3.bf16.msra.mxu0 %v3982_v44 }
 0xebf   : > { %3587 = vmatprep.subr.bf16.mxu1 %v3983_v53  ;;  %3609 = vmatprep.subr.bf16.mxu0 %v3984_v54 }
 0xec2   : > { %3588 = vmatpush3.bf16.msra.mxu1 %v3985_v31  ;;  %3610 = vmatpush3.bf16.msra.mxu0 %v3986_v55 }
 0xec3   : > { %3589 = vmatprep.subr.bf16.mxu1 %v3987_v56  ;;  %3611 = vmatprep.subr.bf16.mxu0 %v3988_v57 }
 0xec6   : > { %3590 = vmatpush3.bf16.msra.mxu1 %v3989_v58  ;;  %3612 = vmatpush3.bf16.msra.mxu0 %v3990_v59 }
 0xec7   : > { %3591 = vmatprep.subr.bf16.mxu1 %v3991_v60  ;;  %3613 = vmatprep.subr.bf16.mxu0 %v3992_v62 }
 0xeca   : > { %3592 = vmatpush3.bf16.msra.mxu1 %v3993_v63  ;;  %3614 = vmatpush3.bf16.msra.mxu0 %v3994_v6 }
 0xecb   : > { %3593 = vmatprep.subr.bf16.mxu1 %v3995_v37  ;;  %3615 = vmatprep.subr.bf16.mxu0 %v3996_v3 }
 0xece   : > { %3594 = vmatpush3.bf16.msra.mxu1 %v3997_v4  ;;  %3616 = vmatpush3.bf16.msra.mxu0 %v3998_v5  ;;  %v3502_v4 = vld [vmem:[#allocation10] ss:$0 sm:$0xff] }
 0xf84   : > { %v2748_v42 = vpop.f32.mrb[28].mxu1  ;;  %v2789_v16 = vpop.f32.mrb[20].mxu0 }
 0xf85   : > { %v2749_v17 = vadd.f32 %v2748_v42, %v2537_v9  ;;  %v2790_v19 = vadd.f32 %v2789_v16, %v2545_v11  ;;  %v2750_v21 = vpop.f32.mrb[29].mxu1  ;;  %v2791_v22 = vpop.f32.mrb[21].mxu0 }
 0xf86   : > { %v2751_v24 = vadd.f32 %v2750_v21, %v2541_v13  ;;  %v2792_v25 = vadd.f32 %v2791_v22, %v2549_v15  ;;  %v2752_v26 = vpop.f32.mrb[30].mxu1  ;;  %v2793_v29 = vpop.f32.mrb[22].mxu0 }
 0xf87   : > { %v2800_v30 = vmul.f32 0.044715, %v2749_v17  ;;  %v2802_v32 = vmul.f32 0.044715, %v2790_v19  ;;  %v2753_v1 = vpop.f32.mrb[31].mxu1  ;;  %v2794_v34 = vpop.f32.mrb[23].mxu0 }
 0xf88   : > { %v2801_v33 = vmul.f32 0.044715, %v2751_v24  ;;  %v2803_v2 = vmul.f32 0.044715, %v2792_v25  ;;  %v2796_v52 = vmul.f32 0.5, %v2749_v17  ;;  %v2797_v40 = vmul.f32 0.5, %v2751_v24 }
 0xf89   : > { %v2804_v18 = vmul.f32 %v2800_v30, %v2749_v17  ;;  %v2806_v35 = vmul.f32 %v2802_v32, %v2790_v19  ;;  %v2799_v53 = vmul.f32 0.5, %v2792_v25  ;;  %v2798_v56 = vmul.f32 0.5, %v2790_v19 }
 0xf8a   : > { %v2805_v49 = vmul.f32 %v2801_v33, %v2751_v24  ;;  %v2807_v23 = vmul.f32 %v2803_v2, %v2792_v25 }
 0xf8b   : > { %v2808_v36 = vmul.f32 %v2804_v18, %v2749_v17  ;;  %v2810_v38 = vmul.f32 %v2806_v35, %v2790_v19 }
 0xf8c   : > { %v2809_v39 = vmul.f32 %v2805_v49, %v2751_v24  ;;  %v2811_v20 = vmul.f32 %v2807_v23, %v2792_v25 }
 0xf8d   : > { %v2812_v41 = vadd.f32 %v2808_v36, %v2749_v17  ;;  %v2814_v10 = vadd.f32 %v2810_v38, %v2790_v19  ;;  %v3182_v19 = vrot.slane %v4851_v14, %v4859_v28 }
 0xf8e   : > { %v2813_v43 = vadd.f32 %v2809_v39, %v2751_v24  ;;  %v2815_v12 = vadd.f32 %v2811_v20, %v2792_v25 }
 0xf8f   : > { %v2816_v45 = vmul.f32 0.7978846, %v2812_v41  ;;  %v2818_v61 = vmul.f32 0.7978846, %v2814_v10 }
 0xf90   : > { %v2817_v46 = vmul.f32 0.7978846, %v2813_v43  ;;  %v2819_v47 = vmul.f32 0.7978846, %v2815_v12 }
 0xf91   : > { %4025 = vtanh.f32 %v2816_v45 }
 0xf92   : > { %4027 = vtanh.f32 %v2817_v46 }
 0xf93   : > { %4029 = vtanh.f32 %v2819_v47 }
 0xf94   : > { %4031 = vtanh.f32 %v2818_v61 }
 0xf9b   : > { %v4026_v48 = vpop.eup %4025 }
 0xf9c   : > { %v4028_v50 = vpop.eup %4027  ;;  %v2824_v0 = vadd.f32 1.0, %v4026_v48 }
 0xf9d   : > { %v4030_v8 = vpop.eup %4029  ;;  %v2825_v27 = vadd.f32 1.0, %v4028_v50 }
 0xf9e   : > { %v4032_v44 = vpop.eup %4031  ;;  %v2827_v54 = vadd.f32 1.0, %v4030_v8  ;;  %v2828_v31 = vmul.f32 %v2824_v0, %v2796_v52 }
 0xf9f   : > { %v2829_v55 = vmul.f32 %v2825_v27, %v2797_v40  ;;  %v2826_v57 = vadd.f32 1.0, %v4032_v44 }
 0xfa0   : > { %v2831_v58 = vmul.f32 %v2827_v54, %v2799_v53  ;;  %v2832_v63 = vpack.c.bf16 %v2828_v31, %v2828_v31 }
 0xfa1   : > { %v2833_v59 = vpack.c.bf16 %v2829_v55, %v2829_v55  ;;  %v2830_v60 = vmul.f32 %v2826_v57, %v2798_v56 }
 0xfa2   : > { %v2835_v62 = vpack.c.bf16 %v2831_v58, %v2831_v58 }
 0xfa3   : > { %3131 = vmatprep.mubr.bf16.mxu1 %v2833_v59  ;;  %v2834_v6 = vpack.c.bf16 %v2830_v60, %v2830_v60 }
 0xfa4   : > { %3171 = vmatprep.mubr.bf16.mxu0 %v2835_v62  ;;  %3132 = vmatmul.mubr.bf16.vlgmr.msra.gmra.mrb[32].mxu1 %v2832_v63 }
 0xfa5   : > { %3172 = vmatmul.mubr.bf16.vlgmr.msra.gmra.mrb[24].mxu0 %v2834_v6 }
0x1077   : > { %v3595_v37 = vpop.f32.mrb[32].mxu1 }
0x1078   : > { %v3617_v3 = vpop.f32.mrb[24].mxu0  ;;  %v3596_v5 = vpop.f32.mrb[33].mxu1 }
0x1079   : > { %v3597_v7 = vadd.f32 %v3596_v5, %v3595_v37  ;;  %v3618_v9 = vpop.f32.mrb[25].mxu0  ;;  %v3598_v11 = vpop.f32.mrb[34].mxu1 }
0x107a   : > { %v3619_v13 = vadd.f32 %v3618_v9, %v3617_v3  ;;  %v3620_v15 = vpop.f32.mrb[26].mxu0  ;;  %v3599_v42 = vpop.f32.mrb[35].mxu1 }
0x107b   : > { %v3134_v16 = vadd.f32 %v3597_v7, %v3502_v4  ;;  %v3621_v17 = vpop.f32.mrb[27].mxu0 }
0x107d   : > { %v3174_v21 = vadd.f32 %v3619_v13, %v3134_v16 }
0x107f   : > { %v3183_v22 = vmul.f32 %v3182_v19, %v3174_v21 }
0x1081   : > { %v3184_v24 = vadd.f32 %v3183_v22, %v5026_v51 }
0x1083   : > { %3185 = vst [vmem:[%s598_s15] sm:$0xff] %v3184_v24 }
0x1084 PF: > { %s5286_s13 = sld [smem:[#allocation16_spill]] }
0x108a   : > { %s29_s18 = sadd.s32 1, %s5286_s13  }
0x108b   : > { %p26_p11 = scmp.ge.s32.totalorder %s29_s18, 4  }
0x108d   :  { %28 = sbr.rel (!%p26_p11) target bundleno = 10 (0xa), region = 141 }
0x1094   :  { %3205 = vsyncpa [#allocation3], 1 }
0x1095   :  { %3207 = vsyncpa [#allocation3 + $0x1], 1 }
0x1096   :  { %3208 = vsyncpa [#allocation5], 1 }
0x1097   :  { %3209 = vsyncpa [#allocation8], 1 }
0x1098   :  { %3210 = vsyncpa [#allocation11], 1 }

</bundles_post_ra>
